<compile_context>
chip_gen: v6e
topology: v6e:2x2x1
jax: 0.10.0
libtpu: 0.0.40
codegen_flags: <defaults>
</compile_context>

<pallas_src>
import functools

import jax
import jax.numpy as jnp
from jax import lax
from jax.experimental import pallas as pl
from jax.experimental.pallas import tpu as pltpu


# ---------------------------------------------------------------------------
# Kernel
# ---------------------------------------------------------------------------
def _spatial_attention_kernel(w_ref, x_ref, o_ref,
                              sum_ref, max_ref, psum_ref, pmax_ref, *,
                              kh, kw, pad):
    # w_ref:    (2*kh*kw,) f32 SMEM   [0:kk) avg-branch weights (pre-divided by C),
    #                                 [kk:2kk) max-branch weights
    # x_ref:    (1, tc, H, W)   VMEM  input channel tile
    # o_ref:    (1, 1, H, W)    VMEM  output attention map
    # sum_ref:  (H, W)   f32 VMEM     ALIGNED channel-sum accumulator (hot loop)
    # max_ref:  (H, W)   f32 VMEM     ALIGNED channel-max accumulator (hot loop)
    # psum_ref: (H+2p, W+2p) f32 VMEM zero-halo sum map (built once in finalize)
    # pmax_ref: (H+2p, W+2p) f32 VMEM zero-halo max map (built once in finalize)
    tc = x_ref.shape[1]
    h = x_ref.shape[2]
    w = x_ref.shape[3]

    ci = pl.program_id(1)
    nc = pl.num_programs(1)

    # ---- partial channel reduction over this tile (static unroll) ----------
    # Multiple accumulator chains so vld / vadd / vmax co-issue instead of
    # stalling on one serial dependency.
    n_chains = max(1, min(4, tc))
    sum_c = [x_ref[0, t].astype(jnp.float32) for t in range(n_chains)]
    max_c = list(sum_c)
    for t in range(n_chains, tc):
        v = x_ref[0, t].astype(jnp.float32)
        k = t % n_chains
        sum_c[k] = sum_c[k] + v
        max_c[k] = jnp.maximum(max_c[k], v)
    part_sum = sum_c[0]
    part_max = max_c[0]
    for k in range(1, n_chains):
        part_sum = part_sum + sum_c[k]
        part_max = jnp.maximum(part_max, max_c[k])

    # ---- accumulate into ALIGNED (H, W) scratch (plain vld/vadd/vmax/vst) ---
    @pl.when(ci == 0)
    def _init():
        sum_ref[...] = part_sum
        max_ref[...] = part_max

    @pl.when(ci > 0)
    def _accum():
        sum_ref[...] = sum_ref[...] + part_sum
        max_ref[...] = jnp.maximum(max_ref[...], part_max)

    # ---- finalize (once per image): halo, 2->1 KxK conv, sigmoid -----------
    @pl.when(ci == nc - 1)
    def _finalize():
        # Build the zero-halo maps (== Conv2d zero padding) once per image; the
        # misaligned halo writes are no longer in the per-channel-step hot loop.
        psum_ref[...] = jnp.zeros_like(psum_ref)
        pmax_ref[...] = jnp.zeros_like(pmax_ref)
        interior = (pl.ds(pad, h), pl.ds(pad, w))
        psum_ref[interior] = sum_ref[...]
        pmax_ref[interior] = max_ref[...]

        kk = kh * kw
        hp = h + 2 * pad
        # Hoist lane (column) shifts: one lane-offset slab load per column
        # offset j; the kh row offsets are sublane-only slices of that value.
        acc_s = [jnp.zeros((h, w), jnp.float32) for _ in range(2)]
        acc_m = [jnp.zeros((h, w), jnp.float32) for _ in range(2)]
        for j in range(kw):
            s_col = psum_ref[pl.ds(0, hp), pl.ds(j, w)]   # (H+2p, W), lane shift j
            m_col = pmax_ref[pl.ds(0, hp), pl.ds(j, w)]
            for i in range(kh):
                c = i & 1
                acc_s[c] = acc_s[c] + w_ref[i * kw + j] * s_col[i:i + h, :]       # avg branch
                acc_m[c] = acc_m[c] + w_ref[kk + i * kw + j] * m_col[i:i + h, :]  # max branch
        acc = (acc_s[0] + acc_s[1]) + (acc_m[0] + acc_m[1])
        # Exact sigmoid: the epilogue runs once per image, so its divide count
        # is negligible; no need for the EUP approx reciprocal here.
        o_ref[0, 0] = (1.0 / (1.0 + jnp.exp(-acc))).astype(o_ref.dtype)


# ---------------------------------------------------------------------------
# Wrapper
# ---------------------------------------------------------------------------
def _vmem_capacity_bytes(default=64 * 1024 * 1024):
    """Physical per-core VMEM; falls back to the smallest (v7x) capacity."""
    try:
        info = pltpu.get_tpu_info()
        cap = getattr(info, "vmem_capacity_bytes", None)
        if cap:
            return int(cap)
    except Exception:
        pass
    return default


def _pick_channel_tile(c, h, w, itemsize, *, max_unroll=64, budget_bytes=8 << 20):
    """Largest divisor of C (capped for unroll length) whose input tile fits."""
    best = 1
    for tcand in range(1, min(c, max_unroll) + 1):
        if c % tcand == 0 and tcand * h * w * itemsize <= budget_bytes:
            best = tcand
    return best


@functools.partial(jax.jit, static_argnames=("kernel_size",))
def spatial_attention(x, conv_weight, *, kernel_size=7):
    """SpatialAttention forward.

    x:           (N, C, H, W)              NCHW
    conv_weight: (1, 2, k, k)  OIHW weight (in-channel 0 = avg, 1 = max)
    returns      (N, 1, H, W)  sigmoid attention map, NCHW
    """
    assert kernel_size in (3, 7), "kernel size must be 3 or 7"
    pad = 3 if kernel_size == 7 else 1
    n, c, h, w = x.shape
    kh = kw = kernel_size
    hp, wp = h + 2 * pad, w + 2 * pad
    itemsize = jnp.dtype(x.dtype).itemsize

    # Fold the 1/C of the channel mean into the avg-branch conv weights and
    # flatten both branches into one small f32 vector kept resident in SMEM.
    w_avg = (conv_weight[0, 0] / c).reshape(-1)
    w_max = conv_weight[0, 1].reshape(-1)
    w_flat = jnp.concatenate([w_avg, w_max]).astype(jnp.float32)

    # Generation-aware VMEM budget: ~half the physical per-core VMEM as the
    # scoped limit (≈32 MiB on v7x 64 MiB parts, ≈64 MiB on v5e/v6e 128 MiB
    # parts) and a channel tile big enough to amortize per-step overhead.
    cap = _vmem_capacity_bytes()
    vmem_cap = int(min(cap // 2, 96 * 1024 * 1024))
    fixed = 2 * h * w * 4 + 2 * hp * wp * 4 + 2 * h * w * itemsize
    avail = max(vmem_cap - fixed - (2 << 20), 1 << 20)
    block_budget = int(min(avail // 2, 8 * 1024 * 1024))   # per (double-buffered) x block
    tc = _pick_channel_tile(c, h, w, itemsize, budget_bytes=block_budget)

    est = 2 * tc * h * w * itemsize + fixed + (2 << 20)
    vmem_limit = int(max(vmem_cap, est))

    grid = (n, c // tc)
    kernel = functools.partial(_spatial_attention_kernel, kh=kh, kw=kw, pad=pad)

    return pl.pallas_call(
        kernel,
        out_shape=jax.ShapeDtypeStruct((n, 1, h, w), x.dtype),
        grid_spec=pltpu.PrefetchScalarGridSpec(
            num_scalar_prefetch=0,
            grid=grid,
            in_specs=[
                pl.BlockSpec(memory_space=pltpu.MemorySpace.SMEM),          # conv weights
                pl.BlockSpec((1, tc, h, w), lambda b, ci: (b, ci, 0, 0)),   # x channel tile
            ],
            out_specs=pl.BlockSpec((1, 1, h, w), lambda b, ci: (b, 0, 0, 0)),
            scratch_shapes=[
                pltpu.VMEM((h, w), jnp.float32),     # aligned channel-sum accumulator
                pltpu.VMEM((h, w), jnp.float32),     # aligned channel-max accumulator
                pltpu.VMEM((hp, wp), jnp.float32),   # zero-halo sum map (finalize only)
                pltpu.VMEM((hp, wp), jnp.float32),   # zero-halo max map (finalize only)
            ],
        ),
        compiler_params=pltpu.CompilerParams(
            dimension_semantics=("parallel", "arbitrary"),
            vmem_limit_bytes=vmem_limit,
        ),
    )(w_flat, x)


# ---------------------------------------------------------------------------
# Pure-JAX reference (for correctness check)
# ---------------------------------------------------------------------------
def _reference(x, conv_weight, *, kernel_size):
    pad = 3 if kernel_size == 7 else 1
    avg = jnp.mean(x, axis=1, keepdims=True)
    mx = jnp.max(x, axis=1, keepdims=True)
    feat = jnp.concatenate([avg, mx], axis=1)            # (N, 2, H, W)
    conv = lax.conv_general_dilated(
        feat, conv_weight, window_strides=(1, 1),
        padding=[(pad, pad), (pad, pad)],
        dimension_numbers=("NCHW", "OIHW", "NCHW"))
    return jax.nn.sigmoid(conv)


if __name__ == "__main__":
    # SpatialAttention(kernel_size=7) applied to a small NCHW feature map.
    N, C, H, W = 2, 4, 16, 16
    kernel_size = 7

    key = jax.random.PRNGKey(0)
    kx, kw_ = jax.random.split(key)
    x = jax.random.normal(kx, (N, C, H, W), dtype=jnp.float32)
    conv_weight = 0.1 * jax.random.normal(
        kw_, (1, 2, kernel_size, kernel_size), dtype=jnp.float32)

    out = spatial_attention(x, conv_weight, kernel_size=kernel_size)
    out = jax.block_until_ready(out)

    ref = _reference(x, conv_weight, kernel_size=kernel_size)
    assert out.shape == (N, 1, H, W), out.shape
    assert jnp.allclose(out, ref, atol=1e-5, rtol=1e-5), (
        "mismatch vs reference, max abs err = "
        + str(float(jnp.max(jnp.abs(out - ref)))))

    print("KERNEL_OK")
</pallas_src>

<mosaic_0001>
module attributes {stable_mosaic.version = 11 : i64} {
  func.func @_spatial_attention_kernel(%arg0: i32, %arg1: i32, %arg2: memref<98xf32, #tpu.memory_space<smem>>, %arg3: memref<1x4x16x16xf32, #tpu.memory_space<vmem>>, %arg4: memref<1x1x16x16xf32, #tpu.memory_space<vmem>>, %arg5: memref<16x16xf32, #tpu.memory_space<vmem>>, %arg6: memref<16x16xf32, #tpu.memory_space<vmem>>, %arg7: memref<22x22xf32, #tpu.memory_space<vmem>>, %arg8: memref<22x22xf32, #tpu.memory_space<vmem>>) attributes {dimension_semantics = [#tpu.dimension_semantics<parallel>, #tpu.dimension_semantics<arbitrary>], iteration_bounds = array<i64: 2, 1>, scalar_prefetch = 0 : i64, scratch_operands = 4 : i64, tpu.core_type = #tpu.core_type<tc>, window_params = [{transform_indices = @transform_0, window_bounds = array<i64: 98>}, {transform_indices = @transform_1, window_bounds = array<i64: 1, 4, 16, 16>}, {transform_indices = @transform_2, window_bounds = array<i64: 1, 1, 16, 16>}]} {
    %c0 = arith.constant 0 : index
    %c0_0 = arith.constant 0 : index
    %c0_1 = arith.constant 0 : index
    %c0_2 = arith.constant 0 : index
    %0 = vector.load %arg3[%c0, %c0_0, %c0_1, %c0_2] : memref<1x4x16x16xf32, #tpu.memory_space<vmem>>, vector<1x1x16x16xf32>
    %1 = vector.shape_cast %0 : vector<1x1x16x16xf32> to vector<16x16xf32>
    %c0_3 = arith.constant 0 : index
    %c1 = arith.constant 1 : index
    %c0_4 = arith.constant 0 : index
    %c0_5 = arith.constant 0 : index
    %2 = vector.load %arg3[%c0_3, %c1, %c0_4, %c0_5] : memref<1x4x16x16xf32, #tpu.memory_space<vmem>>, vector<1x1x16x16xf32>
    %3 = vector.shape_cast %2 : vector<1x1x16x16xf32> to vector<16x16xf32>
    %c0_6 = arith.constant 0 : index
    %c2 = arith.constant 2 : index
    %c0_7 = arith.constant 0 : index
    %c0_8 = arith.constant 0 : index
    %4 = vector.load %arg3[%c0_6, %c2, %c0_7, %c0_8] : memref<1x4x16x16xf32, #tpu.memory_space<vmem>>, vector<1x1x16x16xf32>
    %5 = vector.shape_cast %4 : vector<1x1x16x16xf32> to vector<16x16xf32>
    %c0_9 = arith.constant 0 : index
    %c3 = arith.constant 3 : index
    %c0_10 = arith.constant 0 : index
    %c0_11 = arith.constant 0 : index
    %6 = vector.load %arg3[%c0_9, %c3, %c0_10, %c0_11] : memref<1x4x16x16xf32, #tpu.memory_space<vmem>>, vector<1x1x16x16xf32>
    %7 = vector.shape_cast %6 : vector<1x1x16x16xf32> to vector<16x16xf32>
    %8 = arith.addf %1, %3 : vector<16x16xf32>
    %9 = arith.maximumf %1, %3 : vector<16x16xf32>
    %10 = arith.addf %8, %5 : vector<16x16xf32>
    %11 = arith.maximumf %9, %5 : vector<16x16xf32>
    %12 = arith.addf %10, %7 : vector<16x16xf32>
    %13 = arith.maximumf %11, %7 : vector<16x16xf32>
    %c0_i32 = arith.constant 0 : i32
    %14 = arith.cmpi eq, %arg1, %c0_i32 : i32
    %15 = arith.extui %14 : i1 to i32
    %c0_i32_12 = arith.constant 0 : i32
    %16 = arith.cmpi ne, %15, %c0_i32_12 : i32
    scf.if %16 {
      %c0_17 = arith.constant 0 : index
      %c0_18 = arith.constant 0 : index
      %23 = vector.load %arg5[%c0_17, %c0_18] : memref<16x16xf32, #tpu.memory_space<vmem>>, vector<16x16xf32>
      tpu.vector_store %arg5[%c0_17, %c0_18], %12 {strides = array<i32>} : memref<16x16xf32, #tpu.memory_space<vmem>>, vector<16x16xf32>,
      %c0_19 = arith.constant 0 : index
      %c0_20 = arith.constant 0 : index
      %24 = vector.load %arg6[%c0_19, %c0_20] : memref<16x16xf32, #tpu.memory_space<vmem>>, vector<16x16xf32>
      tpu.vector_store %arg6[%c0_19, %c0_20], %13 {strides = array<i32>} : memref<16x16xf32, #tpu.memory_space<vmem>>, vector<16x16xf32>,
    } else {
    }
    %c0_i32_13 = arith.constant 0 : i32
    %17 = arith.cmpi sgt, %arg1, %c0_i32_13 : i32
    %18 = arith.extui %17 : i1 to i32
    %c0_i32_14 = arith.constant 0 : i32
    %19 = arith.cmpi ne, %18, %c0_i32_14 : i32
    scf.if %19 {
      %c0_17 = arith.constant 0 : index
      %c0_18 = arith.constant 0 : index
      %23 = vector.load %arg5[%c0_17, %c0_18] : memref<16x16xf32, #tpu.memory_space<vmem>>, vector<16x16xf32>
      %24 = arith.addf %23, %12 : vector<16x16xf32>
      %c0_19 = arith.constant 0 : index
      %c0_20 = arith.constant 0 : index
      %25 = vector.load %arg5[%c0_19, %c0_20] : memref<16x16xf32, #tpu.memory_space<vmem>>, vector<16x16xf32>
      tpu.vector_store %arg5[%c0_19, %c0_20], %24 {strides = array<i32>} : memref<16x16xf32, #tpu.memory_space<vmem>>, vector<16x16xf32>,
      %c0_21 = arith.constant 0 : index
      %c0_22 = arith.constant 0 : index
      %26 = vector.load %arg6[%c0_21, %c0_22] : memref<16x16xf32, #tpu.memory_space<vmem>>, vector<16x16xf32>
      %27 = arith.maximumf %26, %13 : vector<16x16xf32>
      %c0_23 = arith.constant 0 : index
      %c0_24 = arith.constant 0 : index
      %28 = vector.load %arg6[%c0_23, %c0_24] : memref<16x16xf32, #tpu.memory_space<vmem>>, vector<16x16xf32>
      tpu.vector_store %arg6[%c0_23, %c0_24], %27 {strides = array<i32>} : memref<16x16xf32, #tpu.memory_space<vmem>>, vector<16x16xf32>,
    } else {
    }
    %c0_i32_15 = arith.constant 0 : i32
    %20 = arith.cmpi eq, %arg1, %c0_i32_15 : i32
    %21 = arith.extui %20 : i1 to i32
    %c0_i32_16 = arith.constant 0 : i32
    %22 = arith.cmpi ne, %21, %c0_i32_16 : i32
    scf.if %22 {
      %cst = arith.constant 0.000000e+00 : f32
      %23 = vector.broadcast %cst : f32 to vector<22x22xf32>
      %c0_17 = arith.constant 0 : index
      %c0_18 = arith.constant 0 : index
      %24 = vector.load %arg7[%c0_17, %c0_18] : memref<22x22xf32, #tpu.memory_space<vmem>>, vector<22x22xf32>
      tpu.vector_store %arg7[%c0_17, %c0_18], %23 {strides = array<i32>} : memref<22x22xf32, #tpu.memory_space<vmem>>, vector<22x22xf32>,
      %cst_19 = arith.constant 0.000000e+00 : f32
      %25 = vector.broadcast %cst_19 : f32 to vector<22x22xf32>
      %c0_20 = arith.constant 0 : index
      %c0_21 = arith.constant 0 : index
      %26 = vector.load %arg8[%c0_20, %c0_21] : memref<22x22xf32, #tpu.memory_space<vmem>>, vector<22x22xf32>
      tpu.vector_store %arg8[%c0_20, %c0_21], %25 {strides = array<i32>} : memref<22x22xf32, #tpu.memory_space<vmem>>, vector<22x22xf32>,
      %c0_22 = arith.constant 0 : index
      %c0_23 = arith.constant 0 : index
      %27 = vector.load %arg5[%c0_22, %c0_23] : memref<16x16xf32, #tpu.memory_space<vmem>>, vector<16x16xf32>
      %c3_24 = arith.constant 3 : index
      %c3_25 = arith.constant 3 : index
      %28 = vector.load %arg7[%c3_24, %c3_25] : memref<22x22xf32, #tpu.memory_space<vmem>>, vector<16x16xf32>
      tpu.vector_store %arg7[%c3_24, %c3_25], %27 {strides = array<i32>} : memref<22x22xf32, #tpu.memory_space<vmem>>, vector<16x16xf32>,
      %c0_26 = arith.constant 0 : index
      %c0_27 = arith.constant 0 : index
      %29 = vector.load %arg6[%c0_26, %c0_27] : memref<16x16xf32, #tpu.memory_space<vmem>>, vector<16x16xf32>
      %c3_28 = arith.constant 3 : index
      %c3_29 = arith.constant 3 : index
      %30 = vector.load %arg8[%c3_28, %c3_29] : memref<22x22xf32, #tpu.memory_space<vmem>>, vector<16x16xf32>
      tpu.vector_store %arg8[%c3_28, %c3_29], %29 {strides = array<i32>} : memref<22x22xf32, #tpu.memory_space<vmem>>, vector<16x16xf32>,
      %cst_30 = arith.constant 0.000000e+00 : f32
      %31 = vector.broadcast %cst_30 : f32 to vector<16x16xf32>
      %cst_31 = arith.constant 0.000000e+00 : f32
      %32 = vector.broadcast %cst_31 : f32 to vector<16x16xf32>
      %cst_32 = arith.constant 0.000000e+00 : f32
      %33 = vector.broadcast %cst_32 : f32 to vector<16x16xf32>
      %cst_33 = arith.constant 0.000000e+00 : f32
      %34 = vector.broadcast %cst_33 : f32 to vector<16x16xf32>
      %c0_34 = arith.constant 0 : index
      %c0_35 = arith.constant 0 : index
      %35 = vector.load %arg7[%c0_34, %c0_35] : memref<22x22xf32, #tpu.memory_space<vmem>>, vector<22x16xf32>
      %c0_36 = arith.constant 0 : index
      %c0_37 = arith.constant 0 : index
      %36 = vector.load %arg8[%c0_36, %c0_37] : memref<22x22xf32, #tpu.memory_space<vmem>>, vector<22x16xf32>
      %c0_38 = arith.constant 0 : index
      %37 = memref.load %arg2[%c0_38] : memref<98xf32, #tpu.memory_space<smem>>
      %38 = vector.extract_strided_slice %35 {offsets = [0, 0], sizes = [16, 16], strides = [1, 1]} : vector<22x16xf32> to vector<16x16xf32>
      %39 = vector.broadcast %37 : f32 to vector<16x16xf32>
      %40 = arith.mulf %39, %38 : vector<16x16xf32>
      %41 = arith.addf %31, %40 : vector<16x16xf32>
      %c49 = arith.constant 49 : index
      %42 = memref.load %arg2[%c49] : memref<98xf32, #tpu.memory_space<smem>>
      %43 = vector.extract_strided_slice %36 {offsets = [0, 0], sizes = [16, 16], strides = [1, 1]} : vector<22x16xf32> to vector<16x16xf32>
      %44 = vector.broadcast %42 : f32 to vector<16x16xf32>
      %45 = arith.mulf %44, %43 : vector<16x16xf32>
      %46 = arith.addf %33, %45 : vector<16x16xf32>
      %c7 = arith.constant 7 : index
      %47 = memref.load %arg2[%c7] : memref<98xf32, #tpu.memory_space<smem>>
      %48 = vector.extract_strided_slice %35 {offsets = [1, 0], sizes = [16, 16], strides = [1, 1]} : vector<22x16xf32> to vector<16x16xf32>
      %49 = vector.broadcast %47 : f32 to vector<16x16xf32>
      %50 = arith.mulf %49, %48 : vector<16x16xf32>
      %51 = arith.addf %32, %50 : vector<16x16xf32>
      %c56 = arith.constant 56 : index
      %52 = memref.load %arg2[%c56] : memref<98xf32, #tpu.memory_space<smem>>
      %53 = vector.extract_strided_slice %36 {offsets = [1, 0], sizes = [16, 16], strides = [1, 1]} : vector<22x16xf32> to vector<16x16xf32>
      %54 = vector.broadcast %52 : f32 to vector<16x16xf32>
      %55 = arith.mulf %54, %53 : vector<16x16xf32>
      %56 = arith.addf %34, %55 : vector<16x16xf32>
      %c14 = arith.constant 14 : index
      %57 = memref.load %arg2[%c14] : memref<98xf32, #tpu.memory_space<smem>>
      %58 = vector.extract_strided_slice %35 {offsets = [2, 0], sizes = [16, 16], strides = [1, 1]} : vector<22x16xf32> to vector<16x16xf32>
      %59 = vector.broadcast %57 : f32 to vector<16x16xf32>
      %60 = arith.mulf %59, %58 : vector<16x16xf32>
      %61 = arith.addf %41, %60 : vector<16x16xf32>
      %c63 = arith.constant 63 : index
      %62 = memref.load %arg2[%c63] : memref<98xf32, #tpu.memory_space<smem>>
      %63 = vector.extract_strided_slice %36 {offsets = [2, 0], sizes = [16, 16], strides = [1, 1]} : vector<22x16xf32> to vector<16x16xf32>
      %64 = vector.broadcast %62 : f32 to vector<16x16xf32>
      %65 = arith.mulf %64, %63 : vector<16x16xf32>
      %66 = arith.addf %46, %65 : vector<16x16xf32>
      %c21 = arith.constant 21 : index
      %67 = memref.load %arg2[%c21] : memref<98xf32, #tpu.memory_space<smem>>
      %68 = vector.extract_strided_slice %35 {offsets = [3, 0], sizes = [16, 16], strides = [1, 1]} : vector<22x16xf32> to vector<16x16xf32>
      %69 = vector.broadcast %67 : f32 to vector<16x16xf32>
      %70 = arith.mulf %69, %68 : vector<16x16xf32>
      %71 = arith.addf %51, %70 : vector<16x16xf32>
      %c70 = arith.constant 70 : index
      %72 = memref.load %arg2[%c70] : memref<98xf32, #tpu.memory_space<smem>>
      %73 = vector.extract_strided_slice %36 {offsets = [3, 0], sizes = [16, 16], strides = [1, 1]} : vector<22x16xf32> to vector<16x16xf32>
      %74 = vector.broadcast %72 : f32 to vector<16x16xf32>
      %75 = arith.mulf %74, %73 : vector<16x16xf32>
      %76 = arith.addf %56, %75 : vector<16x16xf32>
      %c28 = arith.constant 28 : index
      %77 = memref.load %arg2[%c28] : memref<98xf32, #tpu.memory_space<smem>>
      %78 = vector.extract_strided_slice %35 {offsets = [4, 0], sizes = [16, 16], strides = [1, 1]} : vector<22x16xf32> to vector<16x16xf32>
      %79 = vector.broadcast %77 : f32 to vector<16x16xf32>
      %80 = arith.mulf %79, %78 : vector<16x16xf32>
      %81 = arith.addf %61, %80 : vector<16x16xf32>
      %c77 = arith.constant 77 : index
      %82 = memref.load %arg2[%c77] : memref<98xf32, #tpu.memory_space<smem>>
      %83 = vector.extract_strided_slice %36 {offsets = [4, 0], sizes = [16, 16], strides = [1, 1]} : vector<22x16xf32> to vector<16x16xf32>
      %84 = vector.broadcast %82 : f32 to vector<16x16xf32>
      %85 = arith.mulf %84, %83 : vector<16x16xf32>
      %86 = arith.addf %66, %85 : vector<16x16xf32>
      %c35 = arith.constant 35 : index
      %87 = memref.load %arg2[%c35] : memref<98xf32, #tpu.memory_space<smem>>
      %88 = vector.extract_strided_slice %35 {offsets = [5, 0], sizes = [16, 16], strides = [1, 1]} : vector<22x16xf32> to vector<16x16xf32>
      %89 = vector.broadcast %87 : f32 to vector<16x16xf32>
      %90 = arith.mulf %89, %88 : vector<16x16xf32>
      %91 = arith.addf %71, %90 : vector<16x16xf32>
      %c84 = arith.constant 84 : index
      %92 = memref.load %arg2[%c84] : memref<98xf32, #tpu.memory_space<smem>>
      %93 = vector.extract_strided_slice %36 {offsets = [5, 0], sizes = [16, 16], strides = [1, 1]} : vector<22x16xf32> to vector<16x16xf32>
      %94 = vector.broadcast %92 : f32 to vector<16x16xf32>
      %95 = arith.mulf %94, %93 : vector<16x16xf32>
      %96 = arith.addf %76, %95 : vector<16x16xf32>
      %c42 = arith.constant 42 : index
      %97 = memref.load %arg2[%c42] : memref<98xf32, #tpu.memory_space<smem>>
      %98 = vector.extract_strided_slice %35 {offsets = [6, 0], sizes = [16, 16], strides = [1, 1]} : vector<22x16xf32> to vector<16x16xf32>
      %99 = vector.broadcast %97 : f32 to vector<16x16xf32>
      %100 = arith.mulf %99, %98 : vector<16x16xf32>
      %101 = arith.addf %81, %100 : vector<16x16xf32>
      %c91 = arith.constant 91 : index
      %102 = memref.load %arg2[%c91] : memref<98xf32, #tpu.memory_space<smem>>
      %103 = vector.extract_strided_slice %36 {offsets = [6, 0], sizes = [16, 16], strides = [1, 1]} : vector<22x16xf32> to vector<16x16xf32>
      %104 = vector.broadcast %102 : f32 to vector<16x16xf32>
      %105 = arith.mulf %104, %103 : vector<16x16xf32>
      %106 = arith.addf %86, %105 : vector<16x16xf32>
      %c0_39 = arith.constant 0 : index
      %c1_40 = arith.constant 1 : index
      %107 = vector.load %arg7[%c0_39, %c1_40] : memref<22x22xf32, #tpu.memory_space<vmem>>, vector<22x16xf32>
      %c0_41 = arith.constant 0 : index
      %c1_42 = arith.constant 1 : index
      %108 = vector.load %arg8[%c0_41, %c1_42] : memref<22x22xf32, #tpu.memory_space<vmem>>, vector<22x16xf32>
      %c1_43 = arith.constant 1 : index
      %109 = memref.load %arg2[%c1_43] : memref<98xf32, #tpu.memory_space<smem>>
      %110 = vector.extract_strided_slice %107 {offsets = [0, 0], sizes = [16, 16], strides = [1, 1]} : vector<22x16xf32> to vector<16x16xf32>
      %111 = vector.broadcast %109 : f32 to vector<16x16xf32>
      %112 = arith.mulf %111, %110 : vector<16x16xf32>
      %113 = arith.addf %101, %112 : vector<16x16xf32>
      %c50 = arith.constant 50 : index
      %114 = memref.load %arg2[%c50] : memref<98xf32, #tpu.memory_space<smem>>
      %115 = vector.extract_strided_slice %108 {offsets = [0, 0], sizes = [16, 16], strides = [1, 1]} : vector<22x16xf32> to vector<16x16xf32>
      %116 = vector.broadcast %114 : f32 to vector<16x16xf32>
      %117 = arith.mulf %116, %115 : vector<16x16xf32>
      %118 = arith.addf %106, %117 : vector<16x16xf32>
      %c8 = arith.constant 8 : index
      %119 = memref.load %arg2[%c8] : memref<98xf32, #tpu.memory_space<smem>>
      %120 = vector.extract_strided_slice %107 {offsets = [1, 0], sizes = [16, 16], strides = [1, 1]} : vector<22x16xf32> to vector<16x16xf32>
      %121 = vector.broadcast %119 : f32 to vector<16x16xf32>
      %122 = arith.mulf %121, %120 : vector<16x16xf32>
      %123 = arith.addf %91, %122 : vector<16x16xf32>
      %c57 = arith.constant 57 : index
      %124 = memref.load %arg2[%c57] : memref<98xf32, #tpu.memory_space<smem>>
      %125 = vector.extract_strided_slice %108 {offsets = [1, 0], sizes = [16, 16], strides = [1, 1]} : vector<22x16xf32> to vector<16x16xf32>
      %126 = vector.broadcast %124 : f32 to vector<16x16xf32>
      %127 = arith.mulf %126, %125 : vector<16x16xf32>
      %128 = arith.addf %96, %127 : vector<16x16xf32>
      %c15 = arith.constant 15 : index
      %129 = memref.load %arg2[%c15] : memref<98xf32, #tpu.memory_space<smem>>
      %130 = vector.extract_strided_slice %107 {offsets = [2, 0], sizes = [16, 16], strides = [1, 1]} : vector<22x16xf32> to vector<16x16xf32>
      %131 = vector.broadcast %129 : f32 to vector<16x16xf32>
      %132 = arith.mulf %131, %130 : vector<16x16xf32>
      %133 = arith.addf %113, %132 : vector<16x16xf32>
      %c64 = arith.constant 64 : index
      %134 = memref.load %arg2[%c64] : memref<98xf32, #tpu.memory_space<smem>>
      %135 = vector.extract_strided_slice %108 {offsets = [2, 0], sizes = [16, 16], strides = [1, 1]} : vector<22x16xf32> to vector<16x16xf32>
      %136 = vector.broadcast %134 : f32 to vector<16x16xf32>
      %137 = arith.mulf %136, %135 : vector<16x16xf32>
      %138 = arith.addf %118, %137 : vector<16x16xf32>
      %c22 = arith.constant 22 : index
      %139 = memref.load %arg2[%c22] : memref<98xf32, #tpu.memory_space<smem>>
      %140 = vector.extract_strided_slice %107 {offsets = [3, 0], sizes = [16, 16], strides = [1, 1]} : vector<22x16xf32> to vector<16x16xf32>
      %141 = vector.broadcast %139 : f32 to vector<16x16xf32>
      %142 = arith.mulf %141, %140 : vector<16x16xf32>
      %143 = arith.addf %123, %142 : vector<16x16xf32>
      %c71 = arith.constant 71 : index
      %144 = memref.load %arg2[%c71] : memref<98xf32, #tpu.memory_space<smem>>
      %145 = vector.extract_strided_slice %108 {offsets = [3, 0], sizes = [16, 16], strides = [1, 1]} : vector<22x16xf32> to vector<16x16xf32>
      %146 = vector.broadcast %144 : f32 to vector<16x16xf32>
      %147 = arith.mulf %146, %145 : vector<16x16xf32>
      %148 = arith.addf %128, %147 : vector<16x16xf32>
      %c29 = arith.constant 29 : index
      %149 = memref.load %arg2[%c29] : memref<98xf32, #tpu.memory_space<smem>>
      %150 = vector.extract_strided_slice %107 {offsets = [4, 0], sizes = [16, 16], strides = [1, 1]} : vector<22x16xf32> to vector<16x16xf32>
      %151 = vector.broadcast %149 : f32 to vector<16x16xf32>
      %152 = arith.mulf %151, %150 : vector<16x16xf32>
      %153 = arith.addf %133, %152 : vector<16x16xf32>
      %c78 = arith.constant 78 : index
      %154 = memref.load %arg2[%c78] : memref<98xf32, #tpu.memory_space<smem>>
      %155 = vector.extract_strided_slice %108 {offsets = [4, 0], sizes = [16, 16], strides = [1, 1]} : vector<22x16xf32> to vector<16x16xf32>
      %156 = vector.broadcast %154 : f32 to vector<16x16xf32>
      %157 = arith.mulf %156, %155 : vector<16x16xf32>
      %158 = arith.addf %138, %157 : vector<16x16xf32>
      %c36 = arith.constant 36 : index
      %159 = memref.load %arg2[%c36] : memref<98xf32, #tpu.memory_space<smem>>
      %160 = vector.extract_strided_slice %107 {offsets = [5, 0], sizes = [16, 16], strides = [1, 1]} : vector<22x16xf32> to vector<16x16xf32>
      %161 = vector.broadcast %159 : f32 to vector<16x16xf32>
      %162 = arith.mulf %161, %160 : vector<16x16xf32>
      %163 = arith.addf %143, %162 : vector<16x16xf32>
      %c85 = arith.constant 85 : index
      %164 = memref.load %arg2[%c85] : memref<98xf32, #tpu.memory_space<smem>>
      %165 = vector.extract_strided_slice %108 {offsets = [5, 0], sizes = [16, 16], strides = [1, 1]} : vector<22x16xf32> to vector<16x16xf32>
      %166 = vector.broadcast %164 : f32 to vector<16x16xf32>
      %167 = arith.mulf %166, %165 : vector<16x16xf32>
      %168 = arith.addf %148, %167 : vector<16x16xf32>
      %c43 = arith.constant 43 : index
      %169 = memref.load %arg2[%c43] : memref<98xf32, #tpu.memory_space<smem>>
      %170 = vector.extract_strided_slice %107 {offsets = [6, 0], sizes = [16, 16], strides = [1, 1]} : vector<22x16xf32> to vector<16x16xf32>
      %171 = vector.broadcast %169 : f32 to vector<16x16xf32>
      %172 = arith.mulf %171, %170 : vector<16x16xf32>
      %173 = arith.addf %153, %172 : vector<16x16xf32>
      %c92 = arith.constant 92 : index
      %174 = memref.load %arg2[%c92] : memref<98xf32, #tpu.memory_space<smem>>
      %175 = vector.extract_strided_slice %108 {offsets = [6, 0], sizes = [16, 16], strides = [1, 1]} : vector<22x16xf32> to vector<16x16xf32>
      %176 = vector.broadcast %174 : f32 to vector<16x16xf32>
      %177 = arith.mulf %176, %175 : vector<16x16xf32>
      %178 = arith.addf %158, %177 : vector<16x16xf32>
      %c0_44 = arith.constant 0 : index
      %c2_45 = arith.constant 2 : index
      %179 = vector.load %arg7[%c0_44, %c2_45] : memref<22x22xf32, #tpu.memory_space<vmem>>, vector<22x16xf32>
      %c0_46 = arith.constant 0 : index
      %c2_47 = arith.constant 2 : index
      %180 = vector.load %arg8[%c0_46, %c2_47] : memref<22x22xf32, #tpu.memory_space<vmem>>, vector<22x16xf32>
      %c2_48 = arith.constant 2 : index
      %181 = memref.load %arg2[%c2_48] : memref<98xf32, #tpu.memory_space<smem>>
      %182 = vector.extract_strided_slice %179 {offsets = [0, 0], sizes = [16, 16], strides = [1, 1]} : vector<22x16xf32> to vector<16x16xf32>
      %183 = vector.broadcast %181 : f32 to vector<16x16xf32>
      %184 = arith.mulf %183, %182 : vector<16x16xf32>
      %185 = arith.addf %173, %184 : vector<16x16xf32>
      %c51 = arith.constant 51 : index
      %186 = memref.load %arg2[%c51] : memref<98xf32, #tpu.memory_space<smem>>
      %187 = vector.extract_strided_slice %180 {offsets = [0, 0], sizes = [16, 16], strides = [1, 1]} : vector<22x16xf32> to vector<16x16xf32>
      %188 = vector.broadcast %186 : f32 to vector<16x16xf32>
      %189 = arith.mulf %188, %187 : vector<16x16xf32>
      %190 = arith.addf %178, %189 : vector<16x16xf32>
      %c9 = arith.constant 9 : index
      %191 = memref.load %arg2[%c9] : memref<98xf32, #tpu.memory_space<smem>>
      %192 = vector.extract_strided_slice %179 {offsets = [1, 0], sizes = [16, 16], strides = [1, 1]} : vector<22x16xf32> to vector<16x16xf32>
      %193 = vector.broadcast %191 : f32 to vector<16x16xf32>
      %194 = arith.mulf %193, %192 : vector<16x16xf32>
      %195 = arith.addf %163, %194 : vector<16x16xf32>
      %c58 = arith.constant 58 : index
      %196 = memref.load %arg2[%c58] : memref<98xf32, #tpu.memory_space<smem>>
      %197 = vector.extract_strided_slice %180 {offsets = [1, 0], sizes = [16, 16], strides = [1, 1]} : vector<22x16xf32> to vector<16x16xf32>
      %198 = vector.broadcast %196 : f32 to vector<16x16xf32>
      %199 = arith.mulf %198, %197 : vector<16x16xf32>
      %200 = arith.addf %168, %199 : vector<16x16xf32>
      %c16 = arith.constant 16 : index
      %201 = memref.load %arg2[%c16] : memref<98xf32, #tpu.memory_space<smem>>
      %202 = vector.extract_strided_slice %179 {offsets = [2, 0], sizes = [16, 16], strides = [1, 1]} : vector<22x16xf32> to vector<16x16xf32>
      %203 = vector.broadcast %201 : f32 to vector<16x16xf32>
      %204 = arith.mulf %203, %202 : vector<16x16xf32>
      %205 = arith.addf %185, %204 : vector<16x16xf32>
      %c65 = arith.constant 65 : index
      %206 = memref.load %arg2[%c65] : memref<98xf32, #tpu.memory_space<smem>>
      %207 = vector.extract_strided_slice %180 {offsets = [2, 0], sizes = [16, 16], strides = [1, 1]} : vector<22x16xf32> to vector<16x16xf32>
      %208 = vector.broadcast %206 : f32 to vector<16x16xf32>
      %209 = arith.mulf %208, %207 : vector<16x16xf32>
      %210 = arith.addf %190, %209 : vector<16x16xf32>
      %c23 = arith.constant 23 : index
      %211 = memref.load %arg2[%c23] : memref<98xf32, #tpu.memory_space<smem>>
      %212 = vector.extract_strided_slice %179 {offsets = [3, 0], sizes = [16, 16], strides = [1, 1]} : vector<22x16xf32> to vector<16x16xf32>
      %213 = vector.broadcast %211 : f32 to vector<16x16xf32>
      %214 = arith.mulf %213, %212 : vector<16x16xf32>
      %215 = arith.addf %195, %214 : vector<16x16xf32>
      %c72 = arith.constant 72 : index
      %216 = memref.load %arg2[%c72] : memref<98xf32, #tpu.memory_space<smem>>
      %217 = vector.extract_strided_slice %180 {offsets = [3, 0], sizes = [16, 16], strides = [1, 1]} : vector<22x16xf32> to vector<16x16xf32>
      %218 = vector.broadcast %216 : f32 to vector<16x16xf32>
      %219 = arith.mulf %218, %217 : vector<16x16xf32>
      %220 = arith.addf %200, %219 : vector<16x16xf32>
      %c30 = arith.constant 30 : index
      %221 = memref.load %arg2[%c30] : memref<98xf32, #tpu.memory_space<smem>>
      %222 = vector.extract_strided_slice %179 {offsets = [4, 0], sizes = [16, 16], strides = [1, 1]} : vector<22x16xf32> to vector<16x16xf32>
      %223 = vector.broadcast %221 : f32 to vector<16x16xf32>
      %224 = arith.mulf %223, %222 : vector<16x16xf32>
      %225 = arith.addf %205, %224 : vector<16x16xf32>
      %c79 = arith.constant 79 : index
      %226 = memref.load %arg2[%c79] : memref<98xf32, #tpu.memory_space<smem>>
      %227 = vector.extract_strided_slice %180 {offsets = [4, 0], sizes = [16, 16], strides = [1, 1]} : vector<22x16xf32> to vector<16x16xf32>
      %228 = vector.broadcast %226 : f32 to vector<16x16xf32>
      %229 = arith.mulf %228, %227 : vector<16x16xf32>
      %230 = arith.addf %210, %229 : vector<16x16xf32>
      %c37 = arith.constant 37 : index
      %231 = memref.load %arg2[%c37] : memref<98xf32, #tpu.memory_space<smem>>
      %232 = vector.extract_strided_slice %179 {offsets = [5, 0], sizes = [16, 16], strides = [1, 1]} : vector<22x16xf32> to vector<16x16xf32>
      %233 = vector.broadcast %231 : f32 to vector<16x16xf32>
      %234 = arith.mulf %233, %232 : vector<16x16xf32>
      %235 = arith.addf %215, %234 : vector<16x16xf32>
      %c86 = arith.constant 86 : index
      %236 = memref.load %arg2[%c86] : memref<98xf32, #tpu.memory_space<smem>>
      %237 = vector.extract_strided_slice %180 {offsets = [5, 0], sizes = [16, 16], strides = [1, 1]} : vector<22x16xf32> to vector<16x16xf32>
      %238 = vector.broadcast %236 : f32 to vector<16x16xf32>
      %239 = arith.mulf %238, %237 : vector<16x16xf32>
      %240 = arith.addf %220, %239 : vector<16x16xf32>
      %c44 = arith.constant 44 : index
      %241 = memref.load %arg2[%c44] : memref<98xf32, #tpu.memory_space<smem>>
      %242 = vector.extract_strided_slice %179 {offsets = [6, 0], sizes = [16, 16], strides = [1, 1]} : vector<22x16xf32> to vector<16x16xf32>
      %243 = vector.broadcast %241 : f32 to vector<16x16xf32>
      %244 = arith.mulf %243, %242 : vector<16x16xf32>
      %245 = arith.addf %225, %244 : vector<16x16xf32>
      %c93 = arith.constant 93 : index
      %246 = memref.load %arg2[%c93] : memref<98xf32, #tpu.memory_space<smem>>
      %247 = vector.extract_strided_slice %180 {offsets = [6, 0], sizes = [16, 16], strides = [1, 1]} : vector<22x16xf32> to vector<16x16xf32>
      %248 = vector.broadcast %246 : f32 to vector<16x16xf32>
      %249 = arith.mulf %248, %247 : vector<16x16xf32>
      %250 = arith.addf %230, %249 : vector<16x16xf32>
      %c0_49 = arith.constant 0 : index
      %c3_50 = arith.constant 3 : index
      %251 = vector.load %arg7[%c0_49, %c3_50] : memref<22x22xf32, #tpu.memory_space<vmem>>, vector<22x16xf32>
      %c0_51 = arith.constant 0 : index
      %c3_52 = arith.constant 3 : index
      %252 = vector.load %arg8[%c0_51, %c3_52] : memref<22x22xf32, #tpu.memory_space<vmem>>, vector<22x16xf32>
      %c3_53 = arith.constant 3 : index
      %253 = memref.load %arg2[%c3_53] : memref<98xf32, #tpu.memory_space<smem>>
      %254 = vector.extract_strided_slice %251 {offsets = [0, 0], sizes = [16, 16], strides = [1, 1]} : vector<22x16xf32> to vector<16x16xf32>
      %255 = vector.broadcast %253 : f32 to vector<16x16xf32>
      %256 = arith.mulf %255, %254 : vector<16x16xf32>
      %257 = arith.addf %245, %256 : vector<16x16xf32>
      %c52 = arith.constant 52 : index
      %258 = memref.load %arg2[%c52] : memref<98xf32, #tpu.memory_space<smem>>
      %259 = vector.extract_strided_slice %252 {offsets = [0, 0], sizes = [16, 16], strides = [1, 1]} : vector<22x16xf32> to vector<16x16xf32>
      %260 = vector.broadcast %258 : f32 to vector<16x16xf32>
      %261 = arith.mulf %260, %259 : vector<16x16xf32>
      %262 = arith.addf %250, %261 : vector<16x16xf32>
      %c10 = arith.constant 10 : index
      %263 = memref.load %arg2[%c10] : memref<98xf32, #tpu.memory_space<smem>>
      %264 = vector.extract_strided_slice %251 {offsets = [1, 0], sizes = [16, 16], strides = [1, 1]} : vector<22x16xf32> to vector<16x16xf32>
      %265 = vector.broadcast %263 : f32 to vector<16x16xf32>
      %266 = arith.mulf %265, %264 : vector<16x16xf32>
      %267 = arith.addf %235, %266 : vector<16x16xf32>
      %c59 = arith.constant 59 : index
      %268 = memref.load %arg2[%c59] : memref<98xf32, #tpu.memory_space<smem>>
      %269 = vector.extract_strided_slice %252 {offsets = [1, 0], sizes = [16, 16], strides = [1, 1]} : vector<22x16xf32> to vector<16x16xf32>
      %270 = vector.broadcast %268 : f32 to vector<16x16xf32>
      %271 = arith.mulf %270, %269 : vector<16x16xf32>
      %272 = arith.addf %240, %271 : vector<16x16xf32>
      %c17 = arith.constant 17 : index
      %273 = memref.load %arg2[%c17] : memref<98xf32, #tpu.memory_space<smem>>
      %274 = vector.extract_strided_slice %251 {offsets = [2, 0], sizes = [16, 16], strides = [1, 1]} : vector<22x16xf32> to vector<16x16xf32>
      %275 = vector.broadcast %273 : f32 to vector<16x16xf32>
      %276 = arith.mulf %275, %274 : vector<16x16xf32>
      %277 = arith.addf %257, %276 : vector<16x16xf32>
      %c66 = arith.constant 66 : index
      %278 = memref.load %arg2[%c66] : memref<98xf32, #tpu.memory_space<smem>>
      %279 = vector.extract_strided_slice %252 {offsets = [2, 0], sizes = [16, 16], strides = [1, 1]} : vector<22x16xf32> to vector<16x16xf32>
      %280 = vector.broadcast %278 : f32 to vector<16x16xf32>
      %281 = arith.mulf %280, %279 : vector<16x16xf32>
      %282 = arith.addf %262, %281 : vector<16x16xf32>
      %c24 = arith.constant 24 : index
      %283 = memref.load %arg2[%c24] : memref<98xf32, #tpu.memory_space<smem>>
      %284 = vector.extract_strided_slice %251 {offsets = [3, 0], sizes = [16, 16], strides = [1, 1]} : vector<22x16xf32> to vector<16x16xf32>
      %285 = vector.broadcast %283 : f32 to vector<16x16xf32>
      %286 = arith.mulf %285, %284 : vector<16x16xf32>
      %287 = arith.addf %267, %286 : vector<16x16xf32>
      %c73 = arith.constant 73 : index
      %288 = memref.load %arg2[%c73] : memref<98xf32, #tpu.memory_space<smem>>
      %289 = vector.extract_strided_slice %252 {offsets = [3, 0], sizes = [16, 16], strides = [1, 1]} : vector<22x16xf32> to vector<16x16xf32>
      %290 = vector.broadcast %288 : f32 to vector<16x16xf32>
      %291 = arith.mulf %290, %289 : vector<16x16xf32>
      %292 = arith.addf %272, %291 : vector<16x16xf32>
      %c31 = arith.constant 31 : index
      %293 = memref.load %arg2[%c31] : memref<98xf32, #tpu.memory_space<smem>>
      %294 = vector.extract_strided_slice %251 {offsets = [4, 0], sizes = [16, 16], strides = [1, 1]} : vector<22x16xf32> to vector<16x16xf32>
      %295 = vector.broadcast %293 : f32 to vector<16x16xf32>
      %296 = arith.mulf %295, %294 : vector<16x16xf32>
      %297 = arith.addf %277, %296 : vector<16x16xf32>
      %c80 = arith.constant 80 : index
      %298 = memref.load %arg2[%c80] : memref<98xf32, #tpu.memory_space<smem>>
      %299 = vector.extract_strided_slice %252 {offsets = [4, 0], sizes = [16, 16], strides = [1, 1]} : vector<22x16xf32> to vector<16x16xf32>
      %300 = vector.broadcast %298 : f32 to vector<16x16xf32>
      %301 = arith.mulf %300, %299 : vector<16x16xf32>
      %302 = arith.addf %282, %301 : vector<16x16xf32>
      %c38 = arith.constant 38 : index
      %303 = memref.load %arg2[%c38] : memref<98xf32, #tpu.memory_space<smem>>
      %304 = vector.extract_strided_slice %251 {offsets = [5, 0], sizes = [16, 16], strides = [1, 1]} : vector<22x16xf32> to vector<16x16xf32>
      %305 = vector.broadcast %303 : f32 to vector<16x16xf32>
      %306 = arith.mulf %305, %304 : vector<16x16xf32>
      %307 = arith.addf %287, %306 : vector<16x16xf32>
      %c87 = arith.constant 87 : index
      %308 = memref.load %arg2[%c87] : memref<98xf32, #tpu.memory_space<smem>>
      %309 = vector.extract_strided_slice %252 {offsets = [5, 0], sizes = [16, 16], strides = [1, 1]} : vector<22x16xf32> to vector<16x16xf32>
      %310 = vector.broadcast %308 : f32 to vector<16x16xf32>
      %311 = arith.mulf %310, %309 : vector<16x16xf32>
      %312 = arith.addf %292, %311 : vector<16x16xf32>
      %c45 = arith.constant 45 : index
      %313 = memref.load %arg2[%c45] : memref<98xf32, #tpu.memory_space<smem>>
      %314 = vector.extract_strided_slice %251 {offsets = [6, 0], sizes = [16, 16], strides = [1, 1]} : vector<22x16xf32> to vector<16x16xf32>
      %315 = vector.broadcast %313 : f32 to vector<16x16xf32>
      %316 = arith.mulf %315, %314 : vector<16x16xf32>
      %317 = arith.addf %297, %316 : vector<16x16xf32>
      %c94 = arith.constant 94 : index
      %318 = memref.load %arg2[%c94] : memref<98xf32, #tpu.memory_space<smem>>
      %319 = vector.extract_strided_slice %252 {offsets = [6, 0], sizes = [16, 16], strides = [1, 1]} : vector<22x16xf32> to vector<16x16xf32>
      %320 = vector.broadcast %318 : f32 to vector<16x16xf32>
      %321 = arith.mulf %320, %319 : vector<16x16xf32>
      %322 = arith.addf %302, %321 : vector<16x16xf32>
      %c0_54 = arith.constant 0 : index
      %c4 = arith.constant 4 : index
      %323 = vector.load %arg7[%c0_54, %c4] : memref<22x22xf32, #tpu.memory_space<vmem>>, vector<22x16xf32>
      %c0_55 = arith.constant 0 : index
      %c4_56 = arith.constant 4 : index
      %324 = vector.load %arg8[%c0_55, %c4_56] : memref<22x22xf32, #tpu.memory_space<vmem>>, vector<22x16xf32>
      %c4_57 = arith.constant 4 : index
      %325 = memref.load %arg2[%c4_57] : memref<98xf32, #tpu.memory_space<smem>>
      %326 = vector.extract_strided_slice %323 {offsets = [0, 0], sizes = [16, 16], strides = [1, 1]} : vector<22x16xf32> to vector<16x16xf32>
      %327 = vector.broadcast %325 : f32 to vector<16x16xf32>
      %328 = arith.mulf %327, %326 : vector<16x16xf32>
      %329 = arith.addf %317, %328 : vector<16x16xf32>
      %c53 = arith.constant 53 : index
      %330 = memref.load %arg2[%c53] : memref<98xf32, #tpu.memory_space<smem>>
      %331 = vector.extract_strided_slice %324 {offsets = [0, 0], sizes = [16, 16], strides = [1, 1]} : vector<22x16xf32> to vector<16x16xf32>
      %332 = vector.broadcast %330 : f32 to vector<16x16xf32>
      %333 = arith.mulf %332, %331 : vector<16x16xf32>
      %334 = arith.addf %322, %333 : vector<16x16xf32>
      %c11 = arith.constant 11 : index
      %335 = memref.load %arg2[%c11] : memref<98xf32, #tpu.memory_space<smem>>
      %336 = vector.extract_strided_slice %323 {offsets = [1, 0], sizes = [16, 16], strides = [1, 1]} : vector<22x16xf32> to vector<16x16xf32>
      %337 = vector.broadcast %335 : f32 to vector<16x16xf32>
      %338 = arith.mulf %337, %336 : vector<16x16xf32>
      %339 = arith.addf %307, %338 : vector<16x16xf32>
      %c60 = arith.constant 60 : index
      %340 = memref.load %arg2[%c60] : memref<98xf32, #tpu.memory_space<smem>>
      %341 = vector.extract_strided_slice %324 {offsets = [1, 0], sizes = [16, 16], strides = [1, 1]} : vector<22x16xf32> to vector<16x16xf32>
      %342 = vector.broadcast %340 : f32 to vector<16x16xf32>
      %343 = arith.mulf %342, %341 : vector<16x16xf32>
      %344 = arith.addf %312, %343 : vector<16x16xf32>
      %c18 = arith.constant 18 : index
      %345 = memref.load %arg2[%c18] : memref<98xf32, #tpu.memory_space<smem>>
      %346 = vector.extract_strided_slice %323 {offsets = [2, 0], sizes = [16, 16], strides = [1, 1]} : vector<22x16xf32> to vector<16x16xf32>
      %347 = vector.broadcast %345 : f32 to vector<16x16xf32>
      %348 = arith.mulf %347, %346 : vector<16x16xf32>
      %349 = arith.addf %329, %348 : vector<16x16xf32>
      %c67 = arith.constant 67 : index
      %350 = memref.load %arg2[%c67] : memref<98xf32, #tpu.memory_space<smem>>
      %351 = vector.extract_strided_slice %324 {offsets = [2, 0], sizes = [16, 16], strides = [1, 1]} : vector<22x16xf32> to vector<16x16xf32>
      %352 = vector.broadcast %350 : f32 to vector<16x16xf32>
      %353 = arith.mulf %352, %351 : vector<16x16xf32>
      %354 = arith.addf %334, %353 : vector<16x16xf32>
      %c25 = arith.constant 25 : index
      %355 = memref.load %arg2[%c25] : memref<98xf32, #tpu.memory_space<smem>>
      %356 = vector.extract_strided_slice %323 {offsets = [3, 0], sizes = [16, 16], strides = [1, 1]} : vector<22x16xf32> to vector<16x16xf32>
      %357 = vector.broadcast %355 : f32 to vector<16x16xf32>
      %358 = arith.mulf %357, %356 : vector<16x16xf32>
      %359 = arith.addf %339, %358 : vector<16x16xf32>
      %c74 = arith.constant 74 : index
      %360 = memref.load %arg2[%c74] : memref<98xf32, #tpu.memory_space<smem>>
      %361 = vector.extract_strided_slice %324 {offsets = [3, 0], sizes = [16, 16], strides = [1, 1]} : vector<22x16xf32> to vector<16x16xf32>
      %362 = vector.broadcast %360 : f32 to vector<16x16xf32>
      %363 = arith.mulf %362, %361 : vector<16x16xf32>
      %364 = arith.addf %344, %363 : vector<16x16xf32>
      %c32 = arith.constant 32 : index
      %365 = memref.load %arg2[%c32] : memref<98xf32, #tpu.memory_space<smem>>
      %366 = vector.extract_strided_slice %323 {offsets = [4, 0], sizes = [16, 16], strides = [1, 1]} : vector<22x16xf32> to vector<16x16xf32>
      %367 = vector.broadcast %365 : f32 to vector<16x16xf32>
      %368 = arith.mulf %367, %366 : vector<16x16xf32>
      %369 = arith.addf %349, %368 : vector<16x16xf32>
      %c81 = arith.constant 81 : index
      %370 = memref.load %arg2[%c81] : memref<98xf32, #tpu.memory_space<smem>>
      %371 = vector.extract_strided_slice %324 {offsets = [4, 0], sizes = [16, 16], strides = [1, 1]} : vector<22x16xf32> to vector<16x16xf32>
      %372 = vector.broadcast %370 : f32 to vector<16x16xf32>
      %373 = arith.mulf %372, %371 : vector<16x16xf32>
      %374 = arith.addf %354, %373 : vector<16x16xf32>
      %c39 = arith.constant 39 : index
      %375 = memref.load %arg2[%c39] : memref<98xf32, #tpu.memory_space<smem>>
      %376 = vector.extract_strided_slice %323 {offsets = [5, 0], sizes = [16, 16], strides = [1, 1]} : vector<22x16xf32> to vector<16x16xf32>
      %377 = vector.broadcast %375 : f32 to vector<16x16xf32>
      %378 = arith.mulf %377, %376 : vector<16x16xf32>
      %379 = arith.addf %359, %378 : vector<16x16xf32>
      %c88 = arith.constant 88 : index
      %380 = memref.load %arg2[%c88] : memref<98xf32, #tpu.memory_space<smem>>
      %381 = vector.extract_strided_slice %324 {offsets = [5, 0], sizes = [16, 16], strides = [1, 1]} : vector<22x16xf32> to vector<16x16xf32>
      %382 = vector.broadcast %380 : f32 to vector<16x16xf32>
      %383 = arith.mulf %382, %381 : vector<16x16xf32>
      %384 = arith.addf %364, %383 : vector<16x16xf32>
      %c46 = arith.constant 46 : index
      %385 = memref.load %arg2[%c46] : memref<98xf32, #tpu.memory_space<smem>>
      %386 = vector.extract_strided_slice %323 {offsets = [6, 0], sizes = [16, 16], strides = [1, 1]} : vector<22x16xf32> to vector<16x16xf32>
      %387 = vector.broadcast %385 : f32 to vector<16x16xf32>
      %388 = arith.mulf %387, %386 : vector<16x16xf32>
      %389 = arith.addf %369, %388 : vector<16x16xf32>
      %c95 = arith.constant 95 : index
      %390 = memref.load %arg2[%c95] : memref<98xf32, #tpu.memory_space<smem>>
      %391 = vector.extract_strided_slice %324 {offsets = [6, 0], sizes = [16, 16], strides = [1, 1]} : vector<22x16xf32> to vector<16x16xf32>
      %392 = vector.broadcast %390 : f32 to vector<16x16xf32>
      %393 = arith.mulf %392, %391 : vector<16x16xf32>
      %394 = arith.addf %374, %393 : vector<16x16xf32>
      %c0_58 = arith.constant 0 : index
      %c5 = arith.constant 5 : index
      %395 = vector.load %arg7[%c0_58, %c5] : memref<22x22xf32, #tpu.memory_space<vmem>>, vector<22x16xf32>
      %c0_59 = arith.constant 0 : index
      %c5_60 = arith.constant 5 : index
      %396 = vector.load %arg8[%c0_59, %c5_60] : memref<22x22xf32, #tpu.memory_space<vmem>>, vector<22x16xf32>
      %c5_61 = arith.constant 5 : index
      %397 = memref.load %arg2[%c5_61] : memref<98xf32, #tpu.memory_space<smem>>
      %398 = vector.extract_strided_slice %395 {offsets = [0, 0], sizes = [16, 16], strides = [1, 1]} : vector<22x16xf32> to vector<16x16xf32>
      %399 = vector.broadcast %397 : f32 to vector<16x16xf32>
      %400 = arith.mulf %399, %398 : vector<16x16xf32>
      %401 = arith.addf %389, %400 : vector<16x16xf32>
      %c54 = arith.constant 54 : index
      %402 = memref.load %arg2[%c54] : memref<98xf32, #tpu.memory_space<smem>>
      %403 = vector.extract_strided_slice %396 {offsets = [0, 0], sizes = [16, 16], strides = [1, 1]} : vector<22x16xf32> to vector<16x16xf32>
      %404 = vector.broadcast %402 : f32 to vector<16x16xf32>
      %405 = arith.mulf %404, %403 : vector<16x16xf32>
      %406 = arith.addf %394, %405 : vector<16x16xf32>
      %c12 = arith.constant 12 : index
      %407 = memref.load %arg2[%c12] : memref<98xf32, #tpu.memory_space<smem>>
      %408 = vector.extract_strided_slice %395 {offsets = [1, 0], sizes = [16, 16], strides = [1, 1]} : vector<22x16xf32> to vector<16x16xf32>
      %409 = vector.broadcast %407 : f32 to vector<16x16xf32>
      %410 = arith.mulf %409, %408 : vector<16x16xf32>
      %411 = arith.addf %379, %410 : vector<16x16xf32>
      %c61 = arith.constant 61 : index
      %412 = memref.load %arg2[%c61] : memref<98xf32, #tpu.memory_space<smem>>
      %413 = vector.extract_strided_slice %396 {offsets = [1, 0], sizes = [16, 16], strides = [1, 1]} : vector<22x16xf32> to vector<16x16xf32>
      %414 = vector.broadcast %412 : f32 to vector<16x16xf32>
      %415 = arith.mulf %414, %413 : vector<16x16xf32>
      %416 = arith.addf %384, %415 : vector<16x16xf32>
      %c19 = arith.constant 19 : index
      %417 = memref.load %arg2[%c19] : memref<98xf32, #tpu.memory_space<smem>>
      %418 = vector.extract_strided_slice %395 {offsets = [2, 0], sizes = [16, 16], strides = [1, 1]} : vector<22x16xf32> to vector<16x16xf32>
      %419 = vector.broadcast %417 : f32 to vector<16x16xf32>
      %420 = arith.mulf %419, %418 : vector<16x16xf32>
      %421 = arith.addf %401, %420 : vector<16x16xf32>
      %c68 = arith.constant 68 : index
      %422 = memref.load %arg2[%c68] : memref<98xf32, #tpu.memory_space<smem>>
      %423 = vector.extract_strided_slice %396 {offsets = [2, 0], sizes = [16, 16], strides = [1, 1]} : vector<22x16xf32> to vector<16x16xf32>
      %424 = vector.broadcast %422 : f32 to vector<16x16xf32>
      %425 = arith.mulf %424, %423 : vector<16x16xf32>
      %426 = arith.addf %406, %425 : vector<16x16xf32>
      %c26 = arith.constant 26 : index
      %427 = memref.load %arg2[%c26] : memref<98xf32, #tpu.memory_space<smem>>
      %428 = vector.extract_strided_slice %395 {offsets = [3, 0], sizes = [16, 16], strides = [1, 1]} : vector<22x16xf32> to vector<16x16xf32>
      %429 = vector.broadcast %427 : f32 to vector<16x16xf32>
      %430 = arith.mulf %429, %428 : vector<16x16xf32>
      %431 = arith.addf %411, %430 : vector<16x16xf32>
      %c75 = arith.constant 75 : index
      %432 = memref.load %arg2[%c75] : memref<98xf32, #tpu.memory_space<smem>>
      %433 = vector.extract_strided_slice %396 {offsets = [3, 0], sizes = [16, 16], strides = [1, 1]} : vector<22x16xf32> to vector<16x16xf32>
      %434 = vector.broadcast %432 : f32 to vector<16x16xf32>
      %435 = arith.mulf %434, %433 : vector<16x16xf32>
      %436 = arith.addf %416, %435 : vector<16x16xf32>
      %c33 = arith.constant 33 : index
      %437 = memref.load %arg2[%c33] : memref<98xf32, #tpu.memory_space<smem>>
      %438 = vector.extract_strided_slice %395 {offsets = [4, 0], sizes = [16, 16], strides = [1, 1]} : vector<22x16xf32> to vector<16x16xf32>
      %439 = vector.broadcast %437 : f32 to vector<16x16xf32>
      %440 = arith.mulf %439, %438 : vector<16x16xf32>
      %441 = arith.addf %421, %440 : vector<16x16xf32>
      %c82 = arith.constant 82 : index
      %442 = memref.load %arg2[%c82] : memref<98xf32, #tpu.memory_space<smem>>
      %443 = vector.extract_strided_slice %396 {offsets = [4, 0], sizes = [16, 16], strides = [1, 1]} : vector<22x16xf32> to vector<16x16xf32>
      %444 = vector.broadcast %442 : f32 to vector<16x16xf32>
      %445 = arith.mulf %444, %443 : vector<16x16xf32>
      %446 = arith.addf %426, %445 : vector<16x16xf32>
      %c40 = arith.constant 40 : index
      %447 = memref.load %arg2[%c40] : memref<98xf32, #tpu.memory_space<smem>>
      %448 = vector.extract_strided_slice %395 {offsets = [5, 0], sizes = [16, 16], strides = [1, 1]} : vector<22x16xf32> to vector<16x16xf32>
      %449 = vector.broadcast %447 : f32 to vector<16x16xf32>
      %450 = arith.mulf %449, %448 : vector<16x16xf32>
      %451 = arith.addf %431, %450 : vector<16x16xf32>
      %c89 = arith.constant 89 : index
      %452 = memref.load %arg2[%c89] : memref<98xf32, #tpu.memory_space<smem>>
      %453 = vector.extract_strided_slice %396 {offsets = [5, 0], sizes = [16, 16], strides = [1, 1]} : vector<22x16xf32> to vector<16x16xf32>
      %454 = vector.broadcast %452 : f32 to vector<16x16xf32>
      %455 = arith.mulf %454, %453 : vector<16x16xf32>
      %456 = arith.addf %436, %455 : vector<16x16xf32>
      %c47 = arith.constant 47 : index
      %457 = memref.load %arg2[%c47] : memref<98xf32, #tpu.memory_space<smem>>
      %458 = vector.extract_strided_slice %395 {offsets = [6, 0], sizes = [16, 16], strides = [1, 1]} : vector<22x16xf32> to vector<16x16xf32>
      %459 = vector.broadcast %457 : f32 to vector<16x16xf32>
      %460 = arith.mulf %459, %458 : vector<16x16xf32>
      %461 = arith.addf %441, %460 : vector<16x16xf32>
      %c96 = arith.constant 96 : index
      %462 = memref.load %arg2[%c96] : memref<98xf32, #tpu.memory_space<smem>>
      %463 = vector.extract_strided_slice %396 {offsets = [6, 0], sizes = [16, 16], strides = [1, 1]} : vector<22x16xf32> to vector<16x16xf32>
      %464 = vector.broadcast %462 : f32 to vector<16x16xf32>
      %465 = arith.mulf %464, %463 : vector<16x16xf32>
      %466 = arith.addf %446, %465 : vector<16x16xf32>
      %c0_62 = arith.constant 0 : index
      %c6 = arith.constant 6 : index
      %467 = vector.load %arg7[%c0_62, %c6] : memref<22x22xf32, #tpu.memory_space<vmem>>, vector<22x16xf32>
      %c0_63 = arith.constant 0 : index
      %c6_64 = arith.constant 6 : index
      %468 = vector.load %arg8[%c0_63, %c6_64] : memref<22x22xf32, #tpu.memory_space<vmem>>, vector<22x16xf32>
      %c6_65 = arith.constant 6 : index
      %469 = memref.load %arg2[%c6_65] : memref<98xf32, #tpu.memory_space<smem>>
      %470 = vector.extract_strided_slice %467 {offsets = [0, 0], sizes = [16, 16], strides = [1, 1]} : vector<22x16xf32> to vector<16x16xf32>
      %471 = vector.broadcast %469 : f32 to vector<16x16xf32>
      %472 = arith.mulf %471, %470 : vector<16x16xf32>
      %473 = arith.addf %461, %472 : vector<16x16xf32>
      %c55 = arith.constant 55 : index
      %474 = memref.load %arg2[%c55] : memref<98xf32, #tpu.memory_space<smem>>
      %475 = vector.extract_strided_slice %468 {offsets = [0, 0], sizes = [16, 16], strides = [1, 1]} : vector<22x16xf32> to vector<16x16xf32>
      %476 = vector.broadcast %474 : f32 to vector<16x16xf32>
      %477 = arith.mulf %476, %475 : vector<16x16xf32>
      %478 = arith.addf %466, %477 : vector<16x16xf32>
      %c13 = arith.constant 13 : index
      %479 = memref.load %arg2[%c13] : memref<98xf32, #tpu.memory_space<smem>>
      %480 = vector.extract_strided_slice %467 {offsets = [1, 0], sizes = [16, 16], strides = [1, 1]} : vector<22x16xf32> to vector<16x16xf32>
      %481 = vector.broadcast %479 : f32 to vector<16x16xf32>
      %482 = arith.mulf %481, %480 : vector<16x16xf32>
      %483 = arith.addf %451, %482 : vector<16x16xf32>
      %c62 = arith.constant 62 : index
      %484 = memref.load %arg2[%c62] : memref<98xf32, #tpu.memory_space<smem>>
      %485 = vector.extract_strided_slice %468 {offsets = [1, 0], sizes = [16, 16], strides = [1, 1]} : vector<22x16xf32> to vector<16x16xf32>
      %486 = vector.broadcast %484 : f32 to vector<16x16xf32>
      %487 = arith.mulf %486, %485 : vector<16x16xf32>
      %488 = arith.addf %456, %487 : vector<16x16xf32>
      %c20 = arith.constant 20 : index
      %489 = memref.load %arg2[%c20] : memref<98xf32, #tpu.memory_space<smem>>
      %490 = vector.extract_strided_slice %467 {offsets = [2, 0], sizes = [16, 16], strides = [1, 1]} : vector<22x16xf32> to vector<16x16xf32>
      %491 = vector.broadcast %489 : f32 to vector<16x16xf32>
      %492 = arith.mulf %491, %490 : vector<16x16xf32>
      %493 = arith.addf %473, %492 : vector<16x16xf32>
      %c69 = arith.constant 69 : index
      %494 = memref.load %arg2[%c69] : memref<98xf32, #tpu.memory_space<smem>>
      %495 = vector.extract_strided_slice %468 {offsets = [2, 0], sizes = [16, 16], strides = [1, 1]} : vector<22x16xf32> to vector<16x16xf32>
      %496 = vector.broadcast %494 : f32 to vector<16x16xf32>
      %497 = arith.mulf %496, %495 : vector<16x16xf32>
      %498 = arith.addf %478, %497 : vector<16x16xf32>
      %c27 = arith.constant 27 : index
      %499 = memref.load %arg2[%c27] : memref<98xf32, #tpu.memory_space<smem>>
      %500 = vector.extract_strided_slice %467 {offsets = [3, 0], sizes = [16, 16], strides = [1, 1]} : vector<22x16xf32> to vector<16x16xf32>
      %501 = vector.broadcast %499 : f32 to vector<16x16xf32>
      %502 = arith.mulf %501, %500 : vector<16x16xf32>
      %503 = arith.addf %483, %502 : vector<16x16xf32>
      %c76 = arith.constant 76 : index
      %504 = memref.load %arg2[%c76] : memref<98xf32, #tpu.memory_space<smem>>
      %505 = vector.extract_strided_slice %468 {offsets = [3, 0], sizes = [16, 16], strides = [1, 1]} : vector<22x16xf32> to vector<16x16xf32>
      %506 = vector.broadcast %504 : f32 to vector<16x16xf32>
      %507 = arith.mulf %506, %505 : vector<16x16xf32>
      %508 = arith.addf %488, %507 : vector<16x16xf32>
      %c34 = arith.constant 34 : index
      %509 = memref.load %arg2[%c34] : memref<98xf32, #tpu.memory_space<smem>>
      %510 = vector.extract_strided_slice %467 {offsets = [4, 0], sizes = [16, 16], strides = [1, 1]} : vector<22x16xf32> to vector<16x16xf32>
      %511 = vector.broadcast %509 : f32 to vector<16x16xf32>
      %512 = arith.mulf %511, %510 : vector<16x16xf32>
      %513 = arith.addf %493, %512 : vector<16x16xf32>
      %c83 = arith.constant 83 : index
      %514 = memref.load %arg2[%c83] : memref<98xf32, #tpu.memory_space<smem>>
      %515 = vector.extract_strided_slice %468 {offsets = [4, 0], sizes = [16, 16], strides = [1, 1]} : vector<22x16xf32> to vector<16x16xf32>
      %516 = vector.broadcast %514 : f32 to vector<16x16xf32>
      %517 = arith.mulf %516, %515 : vector<16x16xf32>
      %518 = arith.addf %498, %517 : vector<16x16xf32>
      %c41 = arith.constant 41 : index
      %519 = memref.load %arg2[%c41] : memref<98xf32, #tpu.memory_space<smem>>
      %520 = vector.extract_strided_slice %467 {offsets = [5, 0], sizes = [16, 16], strides = [1, 1]} : vector<22x16xf32> to vector<16x16xf32>
      %521 = vector.broadcast %519 : f32 to vector<16x16xf32>
      %522 = arith.mulf %521, %520 : vector<16x16xf32>
      %523 = arith.addf %503, %522 : vector<16x16xf32>
      %c90 = arith.constant 90 : index
      %524 = memref.load %arg2[%c90] : memref<98xf32, #tpu.memory_space<smem>>
      %525 = vector.extract_strided_slice %468 {offsets = [5, 0], sizes = [16, 16], strides = [1, 1]} : vector<22x16xf32> to vector<16x16xf32>
      %526 = vector.broadcast %524 : f32 to vector<16x16xf32>
      %527 = arith.mulf %526, %525 : vector<16x16xf32>
      %528 = arith.addf %508, %527 : vector<16x16xf32>
      %c48 = arith.constant 48 : index
      %529 = memref.load %arg2[%c48] : memref<98xf32, #tpu.memory_space<smem>>
      %530 = vector.extract_strided_slice %467 {offsets = [6, 0], sizes = [16, 16], strides = [1, 1]} : vector<22x16xf32> to vector<16x16xf32>
      %531 = vector.broadcast %529 : f32 to vector<16x16xf32>
      %532 = arith.mulf %531, %530 : vector<16x16xf32>
      %533 = arith.addf %513, %532 : vector<16x16xf32>
      %c97 = arith.constant 97 : index
      %534 = memref.load %arg2[%c97] : memref<98xf32, #tpu.memory_space<smem>>
      %535 = vector.extract_strided_slice %468 {offsets = [6, 0], sizes = [16, 16], strides = [1, 1]} : vector<22x16xf32> to vector<16x16xf32>
      %536 = vector.broadcast %534 : f32 to vector<16x16xf32>
      %537 = arith.mulf %536, %535 : vector<16x16xf32>
      %538 = arith.addf %518, %537 : vector<16x16xf32>
      %539 = arith.addf %533, %523 : vector<16x16xf32>
      %540 = arith.addf %538, %528 : vector<16x16xf32>
      %541 = arith.addf %539, %540 : vector<16x16xf32>
      %cst_66 = arith.constant 0.000000e+00 : f32
      %542 = vector.broadcast %cst_66 : f32 to vector<16x16xf32>
      %543 = arith.subf %542, %541 : vector<16x16xf32>
      %544 = math.exp %543 : vector<16x16xf32>
      %cst_67 = arith.constant 1.000000e+00 : f32
      %545 = vector.broadcast %cst_67 : f32 to vector<16x16xf32>
      %546 = arith.addf %545, %544 : vector<16x16xf32>
      %cst_68 = arith.constant 1.000000e+00 : f32
      %547 = vector.broadcast %cst_68 : f32 to vector<16x16xf32>
      %548 = arith.divf %547, %546 : vector<16x16xf32>
      %c0_69 = arith.constant 0 : index
      %c0_70 = arith.constant 0 : index
      %c0_71 = arith.constant 0 : index
      %c0_72 = arith.constant 0 : index
      %549 = vector.load %arg4[%c0_69, %c0_70, %c0_71, %c0_72] : memref<1x1x16x16xf32, #tpu.memory_space<vmem>>, vector<1x1x16x16xf32>
      %550 = vector.shape_cast %549 : vector<1x1x16x16xf32> to vector<16x16xf32>
      %551 = vector.shape_cast %548 : vector<16x16xf32> to vector<1x1x16x16xf32>
      tpu.vector_store %arg4[%c0_69, %c0_70, %c0_71, %c0_72], %551 {strides = array<i32>} : memref<1x1x16x16xf32, #tpu.memory_space<vmem>>, vector<1x1x16x16xf32>,
    } else {
    }
    return
  }
  func.func @transform_0(%arg0: i32, %arg1: i32) -> i32 {
    %c0_i32 = arith.constant 0 : i32
    %c0_i32_0 = arith.constant 0 : i32
    return %c0_i32 : i32
  }
  func.func @transform_1(%arg0: i32, %arg1: i32) -> (i32, i32, i32, i32) {
    %c0_i32 = arith.constant 0 : i32
    %c0_i32_0 = arith.constant 0 : i32
    %c0_i32_1 = arith.constant 0 : i32
    return %arg0, %arg1, %c0_i32, %c0_i32_0 : i32, i32, i32, i32
  }
  func.func @transform_2(%arg0: i32, %arg1: i32) -> (i32, i32, i32, i32) {
    %c0_i32 = arith.constant 0 : i32
    %c0_i32_0 = arith.constant 0 : i32
    %c0_i32_1 = arith.constant 0 : i32
    %c0_i32_2 = arith.constant 0 : i32
    return %arg0, %c0_i32, %c0_i32_0, %c0_i32_1 : i32, i32, i32, i32
  }
}

</mosaic_0001>

<bundles_post_ra>
// kernel: spatial_attention.1
= control target key start
LH: loop header
LB: loop body
LE: loop exit
PB: predicated region body
PF: predicated region fallthrough
CT: control target
= control target key end

     0   :  { %s4498_s0 = inlined_call_operand.vmem [shape: f32[98], index: 0, kind: input, shape index: {}]   ;;  %s4499_s1 = inlined_call_operand.hbm [shape: f32[2,4,16,16], index: 1, kind: input, shape index: {}]   ;;  %s4500_s2 = inlined_call_operand.hbm [shape: f32[2,1,16,16], index: 2, kind: output, shape index: {}]  }
   0x1   :  { %4507 = sst [smem:[#allocation90_spill]] %s4498_s0 }
   0x2   :  { %4508 = sst [smem:[#allocation91_spill]] %s4499_s1 }
   0x3   :  { %7 = vsyncpa [#allocation9], 0 }
   0x4   :  { %8 = vsyncpa [#allocation7], 0 }
   0x5   :  { %10 = vsyncpa [#allocation7 + $0x1], 0 }
   0x6   :  { %11 = vsyncpa [#allocation8], 0 }
   0x7   :  { %13 = vsyncpa [#allocation8 + $0x1], 0  ;;  %s2796_s9 = smov 0   ;;  %s2798_s10 = smov 0  }
   0x8   :  { %s2800_s11 = smov 0   ;;  %s2802_s12 = smov 0  }
   0x9   :  { %s2804_s13 = smov 0   ;;  %s2806_s14 = smov 0  }
   0xa LB: > { %s2410_s15 = sadd.s32 4294967295, %s2764_s14   ;;  %s2411_s16 = sadd.s32 4294967294, %s2764_s14   ;;  %s2764_s14 = sphi %s2806_s14, %s19_s14   ;;  %s2760_s13 = sphi %s2804_s13, %s4685_s13   ;;  %s2756_s12 = sphi %s2802_s12, %s4684_s12   ;;  %s2752_s11 = sphi %s2800_s11, %s4683_s11   ;;  %s2748_s10 = sphi %s2798_s10, %s4682_s10   ;;  %s2744_s9 = sphi %s2796_s9, %s4681_s9  }
   0xb   : > { %s61_s17 = sadd.s32 1, %s2752_s11  ;;  %p68_p0 = scmp.ne.s32.totalorder %s2752_s11, %s2748_s10 }
   0xc   : > { %p69_p1 = scmp.eq.s32.totalorder %s2764_s14, 0  ;;  %p74_p2 = scmp.ne.s32.totalorder %s2748_s10, %s2744_s9 }
   0xd   : > { %p2834_p3 = scmp.eq.s32.totalorder %s2410_s15, 0  ;;  %p98_p4 = scmp.eq.s32.totalorder %s2410_s15, 1 }
   0xe   : > { %p2838_p5 = por %p69_p1, %p68_p0  ;;  %p104_p6 = scmp.eq.s32.totalorder %s2411_s16, 1 }
   0xf   : > { %p2844_p7 = por %p2834_p3, %p74_p2  ;;  %p2848_p8 = por %p98_p4, %p68_p0 }
  0x10   : > { %p2852_p9 = por %p104_p6, %p74_p2  ;;  %p2412_p10 = scmp.ge.s32.totalorder %s2764_s14, 1 }
  0x11   : > { %s4512_s21 = scalar_select %p2848_p8, 1, 0 }
  0x12   : > { %s4513_s22 = scalar_select %p2852_p9, 1, 0 }
  0x13   : > { %p111_p11 = scmp.lt.s32.totalorder %s2764_s14, 3  ;;  %s4514_s0 = sld [smem:[#allocation90_spill]] }
  0x14   : > { %p2553_p0 = scmp.lt.s32.totalorder %s2764_s14, 2  ;;  %s31_s29 = sadd.s32 1, %s2760_s13 }
  0x15   : > { %p2861_p12 = pnand %p2412_p10, %p111_p11  ;;  %p2882_p6 = scmp.ge.s32.totalorder %s31_s29, 2 }
  0x16   : > { %p2871_p2 = pnand %p2553_p0, %p2838_p5  ;;  %s135_s3 = sand.u32 1, %s2752_s11  }
  0x17   : > { %p2540_p1 = pneg %p2861_p12 }
  0x19   : > { %s124_s25 = sshll.u32 %s4514_s0, 4  ;;  %p2877_p4 = pnand %p2540_p1, %p2834_p3  ;;  %s125_s25 = int_to_ptr.vmem [resolvable:$true] %s124_s25 }
  0x1a   : > { %s2637_s4 = scalar_lea.vmem %s125_s25, 16  ;;  %p2645_p13 = scmp.lt.s32.totalorder %s125_s25, %s125_s25 }
  0x1b   : > { %p2638_p10 = scmp.ne.s32.totalorder %s125_s25, %s2637_s4  ;;  %p2639_p11 = pneg %p2877_p4 }
  0x1c   : > { %p2646_p9 = scmp.lt.s32.totalorder %s2637_s4, %s2637_s4 }
  0x1d   : > { %p2640_p5 = pnand %p2639_p11, %p2638_p10 }
  0x1e   : > { %p2647_p8 = por %p2646_p9, %p2645_p13 }
  0x1f   : > { %p2641_p0 = pneg %p2640_p5 }
  0x21   : > { %p2648_p1 = pnand %p2647_p8, %p2641_p0 }
  0x23   : > { %2651 = shalt.err (!%p2648_p1)
}
  0x24   : > { %s2766_s5 = smov [#allocation6]   ;;  %s4687_s29 = smov (%p2882_p6, %s31_s29), 0 }
  0x25   : > { %2543 = dma.vmem_to_smem (!%p2877_p4), %s125_s25, 16, %s2766_s5, [#allocation9]  }
  0x26   : > { %s2415_s6 = sshll.u32 %s135_s3, 6  ;;  %s56_s7 = ssub.s32 %s2760_s13, %s4687_s29 }
  0x27   : > { %p59_p10 = scmp.eq.s32.totalorder %s56_s7, 0  ;;  %s2530_s8 = sshll.u32 %s2760_s13, 10 }
  0x28   : > { %s4519_s1 = sld [smem:[#allocation91_spill]]  ;;  %s139_s23 = scalar_lea.vmem [#allocation10], %s2415_s6 }
  0x29   : > { %s149_s24 = sshll.u32 %s139_s23, 4  ;;  %s136_s4 = scalar_lea.sflag [#allocation7], %s135_s3  ;;  %s150_s24 = int_to_ptr.vmem [resolvable:$true] %s149_s24 }
  0x2a   : > { %s2904_s28 = scalar_select %p59_p10, %s2752_s11, %s61_s17  }
  0x2b   : > { %p2654_p8 = pneg %p2871_p2  ;;  %s2665_s25 = scalar_lea.vmem %s150_s24, 1024 }
  0x2c   : > { %p2666_p9 = scmp.ne.s32.totalorder %s150_s24, %s2665_s25  ;;  %s2767_s30 = smov [#allocation10]  }
  0x2d   : > { %s2670_s5 = sshll.u32 %s2767_s30, 4  ;;  %s2671_s5 = int_to_ptr.vmem [resolvable:$false] %s2670_s5 }
  0x2e   : > { %s148_s19 = scalar_lea.hbm %s4519_s1, %s2530_s8  ;;  %p2668_p13 = pnand %p2666_p9, %p2654_p8 }
  0x2f   : > { %s2672_s7 = scalar_lea.vmem %s2671_s5, 2048  ;;  %p2673_p6 = scmp.lt.s32.totalorder %s150_s24, %s2671_s5 }
  0x30   : > { %p2669_p4 = pneg %p2668_p13  ;;  %p2674_p11 = scmp.lt.s32.totalorder %s2672_s7, %s2665_s25 }
  0x32   : > { %p2675_p5 = por %p2674_p11, %p2673_p6 }
  0x34   : > { %p2676_p0 = pnand %p2675_p5, %p2669_p4 }
  0x36   : > { %2679 = shalt.err (!%p2676_p0)
}
  0x37   : > { %s2768_s6 = smov 128   ;;  %s2769_s17 = smov 8  }
  0x38   : > { %2547 = dma.hbm_to_vmem [thread:$0]  (!%p2871_p2), %s148_s19, 1024, %s150_s24, %s136_s4, %s2768_s6, %s2768_s6, %s2769_s17  }
  0x39   : > { %161 = sbr.rel (%p2861_p12) target bundleno = 786 (0x312), region = 28 }
  0x3e   : > { %2731 = dma.done.wait (%p2834_p3), [#allocation9], 16  }
  0x3f   : > { %2733 = vsyncadd (%p2834_p3), [#allocation9], 4294967280  ;;  %s2917_s3 = sand.u32 1, %s2748_s10  }
  0x40   : > { %s2420_s8 = sshll.u32 %s2917_s3, 6  ;;  %s168_s15 = scalar_lea.sflag [#allocation7], %s2917_s3 }
  0x41   : > { %s171_s16 = scalar_lea.vmem [#allocation10], %s2420_s8 }
  0x42   : > { %2735 = dma.done.wait (%p2844_p7), %s168_s15, 1024  }
  0x43   : > { %2737 = vsyncadd (%p2844_p7), %s168_s15, 4294966272 }
  0x44   : > { %176 = sfence }
  0x45   : > { %v194_v0 = vld [vmem:[%s171_s16] sm:$0xff]  ;;  %v2422_v1 = vld [vmem:[%s171_s16 + $0x10] sm:$0xff]  ;;  %vm246_vm0 = vcmask 179200   ;;  %v195_v5 = vld [vmem:[%s171_s16 + $0x8] sm:$0xff]  ;;  %v2770_v11 = vmov 0.0   ;;  %vm221_vm1 = vcmask 130048  }
  0x46   : > { %v2424_v2 = vld [vmem:[%s171_s16 + $0x20] sm:$0xff]  ;;  %v207_v3 = vmax.f32 %v194_v0, %v2422_v1  ;;  %v205_v4 = vadd.f32 %v2422_v1, %v194_v0  ;;  %v2423_v6 = vld [vmem:[%s171_s16 + $0x18] sm:$0xff]  ;;  %v2426_v7 = vld [vmem:[%s171_s16 + $0x30] sm:$0xff]  ;;  %251 = vst.msk [vmem:[#allocation5] sm:$0xff] %vm246_vm0, %v2770_v11  ;;  %vm249_vm2 = vcmask 177152   ;;  %s2771_s18 = smov 3  }
  0x47   : > { %v2425_v8 = vld [vmem:[%s171_s16 + $0x28] sm:$0xff]  ;;  %v208_v9 = vmax.f32 %v195_v5, %v2423_v6  ;;  %v206_v10 = vadd.f32 %v2423_v6, %v195_v5  ;;  %252 = vst.msk [vmem:[#allocation5 + $0x8] sm:$0xff] %vm246_vm0, %v2770_v11  ;;  %247 = vst.msk [vmem:[#allocation4] sm:$0xff] %vm246_vm0, %v2770_v11  ;;  %v2427_v14 = vld [vmem:[%s171_s16 + $0x38] sm:$0xff]  ;;  %vm264_vm3 = vcmask 154648   ;;  %s2441_s20 = sld [smem:[#allocation6 + $0x1]] }
  0x48   : > { %248 = vst.msk [vmem:[#allocation4 + $0x8] sm:$0xff] %vm246_vm0, %v2770_v11  ;;  %v211_v12 = vmax.f32 %v207_v3, %v2424_v2  ;;  %v209_v13 = vadd.f32 %v2424_v2, %v205_v4  ;;  %s2442_s26 = sld [smem:[#allocation6 + $0x32]]  ;;  %s2772_s19 = smov 127   ;;  %vm321_vm4 = vcmask 1045504   ;;  %vm394_vm5 = vcmask 1043456  }
  0x49   : > { %v212_v15 = vmax.f32 %v208_v9, %v2425_v8  ;;  %v210_v16 = vadd.f32 %v2425_v8, %v206_v10  ;;  %253 = vst.msk [vmem:[#allocation5 + $0x10] sm:$0x3f] %vm249_vm2, %v2770_v11  ;;  %250 = vst.msk [vmem:[#allocation4 + $0x10] sm:$0x3f] %vm249_vm2, %v2770_v11  ;;  %s2443_s27 = sld [smem:[#allocation6 + $0x8]]  ;;  %s2773_s30 = smov 126  }
  0x4a   : > { %v215_v17 = vmax.f32 %v211_v12, %v2426_v7  ;;  %v213_v18 = vadd.f32 %v2426_v7, %v209_v13  ;;  %s2444_s23 = sld [smem:[#allocation6 + $0x39]]  ;;  %vm467_vm6 = vcmask 1041408   ;;  %vm2261_vm7 = vcmask 1046528   ;;  %p4678_p7 = scmp.ne.s32.totalorder %s4512_s21, 0 }
  0x4b   : > { %v216_v19 = vmax.f32 %v212_v15, %v2427_v14  ;;  %v214_v20 = vadd.f32 %v2427_v14, %v210_v16  ;;  %s2455_s24 = sld [smem:[#allocation6 + $0x2]] }
  0x4c   : > { %224 = vst.msk [vmem:[#allocation3] sm:$0xff] %vm221_vm1, %v215_v17  ;;  %222 = vst.msk [vmem:[#allocation2] sm:$0xff] %vm221_vm1, %v213_v18  ;;  %s2456_s4 = sld [smem:[#allocation6 + $0x33]] }
  0x4d   : > { %225 = vst.msk [vmem:[#allocation3 + $0x8] sm:$0xff] %vm221_vm1, %v216_v19  ;;  %223 = vst.msk [vmem:[#allocation2 + $0x8] sm:$0xff] %vm221_vm1, %v214_v20  ;;  %v495_v29 = vstv %s2441_s20  ;;  %s2457_s25 = sld [smem:[#allocation6 + $0x9]] }
  0x4e   : > { %v509_v32 = vstv %s2442_s26  ;;  %s2458_s5 = sld [smem:[#allocation6 + $0x3a]] }
  0x4f   : > { %v523_v38 = vstv %s2443_s27  ;;  %s2447_s7 = sld [smem:[#allocation6 + $0x16]] }
  0x50   : > { %v543_v44 = vstv %s2444_s23  ;;  %s2448_s6 = sld [smem:[#allocation6 + $0x47]] }
  0x51   : > { %v789_v47 = vstv %s2455_s24  ;;  %s2451_s17 = sld [smem:[#allocation6 + $0x24]] }
  0x52   : > { %v803_v51 = vstv %s2456_s4  ;;  %s2452_s8 = sld [smem:[#allocation6 + $0x55]] }
  0x53   : > { %v267_v21 = vld [vmem:[#allocation3] sm:$0xff]  ;;  %v254_v22 = vld [vmem:[#allocation2] sm:$0xff]  ;;  %v817_v54 = vstv %s2457_s25  ;;  %s2461_s15 = sld [smem:[#allocation6 + $0x17]] }
  0x54   : > { %271 = vrot.lane.b32.xlu1 %v267_v21, %s2771_s18  ;;  %258 = vrot.lane.b32.xlu0 %v254_v22, %s2771_s18  ;;  %v268_v23 = vld [vmem:[#allocation3 + $0x8] sm:$0xff]  ;;  %v255_v24 = vld [vmem:[#allocation2 + $0x8] sm:$0xff]  ;;  %v837_v59 = vstv %s2458_s5  ;;  %s2465_s16 = sld [smem:[#allocation6 + $0x25]] }
  0x55   : > { %v2975_v60 = vstv %s2447_s7  ;;  %s2445_s20 = sld [smem:[#allocation6 + $0xf]] }
  0x56   : > { %v2983_v0 = vstv %s2448_s6  ;;  %s2466_s26 = sld [smem:[#allocation6 + $0x56]] }
  0x57   : > { %v2987_v1 = vstv %s2451_s17  ;;  %s2446_s27 = sld [smem:[#allocation6 + $0x40]] }
  0x58   : > { %273 = vrot.lane.b32.xlu1 %v268_v23, %s2771_s18  ;;  %260 = vrot.lane.b32.xlu0 %v255_v24, %s2771_s18  ;;  %s2462_s18 = sld [smem:[#allocation6 + $0x48]]  ;;  %v2999_v6 = vstv %s2452_s8 }
  0x59   : > { %v3005_v7 = vstv %s2461_s15  ;;  %s2449_s23 = sld [smem:[#allocation6 + $0x1d]] }
  0x5a   : > { %v3025_v13 = vstv %s2465_s16  ;;  %s2450_s24 = sld [smem:[#allocation6 + $0x4e]] }
  0x5b   : > { %v563_v15 = vstv %s2445_s20  ;;  %s2453_s4 = sld [smem:[#allocation6 + $0x2b]]  ;;  %s2774_s20 = smov 125  }
  0x5c   : > { %v3029_v16 = vstv %s2466_s26  ;;  %s2454_s25 = sld [smem:[#allocation6 + $0x5c]] }
  0x5d   : > { %v584_v21 = vstv %s2446_s27  ;;  %s2459_s5 = sld [smem:[#allocation6 + $0x10]] }
  0x5e   : > { %v3017_v12 = vstv %s2462_s18  ;;  %s2460_s7 = sld [smem:[#allocation6 + $0x41]] }
  0x5f   : > { %s2463_s6 = sld [smem:[#allocation6 + $0x1e]] }
  0x60   : > { %s2464_s17 = sld [smem:[#allocation6 + $0x4f]] }
  0x61   : > { %s2468_s8 = sld [smem:[#allocation6 + $0x5d]] }
  0x62   : > { %s3224_s15 = sld [smem:[#allocation6 + $0x3]] }
  0x63   : > { %s3239_s16 = sld [smem:[#allocation6 + $0x34]] }
  0x64   : > { %s2471_s18 = sld [smem:[#allocation6 + $0xa]] }
  0x65   : > { %s2473_s26 = sld [smem:[#allocation6 + $0x11]] }
  0x66   : > { %s2472_s27 = sld [smem:[#allocation6 + $0x3b]] }
  0x67   : > { %s3619_s0 = sld [smem:[#allocation6 + $0x13]] }
  0x68   : > { %s3622_s1 = sld [smem:[#allocation6 + $0x36]] }
  0xc6   : > { %v272_v25 = vpop.permute.xlu1 %271  ;;  %v259_v26 = vpop.permute.xlu0 %258 }
  0xc7   : > { %277 = vst.msk [vmem:[#allocation5 + $0x3] sm:$0xff] %vm264_vm3, %v272_v25  ;;  %265 = vst.msk [vmem:[#allocation4 + $0x3] sm:$0xff] %vm264_vm3, %v259_v26 }
  0xca   : > { %v274_v27 = vpop.permute.xlu1 %273  ;;  %v261_v28 = vpop.permute.xlu0 %260 }
  0xcb   : > { %278 = vst.msk [vmem:[#allocation5 + $0xb] sm:$0xff] %vm264_vm3, %v274_v27  ;;  %266 = vst.msk [vmem:[#allocation4 + $0xb] sm:$0xff] %vm264_vm3, %v261_v28 }
  0xce   : > { %v2929_v30 = vld [vmem:[#allocation5] sm:$0xff]  ;;  %v2931_v31 = vld [vmem:[#allocation4] sm:$0xff] }
  0xcf   : > { %v496_v33 = vmul.f32 %v495_v29, %v2931_v31  ;;  %v510_v34 = vmul.f32 %v509_v32, %v2929_v30  ;;  %v524_v39 = vmul.f32 %v523_v38, %v2931_v31  ;;  %v544_v46 = vmul.f32 %v543_v44, %v2929_v30 }
  0xd0   : > { %v790_v49 = vmul.f32 %v789_v47, %v2931_v31  ;;  %v804_v52 = vmul.f32 %v803_v51, %v2929_v30  ;;  %v818_v55 = vmul.f32 %v817_v54, %v2931_v31  ;;  %v838_v62 = vmul.f32 %v837_v59, %v2929_v30 }
  0xd1   : > { %500 = vrot.lane.b32.xlu0 %v496_v33, %s2772_s19  ;;  %v564_v23 = vmul.f32 %v563_v15, %v2931_v31  ;;  %v585_v28 = vmul.f32 %v584_v21, %v2929_v30 }
  0xd2   : > { %v2936_v35 = vld [vmem:[#allocation4 + $0x8] sm:$0xff]  ;;  %v2939_v37 = vld [vmem:[#allocation5 + $0x8] sm:$0xff]  ;;  %v2945_v41 = vld [vmem:[#allocation4 + $0x10] sm:$0x3f] }
  0xd3   : > { %v497_v36 = vmul.f32 %v495_v29, %v2936_v35  ;;  %v511_v40 = vmul.f32 %v509_v32, %v2939_v37  ;;  %v526_v42 = vmul.f32 %v523_v38, %v2945_v41  ;;  %v525_v43 = vmul.f32 %v523_v38, %v2936_v35  ;;  %v2957_v48 = vld [vmem:[#allocation5 + $0x10] sm:$0x3f] }
  0xd4   : > { %v545_v45 = vmul.f32 %v543_v44, %v2939_v37  ;;  %v546_v50 = vmul.f32 %v543_v44, %v2957_v48  ;;  %v791_v53 = vmul.f32 %v789_v47, %v2936_v35  ;;  %v805_v56 = vmul.f32 %v803_v51, %v2939_v37 }
  0xd5   : > { %514 = vrot.lane.b32.xlu0 %v510_v34, %s2772_s19  ;;  %502 = vrot.lane.b32.xlu1 %v497_v36, %s2772_s19  ;;  %v820_v57 = vmul.f32 %v817_v54, %v2945_v41  ;;  %v819_v58 = vmul.f32 %v817_v54, %v2936_v35  ;;  %v839_v61 = vmul.f32 %v837_v59, %v2939_v37  ;;  %v570_v34 = vrot.slane %v564_v23, 2 }
  0xd6   : > { %v2981_v63 = vmul.f32 %v2975_v60, %v2945_v41  ;;  %v840_v3 = vmul.f32 %v837_v59, %v2957_v48  ;;  %v2993_v4 = vmul.f32 %v2987_v1, %v2945_v41  ;;  %v2997_v5 = vmul.f32 %v2983_v0, %v2957_v48 }
  0xd7   : > { %v3011_v10 = vmul.f32 %v3005_v7, %v2945_v41  ;;  %v3015_v11 = vmul.f32 %v2999_v6, %v2957_v48  ;;  %v994_v14 = vmul.f32 %v3025_v13, %v2945_v41  ;;  %v3035_v19 = vmul.f32 %v3017_v12, %v2957_v48 }
  0xd8   : > { %v615_v2 = vrot.slane %v2981_v63, 2  ;;  %v707_v8 = vrot.slane %v2993_v4, 4  ;;  %v640_v9 = vrot.slane %v2997_v5, 2  ;;  %v565_v20 = vmul.f32 %v563_v15, %v2936_v35 }
  0xd9   : > { %530 = vrot.lane.b32.xlu0 %v524_v39, %s2772_s19  ;;  %516 = vrot.lane.b32.xlu1 %v511_v40, %s2772_s19  ;;  %v909_v17 = vrot.slane %v3011_v10, 2  ;;  %v732_v18 = vrot.slane %v3015_v11, 4  ;;  %v3040_v22 = vmul.f32 %v3025_v13, %v2936_v35  ;;  %v1019_v24 = vmul.f32 %v3029_v16, %v2957_v48 }
  0xda   : > { %v1001_v25 = vrot.slane %v994_v14, 4  ;;  %v934_v26 = vrot.slane %v3035_v19, 2  ;;  %v571_v27 = vrot.slane %v565_v20, 2  ;;  %v586_v29 = vmul.f32 %v584_v21, %v2939_v37 }
  0xdb   : > { %v566_v32 = vmul.f32 %v563_v15, %v2945_v41  ;;  %v999_v33 = vrot.slane %v3040_v22, 4  ;;  %v1026_v36 = vrot.slane %v1019_v24, 4  ;;  %v3062_v38 = vmul.f32 %v3029_v16, %v2939_v37 }
  0xdc   : > { %v572_v39 = vsel %vm321_vm4, %v570_v34, %v571_v27  ;;  %v591_v40 = vrot.slane %v585_v28, 2  ;;  %v592_v44 = vrot.slane %v586_v29, 2  ;;  %v632_v51 = vmul.f32 %v2983_v0, %v2939_v37 }
  0xdd   : > { %534 = vrot.lane.b32.xlu0 %v526_v42, %s2772_s19  ;;  %532 = vrot.lane.b32.xlu1 %v525_v43, %s2772_s19  ;;  %v607_v42 = vmul.f32 %v2975_v60, %v2936_v35  ;;  %v587_v43 = vmul.f32 %v584_v21, %v2957_v48  ;;  %v3072_v47 = vsel %vm394_vm5, %v999_v33, %v1001_v25  ;;  %v676_v59 = vstv %s2450_s24  ;;  %s2476_s24 = sld [smem:[#allocation6 + $0x49]] }
  0xde   : > { %v678_v24 = vmul.f32 %v676_v59, %v2939_v37  ;;  %v699_v28 = vmul.f32 %v2987_v1, %v2936_v35  ;;  %v698_v34 = vmul.f32 %v2987_v1, %v2931_v31 }
  0xdf   : > { %v613_v54 = vrot.slane %v607_v42, 2 }
  0xe0   : > { %v705_v42 = vrot.slane %v699_v28, 4 }
  0xe1   : > { %552 = vrot.lane.b32.xlu0 %v545_v45, %s2772_s19  ;;  %550 = vrot.lane.b32.xlu1 %v544_v46, %s2772_s19  ;;  %v573_v45 = vrot.slane %v566_v32, 2  ;;  %v1024_v46 = vrot.slane %v3062_v38, 4  ;;  %v616_v15 = vsel %vm321_vm4, %v613_v54, %v615_v2  ;;  %v679_v32 = vmul.f32 %v676_v59, %v2957_v48 }
  0xe5   : > { %794 = vrot.lane.b32.xlu0 %v790_v49, %s2773_s30  ;;  %554 = vrot.lane.b32.xlu1 %v546_v50, %s2772_s19  ;;  %v606_v49 = vmul.f32 %v2975_v60, %v2931_v31  ;;  %v3081_v50 = vsel %vm394_vm5, %v1024_v46, %v1026_v36 }
  0xe9   : > { %808 = vrot.lane.b32.xlu0 %v804_v52, %s2773_s30  ;;  %796 = vrot.lane.b32.xlu1 %v791_v53, %s2773_s30  ;;  %v593_v52 = vsel %vm321_vm4, %v591_v40, %v592_v44  ;;  %v574_v53 = vsel %vm321_vm4, %v571_v27, %v573_v45  ;;  %v747_v45 = vstv %s2453_s4  ;;  %s2477_s4 = sld [smem:[#allocation6 + $0x1f]] }
  0xed   : > { %824 = vrot.lane.b32.xlu0 %v818_v55, %s2773_s30  ;;  %810 = vrot.lane.b32.xlu1 %v805_v56, %s2773_s30  ;;  %v594_v55 = vrot.slane %v587_v43, 2  ;;  %v612_v56 = vrot.slane %v606_v49, 2  ;;  %v686_v43 = vrot.slane %v679_v32, 4 }
  0xef   : > { %v614_v60 = vsel %vm321_vm4, %v612_v56, %v613_v54  ;;  %v748_v54 = vmul.f32 %v747_v45, %v2931_v31 }
  0xf1   : > { %828 = vrot.lane.b32.xlu0 %v820_v57, %s2773_s30  ;;  %826 = vrot.lane.b32.xlu1 %v819_v58, %s2773_s30  ;;  %v655_v57 = vstv %s2449_s23  ;;  %v631_v58 = vmul.f32 %v2983_v0, %v2929_v30  ;;  %v677_v0 = vmul.f32 %v676_v59, %v2929_v30  ;;  %v754_v11 = vrot.slane %v748_v54, 6  ;;  %s2474_s23 = sld [smem:[#allocation6 + $0x42]] }
  0xf2   : > { %v656_v14 = vmul.f32 %v655_v57, %v2931_v31 }
  0xf3   : > { %v637_v20 = vrot.slane %v631_v58, 2 }
  0xf4   : > { %v662_v27 = vrot.slane %v656_v14, 4 }
  0xf5   : > { %846 = vrot.lane.b32.xlu0 %v839_v61, %s2773_s30  ;;  %844 = vrot.lane.b32.xlu1 %v838_v62, %s2773_s30  ;;  %v595_v61 = vsel %vm321_vm4, %v592_v44, %v594_v55  ;;  %v638_v62 = vrot.slane %v632_v51, 2  ;;  %v704_v44 = vrot.slane %v698_v34, 4  ;;  %v749_v51 = vmul.f32 %v747_v45, %v2936_v35 }
  0xf6   : > { %v768_v55 = vstv %s2454_s25  ;;  %s2478_s25 = sld [smem:[#allocation6 + $0x50]] }
  0xf7   : > { %v641_v21 = vsel %vm321_vm4, %v638_v62, %v640_v9  ;;  %v639_v63 = vsel %vm321_vm4, %v637_v20, %v638_v62  ;;  %v706_v1 = vsel %vm394_vm5, %v704_v44, %v705_v42  ;;  %v755_v58 = vrot.slane %v749_v51, 6 }
  0xf8   : > { %v857_v62 = vstv %s2459_s5  ;;  %s2479_s5 = sld [smem:[#allocation6 + $0x26]] }
  0xf9   : > { %621 = vrot.lane.b32.xlu0 %v615_v2, %s2772_s19  ;;  %848 = vrot.lane.b32.xlu1 %v840_v3, %s2773_s30  ;;  %v657_v3 = vmul.f32 %v655_v57, %v2936_v35  ;;  %v683_v2 = vrot.slane %v677_v0, 4  ;;  %v859_v4 = vmul.f32 %v857_v62, %v2936_v35  ;;  %v860_v28 = vmul.f32 %v857_v62, %v2945_v41 }
  0xfb   : > { %v663_v23 = vrot.slane %v657_v3, 4  ;;  %v878_v3 = vstv %s2460_s7  ;;  %s2480_s7 = sld [smem:[#allocation6 + $0x57]] }
  0xfd   : > { %713 = vrot.lane.b32.xlu0 %v707_v8, %s2772_s19  ;;  %646 = vrot.lane.b32.xlu1 %v640_v9, %s2772_s19  ;;  %v664_v5 = vsel %vm394_vm5, %v662_v27, %v663_v23  ;;  %v684_v9 = vrot.slane %v678_v24, 4 }
 0x101   : > { %915 = vrot.lane.b32.xlu0 %v909_v17, %s2773_s30  ;;  %738 = vrot.lane.b32.xlu1 %v732_v18, %s2772_s19 }
 0x105   : > { %1007 = vrot.lane.b32.xlu0 %v1001_v25, %s2773_s30  ;;  %940 = vrot.lane.b32.xlu1 %v934_v26, %s2773_s30  ;;  %v658_v25 = vmul.f32 %v655_v57, %v2945_v41  ;;  %v708_v57 = vsel %vm394_vm5, %v705_v42, %v707_v8  ;;  %v771_v8 = vmul.f32 %v768_v55, %v2957_v48 }
 0x106   : > { %v900_v42 = vmul.f32 %v3005_v7, %v2931_v31 }
 0x107   : > { %v665_v29 = vrot.slane %v658_v25, 4  ;;  %v778_v24 = vrot.slane %v771_v8, 6  ;;  %v879_v25 = vmul.f32 %v878_v3, %v2929_v30 }
 0x109   : > { %575 = vrot.lane.b32.xlu0 %v572_v39, %s2772_s19  ;;  %1032 = vrot.lane.b32.xlu1 %v1026_v36, %s2773_s30  ;;  %v724_v36 = vmul.f32 %v2999_v6, %v2939_v37  ;;  %v685_v39 = vsel %vm394_vm5, %v683_v2, %v684_v9  ;;  %v666_v40 = vsel %vm394_vm5, %v663_v23, %v665_v29  ;;  %v865_v23 = vrot.slane %v859_v4, 2 }
 0x10a   : > { %v880_v2 = vmul.f32 %v878_v3, %v2939_v37  ;;  %v885_v32 = vrot.slane %v879_v25, 2 }
 0x10b   : > { %v730_v49 = vrot.slane %v724_v36, 4  ;;  %v867_v36 = vrot.slane %v860_v28, 2 }
 0x10c   : > { %v886_v34 = vrot.slane %v880_v2, 2 }
 0x10d   : > { %596 = vrot.lane.b32.xlu0 %v593_v52, %s2772_s19  ;;  %577 = vrot.lane.b32.xlu1 %v574_v53, %s2772_s19  ;;  %v687_v52 = vsel %vm394_vm5, %v684_v9, %v686_v43  ;;  %v723_v53 = vmul.f32 %v2999_v6, %v2929_v30  ;;  %v733_v56 = vsel %vm394_vm5, %v730_v49, %v732_v18 }
 0x10e   : > { %v769_v6 = vmul.f32 %v768_v55, %v2929_v30  ;;  %v756_v18 = vsel %vm467_vm6, %v754_v11, %v755_v58  ;;  %v926_v43 = vmul.f32 %v3017_v12, %v2939_v37  ;;  %v887_v44 = vsel %vm321_vm4, %v885_v32, %v886_v34 }
 0x10f   : > { %v729_v59 = vrot.slane %v723_v53, 4 }
 0x110   : > { %v932_v53 = vrot.slane %v926_v43, 2 }
 0x111   : > { %617 = vrot.lane.b32.xlu0 %v614_v60, %s2772_s19  ;;  %598 = vrot.lane.b32.xlu1 %v595_v61, %s2772_s19  ;;  %v770_v60 = vmul.f32 %v768_v55, %v2939_v37  ;;  %v750_v61 = vmul.f32 %v747_v45, %v2945_v41  ;;  %v731_v14 = vsel %vm394_vm5, %v729_v59, %v730_v49 }
 0x112   : > { %v868_v45 = vsel %vm321_vm4, %v865_v23, %v867_v36  ;;  %v935_v59 = vsel %vm321_vm4, %v932_v53, %v934_v26 }
 0x113   : > { %v776_v20 = vrot.slane %v770_v60, 6  ;;  %v757_v0 = vrot.slane %v750_v61, 6 }
 0x115   : > { %644 = vrot.lane.b32.xlu0 %v641_v21, %s2772_s19  ;;  %619 = vrot.lane.b32.xlu1 %v616_v15, %s2772_s19  ;;  %v775_v15 = vrot.slane %v769_v6, 6  ;;  %v858_v21 = vmul.f32 %v857_v62, %v2931_v31  ;;  %v779_v29 = vsel %vm467_vm6, %v776_v20, %v778_v24 }
 0x117   : > { %v777_v27 = vsel %vm467_vm6, %v775_v15, %v776_v20 }
 0x119   : > { %667 = vrot.lane.b32.xlu0 %v664_v5, %s2772_s19  ;;  %642 = vrot.lane.b32.xlu1 %v639_v63, %s2772_s19  ;;  %v758_v63 = vsel %vm467_vm6, %v755_v58, %v757_v0  ;;  %v864_v5 = vrot.slane %v858_v21, 2  ;;  %v970_v58 = vstv %s2464_s17  ;;  %s2482_s17 = sld [smem:[#allocation6 + $0x5e]] }
 0x11a   : > { %v971_v61 = vmul.f32 %v970_v58, %v2929_v30  ;;  %v972_v11 = vmul.f32 %v970_v58, %v2939_v37 }
 0x11b   : > { %v866_v9 = vsel %vm321_vm4, %v864_v5, %v865_v23  ;;  %v1062_v5 = vstv %s2468_s8  ;;  %s3407_s8 = sld [smem:[#allocation6 + $0x35]] }
 0x11c   : > { %v977_v4 = vrot.slane %v971_v61, 4  ;;  %v978_v10 = vrot.slane %v972_v11, 4  ;;  %v1064_v22 = vmul.f32 %v1062_v5, %v2939_v37 }
 0x11d   : > { %688 = vrot.lane.b32.xlu0 %v685_v39, %s2772_s19  ;;  %669 = vrot.lane.b32.xlu1 %v666_v40, %s2772_s19  ;;  %v901_v39 = vmul.f32 %v3005_v7, %v2936_v35  ;;  %v881_v40 = vmul.f32 %v878_v3, %v2957_v48  ;;  %v925_v7 = vmul.f32 %v3017_v12, %v2929_v30 }
 0x11e   : > { %v992_v3 = vmul.f32 %v3025_v13, %v2931_v31  ;;  %v979_v15 = vsel %vm394_vm5, %v977_v4, %v978_v10  ;;  %v1017_v13 = vmul.f32 %v3029_v16, %v2929_v30  ;;  %v1063_v16 = vmul.f32 %v1062_v5, %v2929_v30 }
 0x11f   : > { %v907_v49 = vrot.slane %v901_v39, 2  ;;  %v888_v51 = vrot.slane %v881_v40, 2  ;;  %v931_v60 = vrot.slane %v925_v7, 2 }
 0x120   : > { %v998_v21 = vrot.slane %v992_v3, 4  ;;  %v1172_v3 = vstv %s2474_s23  ;;  %s2490_s23 = sld [smem:[#allocation6 + $0x4a]] }
 0x121   : > { %709 = vrot.lane.b32.xlu0 %v706_v1, %s2772_s19  ;;  %690 = vrot.lane.b32.xlu1 %v687_v52, %s2772_s19  ;;  %v906_v1 = vrot.slane %v900_v42, 2  ;;  %v949_v52 = vstv %s2463_s6  ;;  %v910_v12 = vsel %vm321_vm4, %v907_v49, %v909_v17  ;;  %v933_v26 = vsel %vm321_vm4, %v931_v60, %v932_v53  ;;  %s2481_s6 = sld [smem:[#allocation6 + $0x2d]] }
 0x122   : > { %v951_v54 = vmul.f32 %v949_v52, %v2936_v35  ;;  %v952_v62 = vmul.f32 %v949_v52, %v2945_v41  ;;  %v973_v17 = vmul.f32 %v970_v58, %v2957_v48  ;;  %v1111_v60 = vstv %s2471_s18  ;;  %s2487_s18 = sld [smem:[#allocation6 + $0x12]] }
 0x123   : > { %v908_v55 = vsel %vm321_vm4, %v906_v1, %v907_v49  ;;  %v1083_v1 = vstv %s3224_s15  ;;  %v1112_v11 = vmul.f32 %v1111_v60, %v2931_v31  ;;  %v1113_v4 = vmul.f32 %v1111_v60, %v2936_v35  ;;  %s2485_s15 = sld [smem:[#allocation6 + $0xb]] }
 0x124   : > { %v957_v6 = vrot.slane %v951_v54, 4  ;;  %v959_v8 = vrot.slane %v952_v62, 4  ;;  %v980_v0 = vrot.slane %v973_v17, 4  ;;  %v1084_v7 = vmul.f32 %v1083_v1, %v2931_v31 }
 0x125   : > { %736 = vrot.lane.b32.xlu0 %v733_v56, %s2772_s19  ;;  %711 = vrot.lane.b32.xlu1 %v708_v57, %s2772_s19  ;;  %v889_v56 = vsel %vm321_vm4, %v886_v34, %v888_v51  ;;  %v950_v57 = vmul.f32 %v949_v52, %v2931_v31  ;;  %v1023_v34 = vrot.slane %v1017_v13, 4  ;;  %v1173_v13 = vmul.f32 %v1172_v3, %v2929_v30 }
 0x126   : > { %v960_v20 = vsel %vm394_vm5, %v957_v6, %v959_v8  ;;  %v981_v2 = vsel %vm394_vm5, %v978_v10, %v980_v0  ;;  %v1151_v10 = vstv %s2473_s26  ;;  %v1131_v8 = vstv %s2472_s27  ;;  %s2486_s26 = sld [smem:[#allocation6 + $0x3c]] }
 0x127   : > { %v1025_v43 = vsel %vm394_vm5, %v1023_v34, %v1024_v46  ;;  %v1153_v17 = vmul.f32 %v1151_v10, %v2936_v35  ;;  %s2489_s27 = sld [smem:[#allocation6 + $0x19]] }
 0x129   : > { %759 = vrot.lane.b32.xlu0 %v756_v18, %s2772_s19  ;;  %734 = vrot.lane.b32.xlu1 %v731_v14, %s2772_s19  ;;  %v956_v18 = vrot.slane %v950_v57, 4 }
 0x12b   : > { %v958_v19 = vsel %vm394_vm5, %v956_v18, %v957_v6  ;;  %v1085_v6 = vmul.f32 %v1083_v1, %v2936_v35 }
 0x12d   : > { %780 = vrot.lane.b32.xlu0 %v777_v27, %s2772_s19  ;;  %761 = vrot.lane.b32.xlu1 %v758_v63, %s2772_s19  ;;  %v1000_v63 = vsel %vm394_vm5, %v998_v21, %v999_v33  ;;  %v1133_v21 = vmul.f32 %v1131_v8, %v2939_v37 }
 0x131   : > { %869 = vrot.lane.b32.xlu0 %v866_v9, %s2773_s30  ;;  %782 = vrot.lane.b32.xlu1 %v779_v29, %s2772_s19  ;;  %s2467_s19 = sld [smem:[#allocation6 + $0x2c]] }
 0x135   : > { %890 = vrot.lane.b32.xlu0 %v887_v44, %s2773_s30  ;;  %871 = vrot.lane.b32.xlu1 %v868_v45, %s2773_s30  ;;  %v1069_v44 = vrot.slane %v1063_v16, 6  ;;  %v1070_v45 = vrot.slane %v1064_v22, 6  ;;  %v1134_v16 = vmul.f32 %v1131_v8, %v2957_v48 }
 0x137   : > { %v1041_v23 = vstv %s2467_s19  ;;  %v1071_v38 = vsel %vm467_vm6, %v1069_v44, %v1070_v45  ;;  %s3397_s19 = sld [smem:[#allocation6 + $0x4]] }
 0x138   : > { %v1043_v27 = vmul.f32 %v1041_v23, %v2936_v35  ;;  %v1042_v28 = vmul.f32 %v1041_v23, %v2931_v31  ;;  %v1044_v33 = vmul.f32 %v1041_v23, %v2945_v41  ;;  %v1132_v23 = vmul.f32 %v1131_v8, %v2929_v30 }
 0x139   : > { %911 = vrot.lane.b32.xlu0 %v908_v55, %s2773_s30  ;;  %892 = vrot.lane.b32.xlu1 %v889_v56, %s2773_s30  ;;  %v1097_v56 = vstv %s3239_s16  ;;  %s4502_s16 = smov 124  }
 0x13a   : > { %v1049_v32 = vrot.slane %v1043_v27, 6  ;;  %v1048_v36 = vrot.slane %v1042_v28, 6  ;;  %v1051_v49 = vrot.slane %v1044_v33, 6  ;;  %v1099_v62 = vmul.f32 %v1097_v56, %v2939_v37 }
 0x13b   : > { %v1159_v27 = vrot.slane %v1153_v17, 2  ;;  %v1175_v33 = vmul.f32 %v1172_v3, %v2957_v48 }
 0x13c   : > { %v1050_v42 = vsel %vm467_vm6, %v1048_v36, %v1049_v32  ;;  %v1052_v46 = vsel %vm467_vm6, %v1049_v32, %v1051_v49 }
 0x13d   : > { %938 = vrot.lane.b32.xlu0 %v935_v59, %s2773_s30  ;;  %913 = vrot.lane.b32.xlu1 %v910_v12, %s2773_s30  ;;  %v1098_v59 = vmul.f32 %v1097_v56, %v2929_v30 }
 0x141   : > { %961 = vrot.lane.b32.xlu0 %v958_v19, %s2773_s30  ;;  %936 = vrot.lane.b32.xlu1 %v933_v26, %s2773_s30  ;;  %v1114_v26 = vmul.f32 %v1111_v60, %v2945_v41 }
 0x143   : > { %v3197_v14 = vpop.permute.xlu0 %500 }
 0x145   : > { %982 = vrot.lane.b32.xlu0 %v979_v15, %s2773_s30  ;;  %963 = vrot.lane.b32.xlu1 %v960_v20, %s2773_s30  ;;  %v1152_v15 = vmul.f32 %v1151_v10, %v2931_v31 }
 0x147   : > { %v3203_v24 = vpop.permute.xlu1 %502  ;;  %v3205_v25 = vpop.permute.xlu0 %514  ;;  %v1158_v28 = vrot.slane %v1152_v15, 2  ;;  %v1243_v15 = vstv %s2477_s4  ;;  %s2493_s4 = sld [smem:[#allocation6 + $0x27]] }
 0x149   : > { %1003 = vrot.lane.b32.xlu0 %v1000_v63, %s2773_s30  ;;  %984 = vrot.lane.b32.xlu1 %v981_v2, %s2773_s30  ;;  %v1174_v63 = vmul.f32 %v1172_v3, %v2939_v37  ;;  %v1154_v2 = vmul.f32 %v1151_v10, %v2945_v41  ;;  %v1160_v36 = vsel %vm321_vm4, %v1158_v28, %v1159_v27 }
 0x14b   : > { %v3217_v9 = vpop.permute.xlu1 %516  ;;  %v3219_v29 = vpop.permute.xlu0 %530  ;;  %v1161_v44 = vrot.slane %v1154_v2, 2  ;;  %v1244_v2 = vmul.f32 %v1243_v15, %v2931_v31 }
 0x14d   : > { %1030 = vrot.lane.b32.xlu0 %v3081_v50, %s2773_s30  ;;  %1005 = vrot.lane.b32.xlu1 %v3072_v47, %s2773_s30  ;;  %v1065_v50 = vmul.f32 %v1062_v5, %v2957_v48 }
 0x14f   : > { %v3230_v39 = vpop.permute.xlu1 %532  ;;  %v3232_v40 = vpop.permute.xlu0 %534  ;;  %v1072_v52 = vrot.slane %v1065_v50, 6 }
 0x151   : > { %1053 = vrot.lane.b32.xlu0 %v1050_v42, %s2773_s30  ;;  %1028 = vrot.lane.b32.xlu1 %v1025_v43, %s2773_s30  ;;  %v1073_v55 = vsel %vm467_vm6, %v1070_v45, %v1072_v52  ;;  %v1179_v42 = vrot.slane %v1173_v13, 2  ;;  %v1180_v43 = vrot.slane %v1174_v63, 2  ;;  %v1162_v52 = vsel %vm321_vm4, %v1159_v27, %v1161_v44 }
 0x152   : > { %v1245_v63 = vmul.f32 %v1243_v15, %v2936_v35  ;;  %v1250_v44 = vrot.slane %v1244_v2, 4 }
 0x153   : > { %v3243_v47 = vpop.permute.xlu1 %550  ;;  %v3245_v51 = vpop.permute.xlu0 %552  ;;  %v1181_v1 = vsel %vm321_vm4, %v1179_v42, %v1180_v43 }
 0x154   : > { %v1251_v42 = vrot.slane %v1245_v63, 4 }
 0x155   : > { %1074 = vrot.lane.b32.xlu0 %v1071_v38, %s2773_s30  ;;  %1055 = vrot.lane.b32.xlu1 %v1052_v46, %s2773_s30  ;;  %v1218_v46 = vstv %s2476_s24  ;;  %s2492_s24 = sld [smem:[#allocation6 + $0x51]] }
 0x156   : > { %v1220_v60 = vmul.f32 %v1218_v46, %v2939_v37  ;;  %v1219_v10 = vmul.f32 %v1218_v46, %v2929_v30 }
 0x157   : > { %v3252_v53 = vpop.permute.xlu1 %554  ;;  %v3254_v54 = vpop.permute.xlu0 %794 }
 0x158   : > { %4520 = vst [vmem:[#allocation15_spill] sm:$0xff] %v3254_v54  ;;  %v1226_v3 = vrot.slane %v1220_v60, 2  ;;  %v1225_v13 = vrot.slane %v1219_v10, 2  ;;  %v1310_v10 = vstv %s2480_s7  ;;  %s3535_s7 = sld [smem:[#allocation6 + $0xe]] }
 0x159   : > { %1088 = vrot.lane.b32.xlu0 %v1084_v7, %s2774_s20  ;;  %1076 = vrot.lane.b32.xlu1 %v1073_v55, %s2773_s30  ;;  %s2475_s30 = sld [smem:[#allocation6 + $0x18]]  ;;  %v1182_v7 = vrot.slane %v1175_v33, 2  ;;  %v1312_v2 = vmul.f32 %v1310_v10, %v2939_v37 }
 0x15b   : > { %v3261_v57 = vpop.permute.xlu1 %796  ;;  %v3263_v58 = vpop.permute.xlu0 %808 }
 0x15c   : > { %4521 = vst [vmem:[#allocation16_spill] sm:$0xff] %v3261_v57  ;;  %4522 = vst [vmem:[#allocation17_spill] sm:$0xff] %v3263_v58  ;;  %v3480_v57 = vld [vmem:[#allocation5 + $0x10] sm:$0x3f] }
 0x15d   : > { %1102 = vrot.lane.b32.xlu0 %v1098_v59, %s2774_s20  ;;  %1090 = vrot.lane.b32.xlu1 %v1085_v6, %s2774_s20 }
 0x15f   : > { %v3269_v12 = vpop.permute.xlu1 %810  ;;  %v3271_v61 = vpop.permute.xlu0 %824  ;;  %v1193_v5 = vstv %s2475_s30  ;;  %s2491_s30 = sld [smem:[#allocation6 + $0x20]] }
 0x160   : > { %4523 = vst [vmem:[#allocation18_spill] sm:$0xff] %v3269_v12  ;;  %4524 = vst [vmem:[#allocation19_spill] sm:$0xff] %v3271_v61  ;;  %v1195_v22 = vmul.f32 %v1193_v5, %v2936_v35  ;;  %v1194_v45 = vmul.f32 %v1193_v5, %v2931_v31  ;;  %v1196_v55 = vmul.f32 %v1193_v5, %v2945_v41 }
 0x161   : > { %1118 = vrot.lane.b32.xlu0 %v1112_v11, %s2774_s20  ;;  %1104 = vrot.lane.b32.xlu1 %v1099_v62, %s2774_s20  ;;  %v1221_v11 = vmul.f32 %v1218_v46, %v2957_v48 }
 0x162   : > { %v1201_v38 = vrot.slane %v1195_v22, 2  ;;  %v1200_v56 = vrot.slane %v1194_v45, 2 }
 0x163   : > { %v3277_v18 = vpop.permute.xlu1 %826  ;;  %v3279_v19 = vpop.permute.xlu0 %828  ;;  %v1228_v27 = vrot.slane %v1221_v11, 2 }
 0x164   : > { %4525 = vst [vmem:[#allocation20_spill] sm:$0xff] %v3277_v18  ;;  %v1202_v62 = vsel %vm321_vm4, %v1200_v56, %v1201_v38 }
 0x165   : > { %1122 = vrot.lane.b32.xlu0 %v1114_v26, %s2774_s20  ;;  %1120 = vrot.lane.b32.xlu1 %v1113_v4, %s2774_s20  ;;  %v1183_v26 = vsel %vm321_vm4, %v1180_v43, %v1182_v7  ;;  %v1203_v4 = vrot.slane %v1196_v55, 2  ;;  %v1229_v33 = vsel %vm321_vm4, %v1226_v3, %v1228_v27  ;;  %v1246_v43 = vmul.f32 %v1243_v15, %v2945_v41 }
 0x166   : > { %v1252_v7 = vsel %vm394_vm5, %v1250_v44, %v1251_v42 }
 0x167   : > { %v3287_v20 = vpop.permute.xlu1 %844  ;;  %v3289_v0 = vpop.permute.xlu0 %846  ;;  %v1253_v55 = vrot.slane %v1246_v43, 4 }
 0x168   : > { %4526 = vst [vmem:[#allocation21_spill] sm:$0xff] %v3287_v20  ;;  %4527 = vst [vmem:[#allocation22_spill] sm:$0xff] %v3289_v0 }
 0x169   : > { %1140 = vrot.lane.b32.xlu0 %v1133_v21, %s2774_s20  ;;  %1138 = vrot.lane.b32.xlu1 %v1132_v23, %s2774_s20  ;;  %v1264_v21 = vstv %s2478_s25  ;;  %v1204_v23 = vsel %vm321_vm4, %v1201_v38, %v1203_v4  ;;  %s2494_s25 = sld [smem:[#allocation6 + $0x58]] }
 0x16a   : > { %v1266_v22 = vmul.f32 %v1264_v21, %v2939_v37  ;;  %v1267_v60 = vmul.f32 %v1264_v21, %v2957_v48 }
 0x16b   : > { %v3298_v32 = vpop.permute.xlu1 %848  ;;  %v3300_v34 = vpop.permute.xlu0 %621 }
 0x16d   : > { %1163 = vrot.lane.b32.xlu0 %v1160_v36, %s2774_s20  ;;  %1142 = vrot.lane.b32.xlu1 %v1134_v16, %s2774_s20  ;;  %v1265_v16 = vmul.f32 %v1264_v21, %v2929_v30  ;;  %v1227_v36 = vsel %vm321_vm4, %v1225_v13, %v1226_v3  ;;  %v1254_v3 = vsel %vm394_vm5, %v1251_v42, %v1253_v55 }
 0x16e   : > { %v1311_v42 = vmul.f32 %v1310_v10, %v2929_v30 }
 0x16f   : > { %v3309_v49 = vpop.permute.xlu1 %646  ;;  %v3311_v50 = vpop.permute.xlu0 %713  ;;  %v1271_v46 = vrot.slane %v1265_v16, 4  ;;  %v1313_v16 = vmul.f32 %v1310_v10, %v2957_v48 }
 0x171   : > { %1184 = vrot.lane.b32.xlu0 %v1181_v1, %s2774_s20  ;;  %1165 = vrot.lane.b32.xlu1 %v1162_v52, %s2774_s20  ;;  %v1272_v1 = vrot.slane %v1266_v22, 4  ;;  %v1285_v52 = vstv %s2479_s5  ;;  %s3529_s5 = sld [smem:[#allocation6]] }
 0x172   : > { %v1287_v56 = vmul.f32 %v1285_v52, %v2936_v35  ;;  %v1286_v11 = vmul.f32 %v1285_v52, %v2931_v31  ;;  %v1288_v21 = vmul.f32 %v1285_v52, %v2945_v41  ;;  %v1320_v52 = vrot.slane %v1313_v16, 4 }
 0x173   : > { %v3318_v59 = vpop.permute.xlu1 %738  ;;  %v3320_v6 = vpop.permute.xlu0 %915 }
 0x174   : > { %4528 = vst [vmem:[#allocation23_spill] sm:$0xff] %v3320_v6  ;;  %v1293_v15 = vrot.slane %v1287_v56, 4  ;;  %v1317_v56 = vrot.slane %v1311_v42, 4 }
 0x175   : > { %1205 = vrot.lane.b32.xlu0 %v1202_v62, %s2774_s20  ;;  %1186 = vrot.lane.b32.xlu1 %v1183_v26, %s2774_s20 }
 0x177   : > { %v3329_v8 = vpop.permute.xlu1 %940  ;;  %v3331_v17 = vpop.permute.xlu0 %1007 }
 0x178   : > { %4529 = vst [vmem:[#allocation24_spill] sm:$0xff] %v3329_v8  ;;  %4530 = vst [vmem:[#allocation25_spill] sm:$0xff] %v3331_v17 }
 0x179   : > { %1209 = vrot.lane.b32.xlu0 %v1203_v4, %s2774_s20  ;;  %1207 = vrot.lane.b32.xlu1 %v1204_v23, %s2774_s20  ;;  %v1273_v4 = vsel %vm394_vm5, %v1271_v46, %v1272_v1  ;;  %v1274_v23 = vrot.slane %v1267_v60, 4  ;;  %v1318_v46 = vrot.slane %v1312_v2, 4 }
 0x17b   : > { %v3338_v28 = vpop.permute.xlu1 %1032  ;;  %v3340_v5 = vpop.permute.xlu0 %575 }
 0x17c   : > { %4531 = vst [vmem:[#allocation26_spill] sm:$0xff] %v3338_v28  ;;  %v1487_v28 = vstv %s2489_s27  ;;  %s3577_s27 = sld [smem:[#allocation6 + $0x7]] }
 0x17d   : > { %1232 = vrot.lane.b32.xlu0 %v1229_v33, %s2774_s20  ;;  %1230 = vrot.lane.b32.xlu1 %v1227_v36, %s2774_s20  ;;  %v1275_v33 = vsel %vm394_vm5, %v1272_v1, %v1274_v23  ;;  %v1295_v36 = vrot.slane %v1288_v21, 4  ;;  %v1356_v1 = vstv %s2482_s17  ;;  %s3545_s17 = sld [smem:[#allocation6 + $0x2e]] }
 0x17f   : > { %v3349_v45 = vpop.permute.xlu1 %577  ;;  %v3351_v38 = vpop.permute.xlu0 %596  ;;  %v1296_v55 = vsel %vm394_vm5, %v1293_v15, %v1295_v36 }
 0x180   : > { %4532 = vst [vmem:[#allocation27_spill] sm:$0xff] %v3349_v45  ;;  %4533 = vst [vmem:[#allocation28_spill] sm:$0xff] %v3351_v38 }
 0x181   : > { %1255 = vrot.lane.b32.xlu0 %v1252_v7, %s2774_s20  ;;  %1234 = vrot.lane.b32.xlu1 %v1228_v27, %s2774_s20  ;;  %v1292_v27 = vrot.slane %v1286_v11, 4  ;;  %v1335_v7 = vstv %s2481_s6  ;;  %s3540_s6 = sld [smem:[#allocation6 + $0x1c]] }
 0x182   : > { %v1337_v60 = vmul.f32 %v1335_v7, %v2936_v35  ;;  %v1336_v11 = vmul.f32 %v1335_v7, %v2931_v31  ;;  %v1338_v23 = vmul.f32 %v1335_v7, %v2945_v41  ;;  %v1357_v35 = vmul.f32 %v1356_v1, %v2929_v30 }
 0x183   : > { %v3359_v62 = vpop.permute.xlu1 %598  ;;  %v3361_v26 = vpop.permute.xlu0 %617  ;;  %v1294_v22 = vsel %vm394_vm5, %v1292_v27, %v1293_v15  ;;  %v1319_v15 = vsel %vm394_vm5, %v1317_v56, %v1318_v46  ;;  %v1358_v27 = vmul.f32 %v1356_v1, %v2939_v37  ;;  %v1359_v30 = vmul.f32 %v1356_v1, %v2957_v48 }
 0x184   : > { %4534 = vst [vmem:[#allocation29_spill] sm:$0xff] %v3359_v62  ;;  %v1343_v21 = vrot.slane %v1337_v60, 6  ;;  %v1342_v2 = vrot.slane %v1336_v11, 6  ;;  %v1345_v41 = vrot.slane %v1338_v23, 6  ;;  %v1377_v60 = vstv %s3397_s19  ;;  %s3552_s19 = sld [smem:[#allocation6 + $0x5f]] }
 0x185   : > { %1276 = vrot.lane.b32.xlu0 %v1273_v4, %s2774_s20  ;;  %1257 = vrot.lane.b32.xlu1 %v1254_v3, %s2774_s20  ;;  %v1321_v3 = vsel %vm394_vm5, %v1318_v46, %v1320_v52  ;;  %v1364_v42 = vrot.slane %v1358_v27, 6  ;;  %v1366_v56 = vrot.slane %v1359_v30, 6  ;;  %v1378_v1 = vmul.f32 %v1377_v60, %v2931_v31  ;;  %v3436_v27 = vld [vmem:[#allocation5] sm:$0xff]  ;;  %v3448_v30 = vld [vmem:[#allocation4] sm:$0xff] }
 0x186   : > { %v1346_v7 = vsel %vm467_vm6, %v1343_v21, %v1345_v41 }
 0x187   : > { %v3368_v13 = vpop.permute.xlu1 %619  ;;  %v3370_v63 = vpop.permute.xlu0 %644  ;;  %v1367_v11 = vsel %vm467_vm6, %v1364_v42, %v1366_v56 }
 0x188   : > { %4535 = vst [vmem:[#allocation30_spill] sm:$0xff] %v3368_v13  ;;  %4536 = vst [vmem:[#allocation31_spill] sm:$0xff] %v3370_v63 }
 0x189   : > { %1297 = vrot.lane.b32.xlu0 %v1294_v22, %s2774_s20  ;;  %1278 = vrot.lane.b32.xlu1 %v1275_v33, %s2774_s20  ;;  %v1344_v33 = vsel %vm467_vm6, %v1342_v2, %v1343_v21  ;;  %v3433_v21 = vld [vmem:[#allocation4 + $0x8] sm:$0xff]  ;;  %v1405_v2 = vstv %s2485_s15  ;;  %s3558_s15 = sld [smem:[#allocation6 + $0x31]] }
 0x18b   : > { %v3379_v43 = vpop.permute.xlu1 %642  ;;  %v3381_v44 = vpop.permute.xlu0 %667 }
 0x18c   : > { %4537 = vst [vmem:[#allocation32_spill] sm:$0xff] %v3379_v43  ;;  %4538 = vst [vmem:[#allocation33_spill] sm:$0xff] %v3381_v44 }
 0x18d   : > { %1301 = vrot.lane.b32.xlu0 %v1295_v36, %s2774_s20  ;;  %1299 = vrot.lane.b32.xlu1 %v1296_v55, %s2774_s20  ;;  %v1363_v36 = vrot.slane %v1357_v35, 6  ;;  %v1379_v35 = vmul.f32 %v3433_v21, %v1377_v60  ;;  %v1407_v60 = vmul.f32 %v3433_v21, %v1405_v2 }
 0x18f   : > { %v3388_v4 = vpop.permute.xlu1 %669  ;;  %v3390_v10 = vpop.permute.xlu0 %688  ;;  %v1365_v55 = vsel %vm467_vm6, %v1363_v36, %v1364_v42  ;;  %v3445_v36 = vld [vmem:[#allocation5 + $0x8] sm:$0xff] }
 0x190   : > { %4539 = vst [vmem:[#allocation34_spill] sm:$0xff] %v3388_v4  ;;  %4540 = vst [vmem:[#allocation35_spill] sm:$0xff] %v3390_v10  ;;  %v4581_v10 = vstv %s3529_s5 }
 0x191   : > { %1324 = vrot.lane.b32.xlu0 %v1321_v3, %s2774_s20  ;;  %1322 = vrot.lane.b32.xlu1 %v1319_v15, %s2774_s20  ;;  %v1391_v3 = vstv %s3407_s8  ;;  %s3554_s8 = sld [smem:[#allocation6 + $0x2a]]  ;;  %v287_v6 = vmul.f32 %v3448_v30, %v4581_v10 }
 0x192   : > { %v1392_v31 = vmul.f32 %v3436_v27, %v1391_v3  ;;  %v1393_v42 = vmul.f32 %v3445_v36, %v1391_v3  ;;  %v1425_v3 = vstv %s2486_s26  ;;  %s3564_s26 = sld [smem:[#allocation6 + $0x4d]] }
 0x193   : > { %v3401_v16 = vpop.permute.xlu1 %690  ;;  %v3403_v22 = vpop.permute.xlu0 %709  ;;  %v1428_v54 = vmul.f32 %v3480_v57, %v1425_v3 }
 0x194   : > { %4541 = vst [vmem:[#allocation36_spill] sm:$0xff] %v3401_v16 }
 0x195   : > { %1326 = vrot.lane.b32.xlu1 %v1320_v52, %s2774_s20  ;;  %1347 = vrot.lane.b32.xlu0 %v1344_v33, %s2774_s20 }
 0x197   : > { %v3411_v37 = vpop.permute.xlu1 %711  ;;  %v3413_v46 = vpop.permute.xlu0 %736 }
 0x198   : > { %4542 = vst [vmem:[#allocation37_spill] sm:$0xff] %v3411_v37  ;;  %4543 = vst [vmem:[#allocation38_spill] sm:$0xff] %v3413_v46 }
 0x199   : > { %1349 = vrot.lane.b32.xlu1 %v1346_v7, %s2774_s20  ;;  %1368 = vrot.lane.b32.xlu0 %v1365_v55, %s2774_s20  ;;  %v1406_v7 = vmul.f32 %v3448_v30, %v1405_v2 }
 0x19b   : > { %v3420_v48 = vpop.permute.xlu1 %734  ;;  %v3422_v52 = vpop.permute.xlu0 %759 }
 0x19c   : > { %4544 = vst [vmem:[#allocation39_spill] sm:$0xff] %v3420_v48  ;;  %4545 = vst [vmem:[#allocation40_spill] sm:$0xff] %v3422_v52 }
 0x19d   : > { %1370 = vrot.lane.b32.xlu1 %v1367_v11, %s2774_s20  ;;  %1382 = vrot.lane.b32.xlu0 %v1378_v1, %s4502_s16  ;;  %s2488_s20 = sld [smem:[#allocation6 + $0x43]]  ;;  %v3458_v1 = vld [vmem:[#allocation4 + $0x10] sm:$0x3f] }
 0x19e   : > { %v1408_v11 = vmul.f32 %v3458_v1, %v1405_v2  ;;  %v1427_v2 = vmul.f32 %v3445_v36, %v1425_v3 }
 0x19f   : > { %v3429_v23 = vpop.permute.xlu1 %761  ;;  %v3431_v15 = vpop.permute.xlu0 %780 }
 0x1a0   : > { %4546 = vst [vmem:[#allocation41_spill] sm:$0xff] %v3429_v23  ;;  %4547 = vst [vmem:[#allocation42_spill] sm:$0xff] %v3431_v15 }
 0x1a1   : > { %1384 = vrot.lane.b32.xlu1 %v1379_v35, %s4502_s16  ;;  %1396 = vrot.lane.b32.xlu0 %v1392_v31, %s4502_s16  ;;  %v1445_v35 = vstv %s2487_s18  ;;  %s3562_s18 = sld [smem:[#allocation6 + $0x3f]] }
 0x1a2   : > { %v1447_v31 = vmul.f32 %v3433_v21, %v1445_v35  ;;  %v1448_v12 = vmul.f32 %v3458_v1, %v1445_v35 }
 0x1a3   : > { %v3441_v41 = vpop.permute.xlu1 %782  ;;  %v3443_v33 = vpop.permute.xlu0 %869 }
 0x1a4   : > { %4548 = vst [vmem:[#allocation43_spill] sm:$0xff] %v3441_v41  ;;  %4549 = vst [vmem:[#allocation44_spill] sm:$0xff] %v3443_v33  ;;  %v1453_v58 = vrot.slane %v1447_v31, 2 }
 0x1a5   : > { %1398 = vrot.lane.b32.xlu1 %v1393_v42, %s4502_s16  ;;  %1412 = vrot.lane.b32.xlu0 %v1406_v7, %s4502_s16  ;;  %v1466_v42 = vstv %s2488_s20  ;;  %v1446_v7 = vmul.f32 %v3448_v30, %v1445_v35  ;;  %v1455_v35 = vrot.slane %v1448_v12, 2  ;;  %s3572_s20 = sld [smem:[#allocation6 + $0x5b]] }
 0x1a6   : > { %v1467_v33 = vmul.f32 %v3436_v27, %v1466_v42  ;;  %v1469_v31 = vmul.f32 %v3480_v57, %v1466_v42 }
 0x1a7   : > { %v3453_v55 = vpop.permute.xlu1 %871  ;;  %v3455_v56 = vpop.permute.xlu0 %890 }
 0x1a8   : > { %4550 = vst [vmem:[#allocation45_spill] sm:$0xff] %v3453_v55  ;;  %4551 = vst [vmem:[#allocation46_spill] sm:$0xff] %v3455_v56  ;;  %v1426_v55 = vmul.f32 %v3436_v27, %v1425_v3  ;;  %v1473_v18 = vrot.slane %v1467_v33, 2  ;;  %v1476_v12 = vrot.slane %v1469_v31, 2 }
 0x1a9   : > { %1414 = vrot.lane.b32.xlu1 %v1407_v60, %s4502_s16  ;;  %1416 = vrot.lane.b32.xlu0 %v1408_v11, %s4502_s16  ;;  %v1468_v60 = vmul.f32 %v3445_v36, %v1466_v42  ;;  %v1452_v11 = vrot.slane %v1446_v7, 2  ;;  %v1488_v7 = vmul.f32 %v3448_v30, %v1487_v28  ;;  %v1512_v42 = vstv %s2490_s23  ;;  %s3581_s23 = sld [smem:[#allocation6 + $0x15]] }
 0x1ab   : > { %v3465_v0 = vpop.permute.xlu1 %892  ;;  %v3467_v56 = vpop.permute.xlu0 %911  ;;  %v1454_v17 = vsel %vm321_vm4, %v1452_v11, %v1453_v58  ;;  %v1474_v46 = vrot.slane %v1468_v60, 2  ;;  %v1456_v11 = vsel %vm321_vm4, %v1453_v58, %v1455_v35 }
 0x1ac   : > { %4552 = vst [vmem:[#allocation47_spill] sm:$0xff] %v3465_v0  ;;  %4553 = vst [vmem:[#allocation48_spill] sm:$0xff] %v3467_v56 }
 0x1ad   : > { %1432 = vrot.lane.b32.xlu1 %v1426_v55, %s4502_s16  ;;  %1434 = vrot.lane.b32.xlu0 %v1427_v2, %s4502_s16  ;;  %v1489_v55 = vmul.f32 %v3433_v21, %v1487_v28  ;;  %v1475_v33 = vsel %vm321_vm4, %v1473_v18, %v1474_v46  ;;  %v1477_v31 = vsel %vm321_vm4, %v1474_v46, %v1476_v12  ;;  %v1558_v46 = vstv %s2492_s24  ;;  %s3591_s24 = sld [smem:[#allocation6 + $0x38]] }
 0x1ae   : > { %v1514_v18 = vmul.f32 %v3445_v36, %v1512_v42 }
 0x1af   : > { %v3476_v0 = vpop.permute.xlu1 %913  ;;  %v3478_v20 = vpop.permute.xlu0 %938  ;;  %v1495_v60 = vrot.slane %v1489_v55, 2 }
 0x1b0   : > { %4554 = vst [vmem:[#allocation49_spill] sm:$0xff] %v3476_v0  ;;  %4555 = vst [vmem:[#allocation50_spill] sm:$0xff] %v3478_v20  ;;  %v1490_v20 = vmul.f32 %v3458_v1, %v1487_v28  ;;  %v1515_v28 = vmul.f32 %v3480_v57, %v1512_v42  ;;  %v1579_v0 = vstv %s2493_s4  ;;  %s3595_s4 = sld [smem:[#allocation6 + $0x46]] }
 0x1b1   : > { %1436 = vrot.lane.b32.xlu1 %v1428_v54, %s4502_s16  ;;  %1457 = vrot.lane.b32.xlu0 %v1454_v17, %s4502_s16  ;;  %v1494_v54 = vrot.slane %v1488_v7, 2 }
 0x1b2   : > { %v1497_v35 = vrot.slane %v1490_v20, 2  ;;  %v1522_v20 = vrot.slane %v1515_v28, 2 }
 0x1b3   : > { %v3489_v2 = vpop.permute.xlu1 %936  ;;  %v3491_v3 = vpop.permute.xlu0 %961  ;;  %v1496_v58 = vsel %vm321_vm4, %v1494_v54, %v1495_v60  ;;  %v1520_v54 = vrot.slane %v1514_v18, 2 }
 0x1b4   : > { %4556 = vst [vmem:[#allocation51_spill] sm:$0xff] %v3489_v2  ;;  %4557 = vst [vmem:[#allocation52_spill] sm:$0xff] %v3491_v3  ;;  %v1513_v3 = vmul.f32 %v3436_v27, %v1512_v42  ;;  %v1498_v12 = vsel %vm321_vm4, %v1495_v60, %v1497_v35 }
 0x1b5   : > { %1459 = vrot.lane.b32.xlu1 %v1456_v11, %s4502_s16  ;;  %1478 = vrot.lane.b32.xlu0 %v1475_v33, %s4502_s16  ;;  %v1537_v33 = vstv %s2491_s30  ;;  %v1523_v18 = vsel %vm321_vm4, %v1520_v54, %v1522_v20  ;;  %s3583_s30 = sld [smem:[#allocation6 + $0x23]] }
 0x1b6   : > { %v1519_v11 = vrot.slane %v1513_v3, 2  ;;  %v1538_v42 = vmul.f32 %v3448_v30, %v1537_v33  ;;  %v1540_v3 = vmul.f32 %v3458_v1, %v1537_v33  ;;  %v3668_v41 = vstv %s3595_s4  ;;  %s4052_s4 = sld [smem:[#allocation6 + $0x1b]] }
 0x1b7   : > { %v3498_v17 = vpop.permute.xlu1 %963  ;;  %v3500_v2 = vpop.permute.xlu0 %982 }
 0x1b8   : > { %4558 = vst [vmem:[#allocation53_spill] sm:$0xff] %v3498_v17  ;;  %4559 = vst [vmem:[#allocation54_spill] sm:$0xff] %v3500_v2  ;;  %v1539_v2 = vmul.f32 %v3433_v21, %v1537_v33  ;;  %v1521_v60 = vsel %vm321_vm4, %v1519_v11, %v1520_v54  ;;  %v1547_v17 = vrot.slane %v1540_v3, 4  ;;  %v1561_v54 = vmul.f32 %v3480_v57, %v1558_v46 }
 0x1b9   : > { %1480 = vrot.lane.b32.xlu1 %v1477_v31, %s4502_s16  ;;  %1499 = vrot.lane.b32.xlu0 %v1496_v58, %s4502_s16 }
 0x1ba   : > { %v1545_v28 = vrot.slane %v1539_v2, 4 }
 0x1bb   : > { %v3509_v55 = vpop.permute.xlu1 %984  ;;  %v3511_v7 = vpop.permute.xlu0 %1003 }
 0x1bc   : > { %4560 = vst [vmem:[#allocation55_spill] sm:$0xff] %v3509_v55  ;;  %4561 = vst [vmem:[#allocation56_spill] sm:$0xff] %v3511_v7  ;;  %v1559_v55 = vmul.f32 %v3436_v27, %v1558_v46  ;;  %v3642_v7 = vstv %s3562_s18  ;;  %s3687_s18 = sld [smem:[#allocation6 + $0x21]] }
 0x1bd   : > { %1501 = vrot.lane.b32.xlu1 %v1498_v12, %s4502_s16  ;;  %1503 = vrot.lane.b32.xlu0 %v1497_v35, %s4502_s16  ;;  %v1560_v12 = vmul.f32 %v3445_v36, %v1558_v46  ;;  %v1544_v35 = vrot.slane %v1538_v42, 4  ;;  %v1580_v42 = vmul.f32 %v3448_v30, %v1579_v0  ;;  %v333_v61 = vmul.f32 %v3436_v27, %v3642_v7 }
 0x1bf   : > { %v3518_v31 = vpop.permute.xlu1 %1005  ;;  %v3520_v58 = vpop.permute.xlu0 %1030  ;;  %v1546_v2 = vsel %vm394_vm5, %v1544_v35, %v1545_v28  ;;  %v1566_v11 = vrot.slane %v1560_v12, 4  ;;  %v1604_v12 = vstv %s2494_s25  ;;  %s3599_s25 = sld [smem:[#allocation6 + $0x54]]  ;;  %v339_v38 = vrot.slane %v333_v61, 2 }
 0x1c0   : > { %4562 = vst [vmem:[#allocation57_spill] sm:$0xff] %v3518_v31  ;;  %4563 = vst [vmem:[#allocation58_spill] sm:$0xff] %v3520_v58  ;;  %v1565_v31 = vrot.slane %v1559_v55, 4 }
 0x1c1   : > { %1524 = vrot.lane.b32.xlu1 %v1521_v60, %s4502_s16  ;;  %1526 = vrot.lane.b32.xlu0 %v1523_v18, %s4502_s16  ;;  %v1581_v60 = vmul.f32 %v3433_v21, %v1579_v0  ;;  %v1548_v18 = vsel %vm394_vm5, %v1545_v28, %v1547_v17  ;;  %v1586_v17 = vrot.slane %v1580_v42, 4  ;;  %v1607_v42 = vmul.f32 %v3480_v57, %v1604_v12 }
 0x1c2   : > { %v1567_v46 = vsel %vm394_vm5, %v1565_v31, %v1566_v11  ;;  %v1605_v31 = vmul.f32 %v3436_v27, %v1604_v12 }
 0x1c3   : > { %v3531_v58 = vpop.permute.xlu1 %1028  ;;  %v3533_v33 = vpop.permute.xlu0 %1053  ;;  %v1587_v35 = vrot.slane %v1581_v60, 4 }
 0x1c4   : > { %4564 = vst [vmem:[#allocation59_spill] sm:$0xff] %v3531_v58  ;;  %4565 = vst [vmem:[#allocation60_spill] sm:$0xff] %v3533_v33 }
 0x1c5   : > { %1528 = vrot.lane.b32.xlu1 %v1522_v20, %s4502_s16  ;;  %1549 = vrot.lane.b32.xlu0 %v1546_v2, %s4502_s16  ;;  %v1568_v20 = vrot.slane %v1561_v54, 4  ;;  %v1582_v2 = vmul.f32 %v3458_v1, %v1579_v0  ;;  %v1606_v0 = vmul.f32 %v3445_v36, %v1604_v12  ;;  %v1588_v60 = vsel %vm394_vm5, %v1586_v17, %v1587_v35 }
 0x1c6   : > { %v1650_v17 = vstv %s3552_s19  ;;  %s3615_s19 = sld [smem:[#allocation6 + $0xc]]  ;;  %v3680_v52 = vstv %s3599_s25  ;;  %s2777_s25 = smov 122  }
 0x1c7   : > { %v3547_v55 = vpop.permute.xlu1 %1055  ;;  %v3549_v3 = vpop.permute.xlu0 %1074  ;;  %v1569_v54 = vsel %vm394_vm5, %v1566_v11, %v1568_v20  ;;  %v1611_v11 = vrot.slane %v1605_v31, 4  ;;  %v1629_v20 = vstv %s3545_s17  ;;  %s3608_s17 = sld [smem:[#allocation6 + $0x5]]  ;;  %v1653_v58 = vmul.f32 %v3480_v57, %v1650_v17 }
 0x1c8   : > { %4566 = vst [vmem:[#allocation61_spill] sm:$0xff] %v3547_v55  ;;  %4567 = vst [vmem:[#allocation62_spill] sm:$0xff] %v3549_v3  ;;  %v1614_v55 = vrot.slane %v1607_v42, 4  ;;  %v1630_v31 = vmul.f32 %v3448_v30, %v1629_v20 }
 0x1c9   : > { %1551 = vrot.lane.b32.xlu1 %v1548_v18, %s4502_s16  ;;  %1570 = vrot.lane.b32.xlu0 %v1567_v46, %s4502_s16  ;;  %v1589_v18 = vrot.slane %v1582_v2, 4  ;;  %v1612_v2 = vrot.slane %v1606_v0, 4  ;;  %v1651_v0 = vmul.f32 %v3436_v27, %v1650_v17  ;;  %v1660_v23 = vrot.slane %v1653_v58, 6 }
 0x1cb   : > { %v3566_v28 = vpop.permute.xlu1 %1076  ;;  %v3568_v3 = vpop.permute.xlu0 %1088  ;;  %v1590_v12 = vsel %vm394_vm5, %v1587_v35, %v1589_v18  ;;  %v1632_v35 = vmul.f32 %v3458_v1, %v1629_v20  ;;  %v1615_v42 = vsel %vm394_vm5, %v1612_v2, %v1614_v55 }
 0x1cc   : > { %4568 = vst [vmem:[#allocation63_spill] sm:$0xff] %v3566_v28  ;;  %4569 = vst [vmem:[#allocation64_spill] sm:$0xff] %v3568_v3 }
 0x1cd   : > { %1572 = vrot.lane.b32.xlu1 %v1569_v54, %s4502_s16  ;;  %1591 = vrot.lane.b32.xlu0 %v1588_v60, %s4502_s16  ;;  %v1631_v54 = vmul.f32 %v3433_v21, %v1629_v20  ;;  %v1671_v48 = vstv %s3608_s17  ;;  %s4227_s17 = sld [smem:[#allocation6 + $0x4c]] }
 0x1cf   : > { %v3585_v46 = vpop.permute.xlu1 %1090  ;;  %v3587_v28 = vpop.permute.xlu0 %1102 }
 0x1d0   : > { %4570 = vst [vmem:[#allocation65_spill] sm:$0xff] %v3585_v46  ;;  %4571 = vst [vmem:[#allocation66_spill] sm:$0xff] %v3587_v28  ;;  %v3613_v46 = vmul.f32 %v3445_v36, %v1650_v17  ;;  %v3655_v17 = vstv %s3577_s27  ;;  %s4007_s27 = sld [smem:[#allocation6 + $0xd]] }
 0x1d1   : > { %1593 = vrot.lane.b32.xlu1 %v1590_v12, %s4502_s16  ;;  %1595 = vrot.lane.b32.xlu0 %v1589_v18, %s4502_s16  ;;  %v1613_v18 = vsel %vm394_vm5, %v1611_v11, %v1612_v2  ;;  %v1637_v12 = vrot.slane %v1631_v54, 6  ;;  %v314_v11 = vstv %s3535_s7  ;;  %v387_v2 = vstv %s3540_s6  ;;  %s4576_s7 = smov 124   ;;  %s3646_s6 = sld [smem:[#allocation6 + $0x3d]] }
 0x1d2   : > { %v3627_v54 = vstv %s3554_s8  ;;  %v1658_v20 = vrot.slane %v3613_v46, 6  ;;  %v3652_v46 = vstv %s3572_s20  ;;  %s3677_s8 = sld [smem:[#allocation6 + $0x44]]  ;;  %v389_v58 = vmul.f32 %v3433_v21, %v387_v2 }
 0x1d3   : > { %v3602_v60 = vpop.permute.xlu1 %1104  ;;  %v3604_v28 = vpop.permute.xlu0 %1118  ;;  %v462_v44 = vmul.f32 %v3433_v21, %v3627_v54  ;;  %s3971_s20 = sld [smem:[#allocation6 + $0x60]] }
 0x1d4   : > { %4572 = vst [vmem:[#allocation67_spill] sm:$0xff] %v3602_v60  ;;  %4573 = vst [vmem:[#allocation68_spill] sm:$0xff] %v3604_v28  ;;  %v1636_v60 = vrot.slane %v1630_v31, 6  ;;  %v317_v28 = vmul.f32 %v3458_v1, %v314_v11  ;;  %v396_v43 = vrot.slane %v389_v58, 4 }
 0x1d5   : > { %1616 = vrot.lane.b32.xlu1 %v1613_v18, %s4502_s16  ;;  %1618 = vrot.lane.b32.xlu0 %v1615_v42, %s4502_s16  ;;  %v1639_v18 = vrot.slane %v1632_v35, 6  ;;  %s3633_s16 = sld [smem:[#allocation6 + $0x1a]]  ;;  %v1657_v42 = vrot.slane %v1651_v0, 6  ;;  %v3658_v35 = vstv %s3581_s23  ;;  %v315_v0 = vmul.f32 %v3448_v30, %v314_v11 }
 0x1d6   : > { %v1638_v31 = vsel %vm467_vm6, %v1636_v60, %v1637_v12  ;;  %v3649_v60 = vstv %s3564_s26  ;;  %v325_v63 = vrot.slane %v317_v28, 2  ;;  %v390_v28 = vmul.f32 %v3458_v1, %v387_v2  ;;  %s3964_s26 = sld [smem:[#allocation6 + $0x2f]] }
 0x1d7   : > { %v3629_v3 = vpop.permute.xlu1 %1120  ;;  %v3631_v33 = vpop.permute.xlu0 %1122  ;;  %v1640_v8 = vsel %vm467_vm6, %v1637_v12, %v1639_v18  ;;  %v1659_v56 = vsel %vm467_vm6, %v1657_v42, %v1658_v20  ;;  %v388_v12 = vmul.f32 %v3448_v30, %v387_v2  ;;  %v1685_v18 = vstv %s3622_s1  ;;  %s3728_s1 = sld [smem:[#allocation6 + $0x4b]] }
 0x1d8   : > { %4574 = vst [vmem:[#allocation69_spill] sm:$0xff] %v3629_v3  ;;  %4575 = vst [vmem:[#allocation70_spill] sm:$0xff] %v3631_v33  ;;  %v316_v3 = vmul.f32 %v3433_v21, %v314_v11  ;;  %v3662_v33 = vstv %s3583_s30  ;;  %v3693_v42 = vstv %s3619_s0  ;;  %v1661_v2 = vsel %vm467_vm6, %v1658_v20, %v1660_v23  ;;  %s2776_s0 = smov 123   ;;  %s4023_s23 = sld [smem:[#allocation6 + $0x3e]] }
 0x1d9   : > { %1620 = vrot.lane.b32.xlu1 %v1614_v55, %s4576_s7  ;;  %1641 = vrot.lane.b32.xlu0 %v1638_v31, %s4576_s7  ;;  %v3665_v55 = vstv %s3591_s24  ;;  %v3721_v10 = vstv %s3646_s6  ;;  %v395_v4 = vrot.slane %v388_v12, 4  ;;  %v1673_v12 = vmul.f32 %v3433_v21, %v1671_v48  ;;  %s4039_s30 = sld [smem:[#allocation6 + $0x6]] }
 0x1da   : > { %v323_v11 = vrot.slane %v316_v3, 2  ;;  %v322_v3 = vrot.slane %v315_v0, 2  ;;  %v3711_v0 = vmul.f32 %v3445_v36, %v3642_v7  ;;  %v4582_v23 = vstv %s3529_s5  ;;  %s3921_s5 = sld [smem:[#allocation6 + $0x28]] }
 0x1db   : > { %v3670_v31 = vpop.permute.xlu1 %1138  ;;  %v3672_v15 = vpop.permute.xlu0 %1140  ;;  %v3702_v16 = vstv %s3633_s16  ;;  %v288_v20 = vmul.f32 %v3433_v21, %v4582_v23  ;;  %v1686_v58 = vmul.f32 %v3436_v27, %v1685_v18  ;;  %v406_v13 = vmul.f32 %v3436_v27, %v3649_v60  ;;  %s3865_s16 = sld [smem:[#allocation6 + $0x52]] }
 0x1dc   : > { %4577 = vst [vmem:[#allocation71_spill] sm:$0xff] %v3670_v31  ;;  %4578 = vst [vmem:[#allocation72_spill] sm:$0xff] %v3672_v15  ;;  %v3685_v15 = vstv %s3615_s19  ;;  %v326_v37 = vsel %vm321_vm4, %v323_v11, %v325_v63  ;;  %v398_v63 = vrot.slane %v390_v28, 4  ;;  %v340_v23 = vrot.slane %v3711_v0, 2  ;;  %s4044_s24 = sld [smem:[#allocation6 + $0x37]] }
 0x1dd   : > { %1643 = vrot.lane.b32.xlu1 %v1640_v8, %s4576_s7  ;;  %1662 = vrot.lane.b32.xlu0 %v1659_v56, %s4576_s7  ;;  %v1672_v56 = vmul.f32 %v3448_v30, %v1671_v48  ;;  %v330_v62 = vadd.f32 %v326_v37, %v288_v20  ;;  %v3743_v28 = vmul.f32 %v3445_v36, %v3649_v60  ;;  %v3751_v48 = vstv %s3687_s18  ;;  %s4273_s19 = sld [smem:[#allocation6 + $0x14]] }
 0x1de   : > { %v397_v61 = vsel %vm394_vm5, %v395_v4, %v396_v43  ;;  %v469_v37 = vrot.slane %v462_v44, 6  ;;  %v399_v20 = vsel %vm394_vm5, %v396_v43, %v398_v63  ;;  %v341_v44 = vsel %vm321_vm4, %v339_v38, %v340_v23  ;;  %s2521_s6 = sld [smem:[#allocation6 + $0x29]] }
 0x1df   : > { %v3696_v31 = vpop.permute.xlu1 %1142  ;;  %v3698_v8 = vpop.permute.xlu0 %1163  ;;  %v403_v4 = vadd.f32 %v399_v20, %v330_v62  ;;  %v412_v63 = vrot.slane %v406_v13, 4  ;;  %s2519_s18 = sld [smem:[#allocation6 + $0x22]] }
 0x1e0   : > { %4579 = vst [vmem:[#allocation73_spill] sm:$0xff] %v3696_v31  ;;  %4580 = vst [vmem:[#allocation74_spill] sm:$0xff] %v3698_v8  ;;  %v324_v31 = vsel %vm321_vm4, %v322_v3, %v323_v11  ;;  %v461_v8 = vmul.f32 %v3448_v30, %v3627_v54  ;;  %v463_v11 = vmul.f32 %v3458_v1, %v3627_v54  ;;  %v3748_v54 = vstv %s3677_s8  ;;  %s2522_s8 = sld [smem:[#allocation6 + $0x5a]] }
 0x1e1   : > { %1664 = vrot.lane.b32.xlu1 %v1661_v2, %s4576_s7  ;;  %1676 = vrot.lane.b32.xlu0 %v1672_v56, %s2776_s0  ;;  %v329_v2 = vadd.f32 %v324_v31, %v287_v6  ;;  %v335_v31 = vmul.f32 %v3480_v57, %v3642_v7  ;;  %v3767_v7 = vmul.f32 %v3436_v27, %v3652_v46  ;;  %s4279_s7 = sld [smem:[#allocation6 + $0x45]] }
 0x1e2   : > { %v468_v6 = vrot.slane %v461_v8, 6  ;;  %v471_v0 = vrot.slane %v463_v11, 6  ;;  %v4587_v8 = vstv %s3558_s15  ;;  %v413_v11 = vrot.slane %v3743_v28, 4 }
 0x1e3   : > { %v3732_v3 = vpop.permute.xlu1 %1165  ;;  %v3734_v56 = vpop.permute.xlu0 %1184  ;;  %v402_v45 = vadd.f32 %v397_v61, %v329_v2  ;;  %v293_v43 = vmul.f32 %v3436_v27, %v4587_v8  ;;  %v342_v62 = vrot.slane %v335_v31, 2  ;;  %v408_v2 = vmul.f32 %v3480_v57, %v3649_v60 }
 0x1e4   : > { %4583 = vst [vmem:[#allocation75_spill] sm:$0xff] %v3732_v3  ;;  %4584 = vst [vmem:[#allocation76_spill] sm:$0xff] %v3734_v56  ;;  %v1700_v3 = vmul.f32 %v3448_v30, %v3685_v15  ;;  %v470_v38 = vsel %vm467_vm6, %v468_v6, %v469_v37  ;;  %v3783_v61 = vstv %s3728_s1  ;;  %v472_v13 = vsel %vm467_vm6, %v469_v37, %v471_v0  ;;  %s2523_s1 = sld [smem:[#allocation6 + $0x30]] }
 0x1e5   : > { %1678 = vrot.lane.b32.xlu1 %v1673_v12, %s2776_s0  ;;  %1690 = vrot.lane.b32.xlu0 %v1686_v58, %s2776_s0  ;;  %v1687_v58 = vmul.f32 %v3445_v36, %v1685_v18  ;;  %v3775_v18 = vmul.f32 %v3445_v36, %v3652_v46  ;;  %v346_v28 = vadd.f32 %v341_v44, %v293_v43  ;;  %v485_v60 = vrot.slane %v3767_v7, 6 }
 0x1e6   : > { %v3794_v6 = vadd.f32 %v470_v38, %v402_v45  ;;  %v3796_v31 = vadd.f32 %v472_v13, %v403_v4  ;;  %v1741_v37 = vmul.f32 %v3433_v21, %v3693_v42  ;;  %v414_v0 = vsel %vm394_vm5, %v412_v63, %v413_v11 }
 0x1e7   : > { %v3757_v56 = vpop.permute.xlu1 %1186  ;;  %v3759_v12 = vpop.permute.xlu0 %1205  ;;  %v486_v44 = vrot.slane %v3775_v18, 6  ;;  %v4590_v43 = vstv %s3558_s15  ;;  %v343_v45 = vsel %vm321_vm4, %v340_v23, %v342_v62  ;;  %v351_v4 = vmul.f32 %v3433_v21, %v3658_v35  ;;  %s3934_s15 = sld [smem:[#allocation6 + $0x59]] }
 0x1e8   : > { %4585 = vst [vmem:[#allocation77_spill] sm:$0xff] %v3757_v56  ;;  %4586 = vst [vmem:[#allocation78_spill] sm:$0xff] %v3759_v12  ;;  %v294_v56 = vmul.f32 %v3445_v36, %v4590_v43  ;;  %v1740_v7 = vmul.f32 %v3448_v30, %v3693_v42  ;;  %v419_v63 = vadd.f32 %v414_v0, %v346_v28  ;;  %v1747_v62 = vrot.slane %v1741_v37, 2 }
 0x1e9   : > { %1692 = vrot.lane.b32.xlu1 %v1687_v58, %s2776_s0  ;;  %1706 = vrot.lane.b32.xlu0 %v1700_v3, %s2776_s0  ;;  %v1701_v58 = vmul.f32 %v3433_v21, %v3685_v15  ;;  %v1702_v3 = vmul.f32 %v3458_v1, %v3685_v15  ;;  %v415_v15 = vrot.slane %v408_v2, 4  ;;  %v350_v18 = vmul.f32 %v3448_v30, %v3658_v35 }
 0x1ea   : > { %v1720_v13 = vmul.f32 %v3436_v27, %v3721_v10  ;;  %v1721_v23 = vmul.f32 %v3445_v36, %v3721_v10  ;;  %v1742_v2 = vmul.f32 %v3458_v1, %v3693_v42  ;;  %v1761_v28 = vmul.f32 %v3436_v27, %v3748_v54 }
 0x1eb   : > { %v3786_v20 = vpop.permute.xlu1 %1207  ;;  %v3788_v8 = vpop.permute.xlu0 %1209  ;;  %v423_v43 = vmul.f32 %v3448_v30, %v3662_v33  ;;  %v416_v42 = vsel %vm394_vm5, %v413_v11, %v415_v15  ;;  %v357_v37 = vrot.slane %v351_v4, 2  ;;  %v1722_v12 = vmul.f32 %v3480_v57, %v3721_v10 }
 0x1ec   : > { %4588 = vst [vmem:[#allocation79_spill] sm:$0xff] %v3786_v20  ;;  %4589 = vst [vmem:[#allocation80_spill] sm:$0xff] %v3788_v8  ;;  %v481_v8 = vmul.f32 %v3480_v57, %v3652_v46  ;;  %v3854_v11 = vmul.f32 %v3433_v21, %v3702_v16  ;;  %v1767_v4 = vrot.slane %v1761_v28, 2  ;;  %v3861_v10 = vmul.f32 %v3458_v1, %v3662_v33 }
 0x1ed   : > { %1708 = vrot.lane.b32.xlu1 %v1701_v58, %s2776_s0  ;;  %1710 = vrot.lane.b32.xlu0 %v1702_v3, %s2776_s0  ;;  %v1762_v58 = vmul.f32 %v3445_v36, %v3748_v54  ;;  %v347_v3 = vadd.f32 %v343_v45, %v294_v56  ;;  %v1746_v56 = vrot.slane %v1740_v7, 2 }
 0x1ee   : > { %v488_v0 = vrot.slane %v481_v8, 6  ;;  %v356_v8 = vrot.slane %v350_v18, 2  ;;  %v487_v18 = vsel %vm467_vm6, %v485_v60, %v486_v44 }
 0x1ef   : > { %v3817_v38 = vpop.permute.xlu1 %1230  ;;  %v3819_v46 = vpop.permute.xlu0 %1232  ;;  %v1748_v15 = vsel %vm321_vm4, %v1746_v56, %v1747_v62  ;;  %v1768_v7 = vrot.slane %v1762_v58, 2  ;;  %v3873_v28 = vadd.f32 %v487_v18, %v419_v63  ;;  %v429_v58 = vrot.slane %v423_v43, 4 }
 0x1f0   : > { %4591 = vst [vmem:[#allocation81_spill] sm:$0xff] %v3817_v38  ;;  %4592 = vst [vmem:[#allocation82_spill] sm:$0xff] %v3819_v46  ;;  %v3835_v46 = vmul.f32 %v3433_v21, %v3662_v33  ;;  %v3842_v38 = vmul.f32 %v3458_v1, %v3658_v35  ;;  %v1749_v35 = vrot.slane %v1742_v2, 2  ;;  %v358_v2 = vsel %vm321_vm4, %v356_v8, %v357_v37 }
 0x1f1   : > { %1726 = vrot.lane.b32.xlu1 %v1720_v13, %s2776_s0  ;;  %1728 = vrot.lane.b32.xlu0 %v1721_v23, %s2776_s0  ;;  %v1763_v13 = vmul.f32 %v3480_v57, %v3748_v54  ;;  %v420_v23 = vadd.f32 %v416_v42, %v347_v3  ;;  %v299_v54 = vmul.f32 %v3448_v30, %v3655_v17  ;;  %v1789_v8 = vrot.slane %v3854_v11, 2 }
 0x1f2   : > { %v359_v60 = vrot.slane %v3842_v38, 2  ;;  %v489_v33 = vsel %vm467_vm6, %v486_v44, %v488_v0  ;;  %v1750_v56 = vsel %vm321_vm4, %v1747_v62, %v1749_v35  ;;  %v1784_v38 = vmul.f32 %v3458_v1, %v3702_v16 }
 0x1f3   : > { %v3844_v45 = vpop.permute.xlu1 %1234  ;;  %v3846_v20 = vpop.permute.xlu0 %1255  ;;  %v1770_v42 = vrot.slane %v1763_v13, 2  ;;  %v364_v63 = vadd.f32 %v358_v2, %v299_v54  ;;  %v4504_v0 = vrot.slane %v3861_v10, 4  ;;  %v369_v43 = vmul.f32 %v3436_v27, %v3668_v41 }
 0x1f4   : > { %4593 = vst [vmem:[#allocation83_spill] sm:$0xff] %v3844_v45  ;;  %4594 = vst [vmem:[#allocation84_spill] sm:$0xff] %v3846_v20  ;;  %v430_v45 = vrot.slane %v3835_v46, 4  ;;  %v1782_v46 = vmul.f32 %v3448_v30, %v3702_v16  ;;  %v3885_v20 = vadd.f32 %v489_v33, %v420_v23  ;;  %v360_v62 = vsel %vm321_vm4, %v357_v37, %v359_v60 }
 0x1f5   : > { %1730 = vrot.lane.b32.xlu1 %v1722_v12, %s2776_s0  ;;  %1751 = vrot.lane.b32.xlu0 %v1748_v15, %s2776_s0  ;;  %v1769_v15 = vsel %vm321_vm4, %v1767_v4, %v1768_v7  ;;  %v370_v13 = vmul.f32 %v3445_v36, %v3668_v41  ;;  %v300_v11 = vmul.f32 %v3433_v21, %v3655_v17  ;;  %v1791_v2 = vrot.slane %v1784_v38, 2 }
 0x1f6   : > { %v431_v44 = vsel %vm394_vm5, %v429_v58, %v430_v45  ;;  %v1788_v16 = vrot.slane %v1782_v46, 2  ;;  %v371_v35 = vmul.f32 %v3480_v57, %v3668_v41  ;;  %v1771_v37 = vsel %vm321_vm4, %v1768_v7, %v1770_v42 }
 0x1f7   : > { %v3876_v12 = vpop.permute.xlu1 %1257  ;;  %v3878_v3 = vpop.permute.xlu0 %1276  ;;  %v1807_v23 = vmul.f32 %v3436_v27, %v3783_v61  ;;  %v1808_v46 = vmul.f32 %v3445_v36, %v3783_v61  ;;  %v3912_v33 = vmul.f32 %v3480_v57, %v3783_v61  ;;  %v3914_v41 = vadd.f32 %v431_v44, %v364_v63 }
 0x1f8   : > { %4595 = vst [vmem:[#allocation85_spill] sm:$0xff] %v3876_v12  ;;  %4596 = vst [vmem:[#allocation86_spill] sm:$0xff] %v3878_v3  ;;  %v1790_v54 = vsel %vm321_vm4, %v1788_v16, %v1789_v8  ;;  %v365_v58 = vadd.f32 %v360_v62, %v300_v11  ;;  %v1852_v7 = vstv %s3865_s16  ;;  %v433_v42 = vsel %vm394_vm5, %v430_v45, %v4504_v0  ;;  %s2524_s16 = sld [smem:[#allocation6 + $0x61]] }
 0x1f9   : > { %1753 = vrot.lane.b32.xlu1 %v1750_v56, %s2776_s0  ;;  %1772 = vrot.lane.b32.xlu0 %v1769_v15, %s2776_s0  ;;  %v301_v56 = vmul.f32 %v3458_v1, %v3655_v17  ;;  %v375_v15 = vrot.slane %v369_v43, 2  ;;  %v376_v61 = vrot.slane %v370_v13, 2  ;;  %v442_v38 = vmul.f32 %v3436_v27, %v3680_v52 }
 0x1fa   : > { %v443_v17 = vmul.f32 %v3445_v36, %v3680_v52  ;;  %v378_v44 = vrot.slane %v371_v35, 2  ;;  %v1813_v11 = vrot.slane %v1807_v23, 2  ;;  %v1814_v45 = vrot.slane %v1808_v46, 2 }
 0x1fb   : > { %v3900_v4 = vpop.permute.xlu1 %1278  ;;  %v3902_v18 = vpop.permute.xlu0 %1297  ;;  %v366_v63 = vadd.f32 %v359_v60, %v301_v56  ;;  %v1816_v43 = vrot.slane %v3912_v33, 2  ;;  %v1833_v13 = vmul.f32 %v3433_v21, %v3751_v48  ;;  %v307_v60 = vmul.f32 %v3436_v27, %v3665_v55 }
 0x1fc   : > { %4597 = vst [vmem:[#allocation87_spill] sm:$0xff] %v3900_v4  ;;  %v308_v35 = vmul.f32 %v3445_v36, %v3665_v55  ;;  %v448_v23 = vrot.slane %v442_v38, 4  ;;  %v309_v46 = vmul.f32 %v3480_v57, %v3665_v55  ;;  %v1832_v33 = vmul.f32 %v3448_v30, %v3751_v48 }
 0x1fd   : > { %1774 = vrot.lane.b32.xlu1 %v1771_v37, %s2776_s0  ;;  %1793 = vrot.lane.b32.xlu0 %v1790_v54, %s2776_s0  ;;  %v1792_v37 = vsel %vm321_vm4, %v1789_v8, %v1791_v2  ;;  %v444_v54 = vmul.f32 %v3480_v57, %v3680_v52  ;;  %v377_v8 = vsel %vm321_vm4, %v375_v15, %v376_v61  ;;  %v449_v56 = vrot.slane %v443_v17, 4 }
 0x1fe   : > { %v379_v0 = vsel %vm321_vm4, %v376_v61, %v378_v44  ;;  %v1853_v15 = vmul.f32 %v3436_v27, %v1852_v7  ;;  %v1815_v38 = vsel %vm321_vm4, %v1813_v11, %v1814_v45  ;;  %v1817_v55 = vsel %vm321_vm4, %v1814_v45, %v1816_v43 }
 0x1ff   : > { %v3930_v62 = vpop.permute.xlu1 %1299  ;;  %v3932_v16 = vpop.permute.xlu0 %1301  ;;  %v1854_v3 = vmul.f32 %v3445_v36, %v1852_v7  ;;  %v3966_v17 = vadd.f32 %v433_v42, %v365_v58  ;;  %v383_v61 = vadd.f32 %v377_v8, %v307_v60  ;;  %v451_v12 = vrot.slane %v444_v54, 4 }
 0x200   : > { %v4600_v11 = vrot.slane %v3861_v10, 4  ;;  %v450_v58 = vsel %vm394_vm5, %v448_v23, %v449_v56  ;;  %v1855_v54 = vmul.f32 %v3480_v57, %v1852_v7  ;;  %v3994_v7 = vadd.f32 %v3197_v14, %v3794_v6 }
 0x201   : > { %1795 = vrot.lane.b32.xlu1 %v1792_v37, %s2776_s0  ;;  %1797 = vrot.lane.b32.xlu0 %v1791_v2, %s2776_s0  ;;  %v1834_v2 = vmul.f32 %v3458_v1, %v3751_v48  ;;  %v1839_v37 = vrot.slane %v1833_v13, 4  ;;  %v1873_v48 = vstv %s3921_s5  ;;  %v384_v13 = vadd.f32 %v379_v0, %v308_v35  ;;  %s2421_s5 = sshll.u32 %s2917_s3, 4 }
 0x202   : > { %v3975_v45 = vadd.f32 %v4600_v11, %v366_v63  ;;  %v3984_v8 = vmul.f32 %v3433_v21, %v1873_v48  ;;  %v1859_v63 = vrot.slane %v1853_v15, 4  ;;  %v1860_v11 = vrot.slane %v1854_v3, 4 }
 0x203   : > { %v3954_v4 = vpop.permute.xlu1 %1322  ;;  %v3956_v52 = vpop.permute.xlu0 %1324  ;;  %v1841_v10 = vrot.slane %v1834_v2, 4  ;;  %v456_v0 = vadd.f32 %v450_v58, %v383_v61  ;;  %v1874_v35 = vmul.f32 %v3448_v30, %v1873_v48  ;;  %v3998_v23 = vadd.f32 %v3203_v24, %v3796_v31 }
 0x204   : > { %4598 = vst [vmem:[#allocation88_spill] sm:$0xff] %v3954_v4  ;;  %4599 = vst [vmem:[#allocation89_spill] sm:$0xff] %v3956_v52  ;;  %v385_v52 = vadd.f32 %v378_v44, %v309_v46  ;;  %v1838_v4 = vrot.slane %v1832_v33, 4  ;;  %v452_v44 = vsel %vm394_vm5, %v449_v56, %v451_v12  ;;  %v1881_v56 = vrot.slane %v3984_v8, 4 }
 0x205   : > { %1818 = vrot.lane.b32.xlu1 %v1815_v38, %s2776_s0  ;;  %1820 = vrot.lane.b32.xlu0 %v1817_v55, %s2776_s0  ;;  %v1898_v38 = vstv %s3934_s15  ;;  %v1876_v2 = vmul.f32 %v3458_v1, %v1873_v48  ;;  %v1842_v24 = vsel %vm394_vm5, %v1839_v37, %v1841_v10  ;;  %v1861_v6 = vsel %vm394_vm5, %v1859_v63, %v1860_v11  ;;  %s2531_s15 = sshll.u32 %s2756_s12, 8 }
 0x206   : > { %v1840_v55 = vsel %vm394_vm5, %v1838_v4, %v1839_v37  ;;  %v457_v4 = vadd.f32 %v452_v44, %v384_v13  ;;  %v458_v46 = vadd.f32 %v451_v12, %v385_v52  ;;  %v1899_v14 = vmul.f32 %v3436_v27, %v1898_v38 }
 0x207   : > { %v3978_v42 = vpop.permute.xlu1 %1326  ;;  %v3980_v60 = vpop.permute.xlu0 %1347  ;;  %v1900_v31 = vmul.f32 %v3445_v36, %v1898_v38  ;;  %v4013_v12 = vmul.f32 %v3480_v57, %v1898_v38  ;;  %v4017_v52 = vadd.f32 %v3205_v25, %v3873_v28  ;;  %v1880_v15 = vrot.slane %v1874_v35, 4 }
 0x208   : > { %v1923_v61 = vstv %s3964_s26  ;;  %v1944_v48 = vstv %s3971_s20  ;;  %v4027_v37 = vadd.f32 %v3217_v9, %v3885_v20  ;;  %v539_v13 = vadd.f32 %v3219_v29, %v3914_v41  ;;  %s192_s26 = scalar_lea.vmem [#allocation11], %s2421_s5 }
 0x209   : > { %1822 = vrot.lane.b32.xlu1 %v1816_v43, %s2776_s0  ;;  %1843 = vrot.lane.b32.xlu0 %v1840_v55, %s2776_s0  ;;  %v1862_v43 = vrot.slane %v1855_v54, 4  ;;  %v1925_v58 = vmul.f32 %v3433_v21, %v1923_v61  ;;  %v1926_v25 = vmul.f32 %v3458_v1, %v1923_v61  ;;  %v1882_v38 = vsel %vm394_vm5, %v1880_v15, %v1881_v56  ;;  %s2314_s20 = sshll.u32 %s192_s26, 4  ;;  %s4449_s20 = int_to_ptr.vmem [resolvable:$true] %s2314_s20 }
 0x20a   : > { %v1883_v55 = vrot.slane %v1876_v2, 4  ;;  %v1905_v10 = vrot.slane %v1899_v14, 4  ;;  %v1906_v9 = vrot.slane %v1900_v31, 4  ;;  %v1908_v20 = vrot.slane %v4013_v12, 4  ;;  %s2680_s12 = scalar_lea.vmem %s4449_s20, 256 }
 0x20b   : > { %v4000_v3 = vpop.permute.xlu1 %1349  ;;  %v4002_v33 = vpop.permute.xlu0 %1368  ;;  %v1863_v8 = vsel %vm394_vm5, %v1860_v11, %v1862_v43  ;;  %v1924_v29 = vmul.f32 %v3448_v30, %v1923_v61  ;;  %v1945_v21 = vmul.f32 %v3436_v27, %v1944_v48  ;;  %v540_v41 = vadd.f32 %v3230_v39, %v3966_v17  ;;  %p2681_p3 = scmp.ne.s32.totalorder %s4449_s20, %s2680_s12 }
 0x20c   : > { %v1946_v63 = vmul.f32 %v3445_v36, %v1944_v48  ;;  %v1947_v11 = vmul.f32 %v3480_v57, %v1944_v48  ;;  %v541_v44 = vadd.f32 %v3232_v40, %v3975_v45  ;;  %v559_v27 = vadd.f32 %v3243_v47, %v456_v0 }
 0x20d   : > { %1845 = vrot.lane.b32.xlu1 %v1842_v24, %s2776_s0  ;;  %1864 = vrot.lane.b32.xlu0 %v1861_v6, %s2776_s0  ;;  %v1931_v35 = vrot.slane %v1925_v58, 6  ;;  %v1933_v43 = vrot.slane %v1926_v25, 6  ;;  %v4058_v39 = vadd.f32 %v3245_v51, %v457_v4  ;;  %v561_v17 = vadd.f32 %v3252_v53, %v458_v46  ;;  %v4086_v58 = vld [vmem:[#allocation4 + $0x8] sm:$0xff]  ;;  %p2682_p12 = pnand %p2681_p3, %p4678_p7 }
 0x20e   : > { %v1884_v14 = vsel %vm394_vm5, %v1881_v56, %v1883_v55  ;;  %v1993_v24 = vstv %s4007_s27  ;;  %v1907_v6 = vsel %vm394_vm5, %v1905_v10, %v1906_v9  ;;  %v1909_v40 = vsel %vm394_vm5, %v1906_v9, %v1908_v20 }
 0x20f   : > { %v4033_v28 = vpop.permute.xlu1 %1370  ;;  %v4035_v54 = vpop.permute.xlu0 %1382  ;;  %v1930_v47 = vrot.slane %v1924_v29, 6  ;;  %v1951_v45 = vrot.slane %v1945_v21, 6  ;;  %v628_v51 = vadd.f32 %v3300_v34, %v541_v44  ;;  %v1952_v53 = vrot.slane %v1946_v63, 6  ;;  %v4107_v29 = vld [vmem:[#allocation5 + $0x8] sm:$0xff]  ;;  %p2683_p2 = pneg %p2682_p12 }
 0x210   : > { %v1954_v0 = vrot.slane %v1947_v11, 6  ;;  %v2013_v4 = vstv %s4023_s23  ;;  %v653_v46 = vadd.f32 %v3309_v49, %v561_v17  ;;  %v1934_v31 = vsel %vm467_vm6, %v1931_v35, %v1933_v43  ;;  %v4117_v63 = vld [vmem:[#allocation4] sm:$0xff] }
 0x211   : > { %1866 = vrot.lane.b32.xlu1 %v1863_v8, %s2776_s0  ;;  %1885 = vrot.lane.b32.xlu0 %v1882_v38, %s2776_s0  ;;  %v1932_v56 = vsel %vm467_vm6, %v1930_v47, %v1931_v35  ;;  %v4079_v15 = vmul.f32 %v3448_v30, %v1993_v24  ;;  %v720_v34 = vadd.f32 %v3311_v50, %v628_v51  ;;  %v1965_v8 = vstv %s4039_s30  ;;  %v4602_v47 = vld [vmem:[#allocation30_spill] sm:$0xff]  ;;  %v4604_v51 = vld [vmem:[#allocation29_spill] sm:$0xff]  ;;  %s4447_s30 = scalar_lea.hbm %s4500_s2, %s2531_s15 }
 0x212   : > { %v4089_v25 = vmul.f32 %v4086_v58, %v1993_v24  ;;  %v4092_v49 = vmul.f32 %v3458_v1, %v1993_v24  ;;  %v745_v38 = vadd.f32 %v3318_v59, %v653_v46  ;;  %v626_v30 = vadd.f32 %v3361_v26, %v539_v13 }
 0x213   : > { %v4061_v2 = vpop.permute.xlu1 %1384  ;;  %v4063_v36 = vpop.permute.xlu0 %1396  ;;  %v1979_v10 = vstv %s4044_s24  ;;  %v1953_v9 = vsel %vm467_vm6, %v1951_v45, %v1952_v53  ;;  %v1955_v1 = vsel %vm467_vm6, %v1952_v53, %v1954_v0  ;;  %v4110_v59 = vmul.f32 %v4107_v29, %v2013_v4  ;;  %v4605_v0 = vld [vmem:[#allocation33_spill] sm:$0xff]  ;;  %s2301_s24 = scalar_lea.sflag [#allocation8], %s2917_s3 }
 0x214   : > { %v2075_v26 = vstv %s4052_s4  ;;  %v718_v13 = vadd.f32 %v3403_v22, %v626_v30  ;;  %v4115_v21 = vmul.f32 %v3480_v57, %v2013_v4  ;;  %v4120_v11 = vmul.f32 %v4117_v63, %v1965_v8  ;;  %s2778_s4 = smov [#allocation11]  }
 0x215   : > { %1887 = vrot.lane.b32.xlu1 %v1884_v14, %s2776_s0  ;;  %1889 = vrot.lane.b32.xlu0 %v1883_v55, %s2776_s0  ;;  %v4097_v55 = vld [vmem:[#allocation5] sm:$0xff]  ;;  %v4123_v44 = vmul.f32 %v4086_v58, %v1965_v8  ;;  %v835_v35 = vadd.f32 %v3279_v19, %v720_v34  ;;  %v581_v43 = vadd.f32 %v3340_v5, %v3994_v7  ;;  %v4608_v34 = vld [vmem:[#allocation37_spill] sm:$0xff] }
 0x216   : > { %v4100_v50 = vmul.f32 %v4097_v55, %v2013_v4  ;;  %v4133_v57 = vmul.f32 %v4097_v55, %v1979_v10  ;;  %v4136_v22 = vmul.f32 %v4107_v29, %v1979_v10  ;;  %v855_v24 = vadd.f32 %v3298_v32, %v745_v38  ;;  %v4603_v5 = vld [vmem:[#allocation28_spill] sm:$0xff]  ;;  %v4609_v38 = vld [vmem:[#allocation19_spill] sm:$0xff] }
 0x217   : > { %v4082_v61 = vpop.permute.xlu1 %1398  ;;  %v4084_v48 = vpop.permute.xlu0 %1412  ;;  %v627_v19 = vadd.f32 %v4602_v47, %v540_v41  ;;  %v4143_v45 = vmul.f32 %v4117_v63, %v2075_v26  ;;  %v602_v7 = vadd.f32 %v4603_v5, %v4017_v52  ;;  %v603_v53 = vadd.f32 %v4604_v51, %v4027_v37  ;;  %v4606_v32 = vld [vmem:[#allocation32_spill] sm:$0xff]  ;;  %v4607_v41 = vld [vmem:[#allocation34_spill] sm:$0xff]  ;;  %v4610_v52 = vld [vmem:[#allocation23_spill] sm:$0xff] }
 0x218   : > { %v673_v4 = vadd.f32 %v4605_v0, %v581_v43  ;;  %v833_v30 = vadd.f32 %v4609_v38, %v718_v13  ;;  %v922_v10 = vadd.f32 %v4610_v52, %v835_v35  ;;  %v4612_v47 = vld [vmem:[#allocation36_spill] sm:$0xff] }
 0x219   : > { %1910 = vrot.lane.b32.xlu1 %v1907_v6, %s2776_s0  ;;  %1912 = vrot.lane.b32.xlu0 %v1909_v40, %s2776_s0  ;;  %v4601_v6 = vld [vmem:[#allocation27_spill] sm:$0xff]  ;;  %v719_v8 = vadd.f32 %v4608_v34, %v627_v19  ;;  %v695_v43 = vadd.f32 %v4612_v47, %v603_v53  ;;  %v4613_v5 = vld [vmem:[#allocation40_spill] sm:$0xff]  ;;  %v4616_v19 = vld [vmem:[#allocation41_spill] sm:$0xff] }
 0x21a   : > { %v582_v40 = vadd.f32 %v4601_v6, %v3998_v23  ;;  %v651_v23 = vadd.f32 %v4606_v32, %v559_v27  ;;  %v4611_v6 = vld [vmem:[#allocation35_spill] sm:$0xff]  ;;  %v765_v51 = vadd.f32 %v4613_v5, %v673_v4  ;;  %v4617_v13 = vld [vmem:[#allocation48_spill] sm:$0xff]  ;;  %v4621_v4 = vld [vmem:[#allocation38_spill] sm:$0xff] }
 0x21b   : > { %v4128_v17 = vpop.permute.xlu1 %1414  ;;  %v4130_v14 = vpop.permute.xlu0 %1416  ;;  %v694_v37 = vadd.f32 %v4611_v6, %v602_v7  ;;  %v4614_v27 = vld [vmem:[#allocation31_spill] sm:$0xff]  ;;  %v4618_v35 = vld [vmem:[#allocation24_spill] sm:$0xff]  ;;  %v4619_v7 = vld [vmem:[#allocation42_spill] sm:$0xff] }
 0x21c   : > { %v674_v46 = vadd.f32 %v4607_v41, %v582_v40  ;;  %v4615_v40 = vld [vmem:[#allocation39_spill] sm:$0xff]  ;;  %v920_v41 = vadd.f32 %v4617_v13, %v833_v30  ;;  %v947_v34 = vadd.f32 %v4618_v35, %v855_v24  ;;  %v4622_v47 = vld [vmem:[#allocation20_spill] sm:$0xff]  ;;  %v4624_v30 = vld [vmem:[#allocation25_spill] sm:$0xff] }
 0x21d   : > { %1914 = vrot.lane.b32.xlu1 %v1908_v20, %s2776_s0  ;;  %1935 = vrot.lane.b32.xlu0 %v1932_v56, %s2776_s0  ;;  %v652_v56 = vadd.f32 %v4614_v27, %v4058_v39  ;;  %v743_v0 = vadd.f32 %v4615_v40, %v651_v23  ;;  %v786_v38 = vadd.f32 %v4619_v7, %v694_v37  ;;  %v4620_v53 = vld [vmem:[#allocation43_spill] sm:$0xff]  ;;  %v4623_v5 = vld [vmem:[#allocation56_spill] sm:$0xff]  ;;  %v4625_v24 = vld [vmem:[#allocation26_spill] sm:$0xff] }
 0x21e   : > { %v766_v32 = vadd.f32 %v4616_v19, %v674_v46  ;;  %v787_v52 = vadd.f32 %v4620_v53, %v695_v43  ;;  %v834_v39 = vadd.f32 %v4622_v47, %v719_v8  ;;  %v1012_v23 = vadd.f32 %v4623_v5, %v920_v41  ;;  %v4626_v37 = vld [vmem:[#allocation15_spill] sm:$0xff]  ;;  %v4628_v8 = vld [vmem:[#allocation16_spill] sm:$0xff]  ;;  %v4629_v41 = vld [vmem:[#allocation49_spill] sm:$0xff] }
 0x21f   : > { %v4162_v12 = vpop.permute.xlu1 %1432  ;;  %v4164_v20 = vpop.permute.xlu0 %1434  ;;  %v744_v6 = vadd.f32 %v4621_v4, %v652_v56  ;;  %v4180_v46 = vmul.f32 %v4086_v58, %v2075_v26  ;;  %v1014_v27 = vadd.f32 %v4624_v30, %v922_v10  ;;  %v1039_v40 = vadd.f32 %v4625_v24, %v947_v34  ;;  %v4630_v7 = vld [vmem:[#allocation21_spill] sm:$0xff]  ;;  %v4631_v10 = vld [vmem:[#allocation68_spill] sm:$0xff]  ;;  %v4634_v30 = vld [vmem:[#allocation18_spill] sm:$0xff] }
 0x220   : > { %v800_v19 = vadd.f32 %v4626_v37, %v765_v51  ;;  %v801_v13 = vadd.f32 %v4628_v8, %v766_v32  ;;  %v921_v35 = vadd.f32 %v4629_v41, %v834_v39  ;;  %v853_v53 = vadd.f32 %v4630_v7, %v743_v0  ;;  %v4632_v34 = vld [vmem:[#allocation44_spill] sm:$0xff]  ;;  %v4633_v51 = vld [vmem:[#allocation17_spill] sm:$0xff]  ;;  %v4636_v37 = vld [vmem:[#allocation22_spill] sm:$0xff] }
 0x221   : > { %1937 = vrot.lane.b32.xlu1 %v1934_v31, %s2776_s0  ;;  %1956 = vrot.lane.b32.xlu0 %v1953_v9, %s2776_s0  ;;  %v4189_v9 = vld [vmem:[#allocation4 + $0x10] sm:$0x3f]  ;;  %v1127_v4 = vadd.f32 %v4631_v10, %v1012_v23  ;;  %v814_v5 = vadd.f32 %v4633_v51, %v786_v38  ;;  %v815_v24 = vadd.f32 %v4634_v30, %v787_v52  ;;  %v4637_v8 = vld [vmem:[#allocation57_spill] sm:$0xff]  ;;  %v4638_v41 = vld [vmem:[#allocation78_spill] sm:$0xff] }
 0x222   : > { %4627 = vst [vmem:[#allocation27_spill] sm:$0xff] %v4189_v9  ;;  %v4192_v56 = vmul.f32 %v4189_v9, %v2075_v26  ;;  %v875_v47 = vadd.f32 %v4632_v34, %v800_v19  ;;  %v4635_v26 = vld [vmem:[#allocation45_spill] sm:$0xff]  ;;  %v854_v39 = vadd.f32 %v4636_v37, %v744_v6  ;;  %v1013_v0 = vadd.f32 %v4637_v8, %v921_v35  ;;  %v4639_v7 = vld [vmem:[#allocation46_spill] sm:$0xff]  ;;  %v4640_v10 = vld [vmem:[#allocation47_spill] sm:$0xff] }
 0x223   : > { %v4185_v43 = vpop.permute.xlu1 %1436  ;;  %v4187_v31 = vpop.permute.xlu0 %1457  ;;  %v876_v32 = vadd.f32 %v4635_v26, %v801_v13  ;;  %v1214_v23 = vadd.f32 %v4638_v41, %v1127_v4  ;;  %v896_v19 = vadd.f32 %v4639_v7, %v814_v5  ;;  %v897_v38 = vadd.f32 %v4640_v10, %v815_v24  ;;  %v4641_v34 = vld [vmem:[#allocation51_spill] sm:$0xff]  ;;  %v4642_v51 = vld [vmem:[#allocation52_spill] sm:$0xff]  ;;  %v4644_v26 = vld [vmem:[#allocation69_spill] sm:$0xff] }
 0x224   : > { %v945_v52 = vadd.f32 %v4641_v34, %v853_v53  ;;  %v1128_v6 = vadd.f32 %v4644_v26, %v1013_v0  ;;  %v4645_v37 = vld [vmem:[#allocation70_spill] sm:$0xff]  ;;  %v4646_v8 = vld [vmem:[#allocation53_spill] sm:$0xff]  ;;  %v4647_v41 = vld [vmem:[#allocation59_spill] sm:$0xff] }
 0x225   : > { %1958 = vrot.lane.b32.xlu1 %v1955_v1, %s2776_s0  ;;  %2000 = vrot.lane.b32.xlu0 %v4079_v15, %s2777_s25  ;;  %v967_v1 = vadd.f32 %v4642_v51, %v875_v47  ;;  %v4643_v15 = vld [vmem:[#allocation50_spill] sm:$0xff]  ;;  %v1129_v35 = vadd.f32 %v4645_v37, %v1014_v27  ;;  %v1306_v4 = vadd.f32 %v3902_v18, %v1214_v23  ;;  %v4648_v7 = vld [vmem:[#allocation60_spill] sm:$0xff]  ;;  %v4650_v0 = vld [vmem:[#allocation79_spill] sm:$0xff]  ;;  %s2520_s0 = sld [smem:[#allocation6 + $0x53]] }
 0x226   : > { %v946_v13 = vadd.f32 %v4643_v15, %v854_v39  ;;  %v968_v5 = vadd.f32 %v4646_v8, %v876_v32  ;;  %v1037_v24 = vadd.f32 %v4647_v41, %v945_v52  ;;  %v4649_v47 = vld [vmem:[#allocation58_spill] sm:$0xff]  ;;  %v1215_v27 = vadd.f32 %v4650_v0, %v1128_v6  ;;  %v4651_v10 = vld [vmem:[#allocation80_spill] sm:$0xff]  ;;  %v4653_v52 = vld [vmem:[#allocation55_spill] sm:$0xff] }
 0x227   : > { %v4212_v30 = vpop.permute.xlu1 %1459  ;;  %v4214_v9 = vpop.permute.xlu0 %1478  ;;  %v1059_v53 = vadd.f32 %v4648_v7, %v967_v1  ;;  %v1216_v18 = vadd.f32 %v4651_v10, %v1129_v35  ;;  %v1421_v32 = vadd.f32 %v4084_v48, %v1306_v4  ;;  %v4652_v23 = vld [vmem:[#allocation54_spill] sm:$0xff]  ;;  %v989_v51 = vadd.f32 %v4653_v52, %v897_v38  ;;  %v4654_v1 = vld [vmem:[#allocation64_spill] sm:$0xff]  ;;  %v4657_v48 = vld [vmem:[#allocation61_spill] sm:$0xff] }
 0x228   : > { %v1038_v39 = vadd.f32 %v4649_v47, %v946_v13  ;;  %v988_v34 = vadd.f32 %v4652_v23, %v896_v19  ;;  %v4656_v8 = vld [vmem:[#allocation72_spill] sm:$0xff]  ;;  %v1307_v13 = vadd.f32 %v3930_v62, %v1215_v27  ;;  %v1060_v4 = vadd.f32 %v4657_v48, %v968_v5  ;;  %v4658_v19 = vld [vmem:[#allocation62_spill] sm:$0xff]  ;;  %v4662_v27 = vld [vmem:[#allocation65_spill] sm:$0xff] }
 0x229   : > { %2002 = vrot.lane.b32.xlu1 %v4089_v25, %s2777_s25  ;;  %2004 = vrot.lane.b32.xlu0 %v4092_v49, %s2777_s25  ;;  %v1094_v15 = vadd.f32 %v4654_v1, %v1059_v53  ;;  %v4655_v25 = vld [vmem:[#allocation71_spill] sm:$0xff]  ;;  %v1308_v6 = vadd.f32 %v3932_v16, %v1216_v18  ;;  %v4659_v38 = vld [vmem:[#allocation74_spill] sm:$0xff] }
 0x22a   : > { %v1147_v26 = vadd.f32 %v4655_v25, %v1037_v24  ;;  %v1148_v41 = vadd.f32 %v4656_v8, %v1038_v39  ;;  %v1080_v7 = vadd.f32 %v4658_v19, %v988_v34  ;;  %v4660_v24 = vld [vmem:[#allocation81_spill] sm:$0xff]  ;;  %v4661_v39 = vld [vmem:[#allocation82_spill] sm:$0xff]  ;;  %v1422_v16 = vadd.f32 %v4128_v17, %v1307_v13  ;;  %v4665_v34 = vld [vmem:[#allocation84_spill] sm:$0xff] }
 0x22b   : > { %v4237_v37 = vpop.permute.xlu1 %1480  ;;  %v1500_v49 = vpop.permute.xlu0 %1499  ;;  %v1169_v47 = vadd.f32 %v4659_v38, %v1094_v15  ;;  %v1423_v0 = vadd.f32 %v4130_v14, %v1308_v6  ;;  %v1095_v5 = vadd.f32 %v4662_v27, %v1060_v4  ;;  %v4663_v10 = vld [vmem:[#allocation66_spill] sm:$0xff]  ;;  %v4667_v25 = vld [vmem:[#allocation89_spill] sm:$0xff]  ;;  %v4668_v14 = vld [vmem:[#allocation63_spill] sm:$0xff] }
 0x22c   : > { %v4242_v35 = vadd.f32 %v1500_v49, %v1421_v32  ;;  %v1239_v53 = vadd.f32 %v4660_v24, %v1147_v26  ;;  %v1240_v62 = vadd.f32 %v4661_v39, %v1148_v41  ;;  %v1108_v18 = vadd.f32 %v4663_v10, %v1080_v7  ;;  %v4664_v32 = vld [vmem:[#allocation73_spill] sm:$0xff]  ;;  %v4669_v41 = vld [vmem:[#allocation75_spill] sm:$0xff]  ;;  %v4670_v6 = vld [vmem:[#allocation76_spill] sm:$0xff] }
 0x22d   : > { %2020 = vrot.lane.b32.xlu1 %v4100_v50, %s2777_s25  ;;  %2022 = vrot.lane.b32.xlu0 %v4110_v59, %s2777_s25  ;;  %v1149_v23 = vadd.f32 %v4664_v32, %v1039_v40  ;;  %v1261_v50 = vadd.f32 %v4665_v34, %v1169_v47  ;;  %v4666_v59 = vld [vmem:[#allocation88_spill] sm:$0xff]  ;;  %v1081_v8 = vadd.f32 %v4668_v14, %v989_v51  ;;  %v2100_v40 = vstv %s4227_s17  ;;  %v4671_v4 = vld [vmem:[#allocation83_spill] sm:$0xff]  ;;  %v4674_v39 = vld [vmem:[#allocation86_spill] sm:$0xff] }
 0x22e   : > { %v1331_v15 = vadd.f32 %v4666_v59, %v1239_v53  ;;  %v1332_v26 = vadd.f32 %v4667_v25, %v1240_v62  ;;  %v1170_v13 = vadd.f32 %v4669_v41, %v1095_v5  ;;  %v1190_v48 = vadd.f32 %v4670_v6, %v1108_v18  ;;  %v4672_v47 = vld [vmem:[#allocation67_spill] sm:$0xff]  ;;  %v4673_v53 = vld [vmem:[#allocation85_spill] sm:$0xff]  ;;  %v4306_v59 = vld [vmem:[#allocation5 + $0x10] sm:$0x3f] }
 0x22f   : > { %v1502_v52 = vpop.permute.xlu1 %1501  ;;  %v1504_v1 = vpop.permute.xlu0 %1503  ;;  %v1241_v19 = vadd.f32 %v4671_v4, %v1149_v23  ;;  %v1353_v7 = vadd.f32 %v3980_v60, %v1261_v50  ;;  %v1109_v24 = vadd.f32 %v4672_v47, %v1081_v8  ;;  %v2082_v18 = vrot.slane %v4143_v45, 2  ;;  %v4676_v50 = vld [vmem:[#allocation87_spill] sm:$0xff] }
 0x230   : > { %v4261_v49 = vadd.f32 %v1502_v52, %v1422_v16  ;;  %v4263_v17 = vadd.f32 %v1504_v1, %v1423_v0  ;;  %v1441_v38 = vadd.f32 %v4162_v12, %v1331_v15  ;;  %v1442_v51 = vadd.f32 %v4164_v20, %v1332_v26  ;;  %v4675_v20 = vld [vmem:[#allocation77_spill] sm:$0xff] }
 0x231   : > { %2024 = vrot.lane.b32.xlu1 %v4115_v21, %s2777_s25  ;;  %1970 = vrot.lane.b32.xlu0 %v4120_v11, %s2777_s25  ;;  %v1262_v21 = vadd.f32 %v4673_v53, %v1170_v13  ;;  %v1282_v62 = vadd.f32 %v4674_v39, %v1190_v48  ;;  %v2083_v0 = vrot.slane %v4180_v46, 2  ;;  %v1333_v27 = vadd.f32 %v3978_v42, %v1241_v19  ;;  %v4677_v19 = vld [vmem:[#allocation27_spill] sm:$0xff] }
 0x232   : > { %v1388_v60 = vadd.f32 %v4035_v54, %v1353_v7  ;;  %v1191_v10 = vadd.f32 %v4675_v20, %v1109_v24  ;;  %v2101_v46 = vmul.f32 %v4097_v55, %v2100_v40  ;;  %v2102_v42 = vmul.f32 %v4107_v29, %v2100_v40 }
 0x233   : > { %v1525_v11 = vpop.permute.xlu1 %1524  ;;  %v1527_v16 = vpop.permute.xlu0 %1526  ;;  %v1354_v54 = vadd.f32 %v4000_v3, %v1262_v21  ;;  %v1374_v32 = vadd.f32 %v4002_v33, %v1282_v62  ;;  %v1443_v23 = vadd.f32 %v4185_v43, %v1333_v27  ;;  %v2084_v45 = vsel %vm321_vm4, %v2082_v18, %v2083_v0 }
 0x234   : > { %v4287_v5 = vadd.f32 %v1525_v11, %v1441_v38  ;;  %v4289_v12 = vadd.f32 %v1527_v16, %v1442_v51  ;;  %v1463_v34 = vadd.f32 %v4187_v31, %v1388_v60  ;;  %v2085_v1 = vrot.slane %v4192_v56, 2 }
 0x235   : > { %1972 = vrot.lane.b32.xlu1 %v4123_v44, %s2777_s25  ;;  %1984 = vrot.lane.b32.xlu0 %v4133_v57, %s2777_s25  ;;  %v1283_v44 = vadd.f32 %v4676_v50, %v1191_v10  ;;  %v2103_v3 = vmul.f32 %v4306_v59, %v2100_v40  ;;  %v1389_v33 = vadd.f32 %v4061_v2, %v1354_v54  ;;  %v2033_v25 = vstv %s4273_s19 }
 0x236   : > { %v1402_v15 = vadd.f32 %v4063_v36, %v1374_v32  ;;  %v2054_v8 = vstv %s4279_s7  ;;  %v2086_v36 = vsel %vm321_vm4, %v2083_v0, %v2085_v1  ;;  %v2107_v13 = vrot.slane %v2101_v46, 2 }
 0x237   : > { %v1529_v52 = vpop.permute.xlu1 %1528  ;;  %v1550_v57 = vpop.permute.xlu0 %1549  ;;  %v1375_v56 = vadd.f32 %v4033_v28, %v1283_v44  ;;  %v1464_v26 = vadd.f32 %v4212_v30, %v1389_v33  ;;  %v2108_v6 = vrot.slane %v2102_v42, 2  ;;  %v2035_v48 = vmul.f32 %v4086_v58, %v2033_v25 }
 0x238   : > { %v4311_v43 = vadd.f32 %v1529_v52, %v1443_v23  ;;  %v4313_v31 = vadd.f32 %v1550_v57, %v1463_v34  ;;  %v1484_v14 = vadd.f32 %v4214_v9, %v1402_v15  ;;  %v2110_v28 = vrot.slane %v2103_v3, 2 }
 0x239   : > { %1986 = vrot.lane.b32.xlu1 %v4136_v22, %s2777_s25  ;;  %2087 = vrot.lane.b32.xlu0 %v2084_v45, %s2777_s25  ;;  %v1403_v22 = vadd.f32 %v4082_v61, %v1375_v56  ;;  %v2034_v30 = vmul.f32 %v4117_v63, %v2033_v25  ;;  %v2036_v7 = vmul.f32 %v4677_v19, %v2033_v25  ;;  %v2041_v47 = vrot.slane %v2035_v48, 2 }
 0x23a   : > { %v2055_v61 = vmul.f32 %v4097_v55, %v2054_v8  ;;  %v2056_v24 = vmul.f32 %v4107_v29, %v2054_v8  ;;  %v2109_v39 = vsel %vm321_vm4, %v2107_v13, %v2108_v6  ;;  %v2057_v20 = vmul.f32 %v4306_v59, %v2054_v8 }
 0x23b   : > { %v1552_v2 = vpop.permute.xlu1 %1551  ;;  %v1571_v41 = vpop.permute.xlu0 %1570  ;;  %v1485_v9 = vadd.f32 %v4237_v37, %v1403_v22  ;;  %v2111_v37 = vsel %vm321_vm4, %v2108_v6, %v2110_v28  ;;  %v2040_v62 = vrot.slane %v2034_v30, 2  ;;  %v2043_v11 = vrot.slane %v2036_v7, 2 }
 0x23c   : > { %v4326_v40 = vadd.f32 %v1552_v2, %v1464_v26  ;;  %v4328_v4 = vadd.f32 %v1571_v41, %v1484_v14  ;;  %v2061_v27 = vrot.slane %v2055_v61, 2  ;;  %v2062_v60 = vrot.slane %v2056_v24, 2 }
 0x23d   : > { %2089 = vrot.lane.b32.xlu1 %v2086_v36, %s2777_s25  ;;  %2091 = vrot.lane.b32.xlu0 %v2085_v1, %s2777_s25  ;;  %v2167_v10 = vstv %s2521_s6  ;;  %v2042_v46 = vsel %vm321_vm4, %v2040_v62, %v2041_v47  ;;  %v2044_v34 = vsel %vm321_vm4, %v2041_v47, %v2043_v11  ;;  %v2064_v50 = vrot.slane %v2057_v20, 2 }
 0x23e   : > { %v2169_v42 = vmul.f32 %v4086_v58, %v2167_v10  ;;  %v2168_v54 = vmul.f32 %v4117_v63, %v2167_v10  ;;  %v2192_v45 = vstv %s2522_s8  ;;  %v2125_v2 = vstv %s2519_s18 }
 0x23f   : > { %v1573_v38 = vpop.permute.xlu1 %1572  ;;  %v1592_v51 = vpop.permute.xlu0 %1591  ;;  %v2065_v15 = vsel %vm321_vm4, %v2062_v60, %v2064_v50  ;;  %v2193_v56 = vmul.f32 %v4097_v55, %v2192_v45  ;;  %v2195_v8 = vmul.f32 %v4306_v59, %v2192_v45  ;;  %v2126_v30 = vmul.f32 %v4117_v63, %v2125_v2 }
 0x240   : > { %v4337_v53 = vadd.f32 %v1573_v38, %v1485_v9  ;;  %v4340_v21 = vadd.f32 %v1592_v51, %v4242_v35  ;;  %v2175_v57 = vrot.slane %v2169_v42, 4  ;;  %v2174_v1 = vrot.slane %v2168_v54, 4 }
 0x241   : > { %2112 = vrot.lane.b32.xlu1 %v2109_v39, %s2777_s25  ;;  %2114 = vrot.lane.b32.xlu0 %v2111_v37, %s2777_s25  ;;  %v2199_v6 = vrot.slane %v2193_v56, 4  ;;  %v2146_v9 = vstv %s2520_s0  ;;  %v2128_v7 = vmul.f32 %v4677_v19, %v2125_v2  ;;  %v2132_v62 = vrot.slane %v2126_v30, 4 }
 0x242   : > { %v2176_v14 = vsel %vm394_vm5, %v2174_v1, %v2175_v57  ;;  %v2147_v61 = vmul.f32 %v4097_v55, %v2146_v9 }
 0x243   : > { %v1594_v16 = vpop.permute.xlu1 %1593  ;;  %v1596_v0 = vpop.permute.xlu0 %1595  ;;  %v2135_v11 = vrot.slane %v2128_v7, 4 }
 0x244   : > { %v4348_v35 = vadd.f32 %v1594_v16, %v4261_v49  ;;  %v4351_v18 = vadd.f32 %v1596_v0, %v4263_v17  ;;  %v2063_v49 = vsel %vm321_vm4, %v2061_v27, %v2062_v60  ;;  %v2170_v17 = vmul.f32 %v4677_v19, %v2167_v10 }
 0x245   : > { %2116 = vrot.lane.b32.xlu1 %v2110_v28, %s2777_s25  ;;  %2045 = vrot.lane.b32.xlu0 %v2042_v46, %s2777_s25  ;;  %v2202_v28 = vrot.slane %v2195_v8, 4  ;;  %v2217_v16 = vstv %s2523_s1  ;;  %v2153_v60 = vrot.slane %v2147_v61, 4  ;;  %v2149_v10 = vmul.f32 %v4306_v59, %v2146_v9 }
 0x246   : > { %v2177_v25 = vrot.slane %v2170_v17, 4 }
 0x247   : > { %v1617_v32 = vpop.permute.xlu1 %1616  ;;  %v1619_v23 = vpop.permute.xlu0 %1618 }
 0x248   : > { %v4362_v44 = vadd.f32 %v1617_v32, %v4287_v5  ;;  %v4365_v52 = vadd.f32 %v1619_v23, %v4289_v12  ;;  %v2194_v5 = vmul.f32 %v4107_v29, %v2192_v45  ;;  %v2178_v13 = vsel %vm394_vm5, %v2175_v57, %v2177_v25 }
 0x249   : > { %2047 = vrot.lane.b32.xlu1 %v2044_v34, %s2777_s25  ;;  %2066 = vrot.lane.b32.xlu0 %v2063_v49, %s2777_s25  ;;  %v2218_v32 = vmul.f32 %v4117_v63, %v2217_v16  ;;  %v2238_v23 = vstv %s2524_s16  ;;  %v2156_v57 = vrot.slane %v2149_v10, 4 }
 0x24a   : > { %v2200_v48 = vrot.slane %v2194_v5, 4 }
 0x24b   : > { %v1621_v3 = vpop.permute.xlu1 %1620  ;;  %v1642_v33 = vpop.permute.xlu0 %1641  ;;  %v2224_v63 = vrot.slane %v2218_v32, 6 }
 0x24c   : > { %v4373_v12 = vadd.f32 %v1621_v3, %v4311_v43  ;;  %v1647_v26 = vadd.f32 %v1642_v33, %v4313_v31  ;;  %v2127_v43 = vmul.f32 %v4086_v58, %v2125_v2  ;;  %v2201_v39 = vsel %vm394_vm5, %v2199_v6, %v2200_v48 }
 0x24d   : > { %2068 = vrot.lane.b32.xlu1 %v2065_v15, %s2777_s25  ;;  %2179 = vrot.lane.b32.xlu0 %v2176_v14, %s2777_s25  ;;  %v2203_v37 = vsel %vm394_vm5, %v2200_v48, %v2202_v28  ;;  %v2239_v33 = vmul.f32 %v4097_v55, %v2238_v23  ;;  %v2240_v15 = vmul.f32 %v4107_v29, %v2238_v23 }
 0x24e   : > { %v2133_v47 = vrot.slane %v2127_v43, 4 }
 0x24f   : > { %v1644_v41 = vpop.permute.xlu1 %1643  ;;  %v1663_v36 = vpop.permute.xlu0 %1662  ;;  %v2245_v8 = vrot.slane %v2239_v33, 6 }
 0x250   : > { %v1648_v31 = vadd.f32 %v1644_v41, %v4326_v40  ;;  %v1668_v22 = vadd.f32 %v1663_v36, %v4328_v4  ;;  %v2148_v40 = vmul.f32 %v4107_v29, %v2146_v9  ;;  %v2134_v54 = vsel %vm394_vm5, %v2132_v62, %v2133_v47 }
 0x251   : > { %2181 = vrot.lane.b32.xlu1 %v2178_v13, %s2777_s25  ;;  %2183 = vrot.lane.b32.xlu0 %v2177_v25, %s2777_s25  ;;  %v2136_v34 = vsel %vm394_vm5, %v2133_v47, %v2135_v11  ;;  %v2246_v29 = vrot.slane %v2240_v15, 6 }
 0x252   : > { %v2154_v20 = vrot.slane %v2148_v40, 4 }
 0x253   : > { %v1665_v38 = vpop.permute.xlu1 %1664  ;;  %v1677_v51 = vpop.permute.xlu0 %1676 }
 0x254   : > { %v1669_v4 = vadd.f32 %v1665_v38, %v4337_v53  ;;  %v1682_v24 = vadd.f32 %v1677_v51, %v1647_v26  ;;  %v2219_v53 = vmul.f32 %v4086_v58, %v2217_v16  ;;  %v2155_v17 = vsel %vm394_vm5, %v2153_v60, %v2154_v20 }
 0x255   : > { %2204 = vrot.lane.b32.xlu1 %v2201_v39, %s2777_s25  ;;  %2206 = vrot.lane.b32.xlu0 %v2203_v37, %s2777_s25  ;;  %v2220_v58 = vmul.f32 %v4677_v19, %v2217_v16  ;;  %v2157_v5 = vsel %vm394_vm5, %v2154_v20, %v2156_v57  ;;  %v2241_v19 = vmul.f32 %v4306_v59, %v2238_v23 }
 0x256   : > { %v2225_v45 = vrot.slane %v2219_v53, 6  ;;  %v2247_v59 = vsel %vm467_vm6, %v2245_v8, %v2246_v29 }
 0x257   : > { %v1679_v0 = vpop.permute.xlu1 %1678  ;;  %v1691_v27 = vpop.permute.xlu0 %1690  ;;  %v2227_v14 = vrot.slane %v2220_v58, 6  ;;  %v2248_v48 = vrot.slane %v2241_v19, 6 }
 0x258   : > { %v1683_v46 = vadd.f32 %v1679_v0, %v1648_v31  ;;  %v1696_v42 = vadd.f32 %v1691_v27, %v1668_v22  ;;  %v2226_v26 = vsel %vm467_vm6, %v2224_v63, %v2225_v45 }
 0x259   : > { %2208 = vrot.lane.b32.xlu1 %v2202_v28, %s2777_s25  ;;  %2137 = vrot.lane.b32.xlu0 %v2134_v54, %s2777_s25  ;;  %v2228_v36 = vsel %vm467_vm6, %v2225_v45, %v2227_v14  ;;  %v2249_v22 = vsel %vm467_vm6, %v2246_v29, %v2248_v48 }
 0x25b   : > { %v1693_v49 = vpop.permute.xlu1 %1692  ;;  %v1707_v50 = vpop.permute.xlu0 %1706 }
 0x25c   : > { %v1697_v1 = vadd.f32 %v1693_v49, %v1669_v4  ;;  %v1715_v3 = vadd.f32 %v1707_v50, %v4340_v21 }
 0x25d   : > { %2139 = vrot.lane.b32.xlu1 %v2136_v34, %s2777_s25  ;;  %2158 = vrot.lane.b32.xlu0 %v2155_v17, %s2777_s25 }
 0x25f   : > { %v1709_v25 = vpop.permute.xlu1 %1708  ;;  %v1711_v56 = vpop.permute.xlu0 %1710 }
 0x260   : > { %v1716_v21 = vadd.f32 %v1709_v25, %v4348_v35  ;;  %v1717_v55 = vadd.f32 %v1711_v56, %v4351_v18 }
 0x261   : > { %2160 = vrot.lane.b32.xlu1 %v2157_v5, %s2777_s25  ;;  %2229 = vrot.lane.b32.xlu0 %v2226_v26, %s2777_s25 }
 0x263   : > { %v1727_v2 = vpop.permute.xlu1 %1726  ;;  %v1729_v41 = vpop.permute.xlu0 %1728 }
 0x264   : > { %v1735_v13 = vadd.f32 %v1727_v2, %v4362_v44  ;;  %v1736_v6 = vadd.f32 %v1729_v41, %v4365_v52 }
 0x265   : > { %2231 = vrot.lane.b32.xlu1 %v2228_v36, %s2777_s25  ;;  %2250 = vrot.lane.b32.xlu0 %v2247_v59, %s2777_s25 }
 0x267   : > { %v1731_v35 = vpop.permute.xlu1 %1730  ;;  %v1752_v18 = vpop.permute.xlu0 %1751 }
 0x268   : > { %v1737_v43 = vadd.f32 %v1731_v35, %v4373_v12  ;;  %v1757_v31 = vadd.f32 %v1752_v18, %v1682_v24 }
 0x269   : > { %2252 = vrot.lane.b32.xlu1 %v2249_v22, %s2777_s25  ;;  %s2684_s25 = sshll.u32 %s2778_s4, 4  ;;  %s2685_s25 = int_to_ptr.vmem [resolvable:$false] %s2684_s25 }
 0x26a   : > { %s2686_s17 = scalar_lea.vmem %s2685_s25, 512  ;;  %p2687_p1 = scmp.lt.s32.totalorder %s4449_s20, %s2685_s25 }
 0x26b   : > { %v1754_v28 = vpop.permute.xlu1 %1753  ;;  %v1773_v44 = vpop.permute.xlu0 %1772  ;;  %p2688_p10 = scmp.lt.s32.totalorder %s2686_s17, %s2680_s12 }
 0x26c   : > { %v1758_v9 = vadd.f32 %v1754_v28, %v1683_v46  ;;  %v1778_v52 = vadd.f32 %v1773_v44, %v1696_v42 }
 0x26d   : > { %p2689_p8 = por %p2688_p10, %p2687_p1 }
 0x26f   : > { %v1775_v30 = vpop.permute.xlu1 %1774  ;;  %v1794_v7 = vpop.permute.xlu0 %1793  ;;  %p2690_p9 = pnand %p2689_p8, %p2683_p2 }
 0x270   : > { %v1779_v38 = vadd.f32 %v1775_v30, %v1697_v1  ;;  %v1802_v51 = vadd.f32 %v1794_v7, %v1715_v3 }
 0x273   : > { %v1796_v47 = vpop.permute.xlu1 %1795  ;;  %v1798_v61 = vpop.permute.xlu0 %1797 }
 0x274   : > { %v1803_v40 = vadd.f32 %v1796_v47, %v1716_v21  ;;  %v1804_v4 = vadd.f32 %v1798_v61, %v1717_v55 }
 0x277   : > { %v1819_v39 = vpop.permute.xlu1 %1818  ;;  %v1821_v37 = vpop.permute.xlu0 %1820 }
 0x278   : > { %v1827_v12 = vadd.f32 %v1819_v39, %v1735_v13  ;;  %v1828_v24 = vadd.f32 %v1821_v37, %v1736_v6 }
 0x27b   : > { %v1823_v62 = vpop.permute.xlu1 %1822  ;;  %v1844_v11 = vpop.permute.xlu0 %1843 }
 0x27c   : > { %v1829_v16 = vadd.f32 %v1823_v62, %v1737_v43  ;;  %v1849_v0 = vadd.f32 %v1844_v11, %v1757_v31 }
 0x27f   : > { %v1846_v27 = vpop.permute.xlu1 %1845  ;;  %v1865_v60 = vpop.permute.xlu0 %1864 }
 0x280   : > { %v1850_v20 = vadd.f32 %v1846_v27, %v1758_v9  ;;  %v4425_v10 = vadd.f32 %v1865_v60, %v1778_v52 }
 0x283   : > { %v1867_v53 = vpop.permute.xlu1 %1866  ;;  %v1886_v46 = vpop.permute.xlu0 %1885 }
 0x284   : > { %v4427_v42 = vadd.f32 %v1867_v53, %v1779_v38  ;;  %v1894_v54 = vadd.f32 %v1886_v46, %v1802_v51 }
 0x287   : > { %v1888_v32 = vpop.permute.xlu1 %1887  ;;  %v1890_v23 = vpop.permute.xlu0 %1889 }
 0x288   : > { %v1895_v34 = vadd.f32 %v1888_v32, %v1803_v40  ;;  %v1896_v49 = vadd.f32 %v1890_v23, %v1804_v4 }
 0x28b   : > { %v1911_v50 = vpop.permute.xlu1 %1910  ;;  %v1913_v17 = vpop.permute.xlu0 %1912 }
 0x28c   : > { %v1919_v57 = vadd.f32 %v1911_v50, %v1827_v12  ;;  %v1920_v45 = vadd.f32 %v1913_v17, %v1828_v24 }
 0x28f   : > { %v1915_v58 = vpop.permute.xlu1 %1914  ;;  %v1936_v1 = vpop.permute.xlu0 %1935 }
 0x290   : > { %v1921_v3 = vadd.f32 %v1915_v58, %v1829_v16  ;;  %v1941_v33 = vadd.f32 %v1936_v1, %v1849_v0 }
 0x293   : > { %v1938_v15 = vpop.permute.xlu1 %1937  ;;  %v1957_v63 = vpop.permute.xlu0 %1956 }
 0x294   : > { %v4429_v25 = vadd.f32 %v1938_v15, %v1850_v20  ;;  %v1962_v15 = vadd.f32 %v1957_v63, %v4425_v10 }
 0x297   : > { %v4431_v56 = vpop.permute.xlu1 %1958  ;;  %v2001_v5 = vpop.permute.xlu0 %2000 }
 0x298   : > { %v2009_v22 = vadd.f32 %v2001_v5, %v1894_v54 }
 0x29b   : > { %v2003_v26 = vpop.permute.xlu1 %2002  ;;  %v2005_v14 = vpop.permute.xlu0 %2004 }
 0x29c   : > { %v2010_v9 = vadd.f32 %v2003_v26, %v1895_v34  ;;  %v2011_v52 = vadd.f32 %v2005_v14, %v1896_v49 }
 0x29f   : > { %v2021_v19 = vpop.permute.xlu1 %2020  ;;  %v2023_v21 = vpop.permute.xlu0 %2022 }
 0x2a0   : > { %v2029_v47 = vadd.f32 %v2021_v19, %v1919_v57  ;;  %v2030_v4 = vadd.f32 %v2023_v21, %v1920_v45 }
 0x2a3   : > { %v2025_v55 = vpop.permute.xlu1 %2024  ;;  %v1971_v8 = vpop.permute.xlu0 %1970 }
 0x2a4   : > { %v2031_v0 = vadd.f32 %v2025_v55, %v1921_v3  ;;  %v1976_v45 = vadd.f32 %v1971_v8, %v1941_v33 }
 0x2a7   : > { %v1973_v29 = vpop.permute.xlu1 %1972  ;;  %v1985_v2 = vpop.permute.xlu0 %1984 }
 0x2a8   : > { %v1977_v14 = vadd.f32 %v1973_v29, %v4429_v25  ;;  %v1990_v19 = vadd.f32 %v1985_v2, %v1962_v15 }
 0x2ab   : > { %v1987_v41 = vpop.permute.xlu1 %1986  ;;  %v2088_v36 = vpop.permute.xlu0 %2087 }
 0x2ac   : > { %v2096_v30 = vadd.f32 %v2088_v36, %v2009_v22 }
 0x2af   : > { %v2090_v13 = vpop.permute.xlu1 %2089  ;;  %v2092_v6 = vpop.permute.xlu0 %2091 }
 0x2b0   : > { %v2097_v7 = vadd.f32 %v2090_v13, %v2010_v9  ;;  %v2098_v38 = vadd.f32 %v2092_v6, %v2011_v52  ;;  %v1963_v13 = vadd.f32 %v4431_v56, %v4427_v42 }
 0x2b2   : > { %v1991_v8 = vadd.f32 %v1987_v41, %v1963_v13 }
 0x2b3   : > { %v2113_v59 = vpop.permute.xlu1 %2112  ;;  %v2115_v48 = vpop.permute.xlu0 %2114 }
 0x2b4   : > { %v2121_v12 = vadd.f32 %v2113_v59, %v2029_v47  ;;  %v2122_v24 = vadd.f32 %v2115_v48, %v2030_v4 }
 0x2b7   : > { %v2117_v35 = vpop.permute.xlu1 %2116  ;;  %v2046_v18 = vpop.permute.xlu0 %2045 }
 0x2b8   : > { %v2123_v32 = vadd.f32 %v2117_v35, %v2031_v0  ;;  %v2051_v5 = vadd.f32 %v2046_v18, %v1976_v45 }
 0x2bb   : > { %v2048_v43 = vpop.permute.xlu1 %2047  ;;  %v2067_v31 = vpop.permute.xlu0 %2066 }
 0x2bc   : > { %v2052_v6 = vadd.f32 %v2048_v43, %v1977_v14  ;;  %v2072_v59 = vadd.f32 %v2067_v31, %v1990_v19 }
 0x2bf   : > { %v2069_v28 = vpop.permute.xlu1 %2068  ;;  %v2180_v44 = vpop.permute.xlu0 %2179 }
 0x2c0   : > { %v2188_v51 = vadd.f32 %v2180_v44, %v2096_v30  ;;  %v2073_v18 = vadd.f32 %v2069_v28, %v1991_v8 }
 0x2c2   : > { %v2262_v62 = vrot.slane %v2188_v51, 1 }
 0x2c3   : > { %v2182_v61 = vpop.permute.xlu1 %2181  ;;  %v2184_v40 = vpop.permute.xlu0 %2183 }
 0x2c4   : > { %v2189_v39 = vadd.f32 %v2182_v61, %v2097_v7  ;;  %v2190_v37 = vadd.f32 %v2184_v40, %v2098_v38 }
 0x2c6   : > { %v2263_v11 = vrot.slane %v2189_v39, 1  ;;  %v2265_v16 = vrot.slane %v2190_v37, 1 }
 0x2c7   : > { %v2205_v27 = vpop.permute.xlu1 %2204  ;;  %v2207_v60 = vpop.permute.xlu0 %2206 }
 0x2c8   : > { %v2213_v20 = vadd.f32 %v2205_v27, %v2121_v12  ;;  %v2214_v53 = vadd.f32 %v2207_v60, %v2122_v24  ;;  %v2264_v46 = vsel %vm2261_vm7, %v2262_v62, %v2263_v11  ;;  %v2266_v54 = vsel %vm2261_vm7, %v2263_v11, %v2265_v16 }
 0x2ca   : > { %v2274_v23 = vrot.slane %v2213_v20, 1  ;;  %v2275_v34 = vrot.slane %v2214_v53, 1 }
 0x2cb   : > { %v2209_v49 = vpop.permute.xlu1 %2208  ;;  %v2138_v50 = vpop.permute.xlu0 %2137 }
 0x2cc   : > { %v2215_v17 = vadd.f32 %v2209_v49, %v2123_v32  ;;  %v2276_v57 = vsel %vm2261_vm7, %v2274_v23, %v2275_v34  ;;  %v2143_v21 = vadd.f32 %v2138_v50, %v2051_v5 }
 0x2ce   : > { %v2277_v58 = vrot.slane %v2215_v17, 1 }
 0x2cf   : > { %v2140_v1 = vpop.permute.xlu1 %2139  ;;  %v2159_v3 = vpop.permute.xlu0 %2158 }
 0x2d0   : > { %v2278_v26 = vsel %vm2261_vm7, %v2275_v34, %v2277_v58  ;;  %v2144_v48 = vadd.f32 %v2140_v1, %v2052_v6  ;;  %v2164_v35 = vadd.f32 %v2159_v3, %v2072_v59 }
 0x2d3   : > { %v2161_v55 = vpop.permute.xlu1 %2160  ;;  %v2230_v36 = vpop.permute.xlu0 %2229 }
 0x2d4   : > { %v2235_v33 = vadd.f32 %v2230_v36, %v2143_v21  ;;  %v2165_v25 = vadd.f32 %v2161_v55, %v2073_v18 }
 0x2d6   : > { %v2269_v22 = vadd.f32 %v2264_v46, %v2235_v33 }
 0x2d7   : > { %v2232_v10 = vpop.permute.xlu1 %2231  ;;  %v2251_v63 = vpop.permute.xlu0 %2250 }
 0x2d8   : > { %v2236_v44 = vadd.f32 %v2232_v10, %v2144_v48  ;;  %v2256_v9 = vadd.f32 %v2251_v63, %v2164_v35 }
 0x2da   : > { %v2270_v29 = vadd.f32 %v2266_v54, %v2236_v44  ;;  %v2281_v2 = vadd.f32 %v2276_v57, %v2256_v9 }
 0x2db   : > { %v2253_v52 = vpop.permute.xlu1 %2252 }
 0x2dc   : > { %v2283_v30 = vadd.f32 %v2281_v2, %v2269_v22  ;;  %v2257_v7 = vadd.f32 %v2253_v52, %v2165_v25 }
 0x2de   : > { %v2285_v42 = vsub.f32 0.0, %v2283_v30  ;;  %v2282_v56 = vadd.f32 %v2278_v26, %v2257_v7 }
 0x2e0   : > { %v2287_v43 = vmul.f32 1.442695, %v2285_v42  ;;  %v2284_v41 = vadd.f32 %v2282_v56, %v2270_v29 }
 0x2e2   : > { %2617 = vpow2.f32 %v2287_v43  ;;  %v2286_v31 = vsub.f32 0.0, %v2284_v41 }
 0x2e4   : > { %v2289_v38 = vmul.f32 1.442695, %v2286_v31 }
 0x2e6   : > { %2619 = vpow2.f32 %v2289_v38 }
 0x2ef   : > { %v2618_v51 = vpop.eup %2617 }
 0x2f0   : > { %v2291_v28 = vadd.f32 1.0, %v2618_v51 }
 0x2f2   : > { %2621 = vrcp.f32 %v2291_v28 }
 0x2f3   : > { %v2620_v47 = vpop.eup %2619 }
 0x2f4   : > { %v2292_v61 = vadd.f32 1.0, %v2620_v47 }
 0x2f6   : > { %2623 = vrcp.f32 %v2292_v61 }
 0x2ff   : > { %v2622_v40 = vpop.eup %2621 }
 0x300   : > { %2298 = vst.msk [vmem:[%s192_s26] sm:$0xff] %vm221_vm1, %v2622_v40 }
 0x303   : > { %v2624_v4 = vpop.eup %2623 }
 0x304   : > { %2299 = vst.msk [vmem:[%s192_s26 + $0x8] sm:$0xff] %vm221_vm1, %v2624_v4 }
 0x305   : > { %2693 = shalt.err (!%p2690_p9)
}
 0x306   : > { %s2694_s19 = scalar_lea.hbm %s4447_s30, 256  ;;  %s2698_s8 = scalar_lea.hbm %s4500_s2, 512 }
 0x307   : > { %p2695_p13 = scmp.ne.s32.totalorder %s4447_s30, %s2694_s19  ;;  %p2699_p11 = scmp.lt.s32.totalorder %s4447_s30, %s4500_s2 }
 0x308   : > { %p2700_p5 = scmp.lt.s32.totalorder %s2698_s8, %s2694_s19 }
 0x309   : > { %p2696_p4 = pnand %p2695_p13, %p4678_p7 }
 0x30a   : > { %p2701_p0 = por %p2700_p5, %p2699_p11 }
 0x30b   : > { %p2697_p6 = pneg %p2696_p4 }
 0x30d   : > { %p2702_p3 = pnand %p2701_p0, %p2697_p6 }
 0x30f   : > { %2705 = shalt.err (!%p2702_p3)
}
 0x310   : > { %s2779_s1 = smov 128   ;;  %s2780_s16 = smov 8  }
 0x311   : > { %2538 = dma.vmem_to_hbm [thread:$0]  (%p4678_p7), %s4449_s20, 256, %s4447_s30, %s2301_s24, %s2779_s1, %s2779_s1, %s2780_s16  }
 0x312 PF: > { %s2329_s5 = sand.u32 1, %s2744_s9   ;;  %p4679_p12 = scmp.ne.s32.totalorder %s4513_s22, 0 }
 0x313   : > { %p4680_p2 = scmp.ge.s32.totalorder %s2764_s14, 2  ;;  %s2330_s15 = scalar_lea.sflag [#allocation8], %s2329_s5 }
 0x315   : > { %p2549_p1 = pnand %p4680_p2, %p4679_p12 }
 0x317   : > { %p2550_p10 = pneg %p2549_p1 }
 0x319   : > { %2739 = dma.done.wait (%p2550_p10), %s2330_s15, 256  }
 0x31a   : > { %2741 = vsyncadd (%p2550_p10), %s2330_s15, 4294967040  ;;  %s19_s14 = sadd.s32 1, %s2764_s14   ;;  %s4681_s9 = smov %s2748_s10 }
 0x31b   : > { %p16_p8 = scmp.ge.s32.totalorder %s19_s14, 4   ;;  %s4682_s10 = smov %s2752_s11 }
 0x31c   : > { %s4683_s11 = smov %s2904_s28  ;;  %s4684_s12 = smov %s2760_s13 }
 0x31d   : > { %s4685_s13 = smov %s4687_s29  ;;  %18 = sbr.rel (!%p16_p8) target bundleno = 10 (0xa), region = 93 }
 0x322   :  { %2335 = vsyncpa [#allocation7], 1 }
 0x323   :  { %2337 = vsyncpa [#allocation7 + $0x1], 1 }
 0x324   :  { %2338 = vsyncpa [#allocation8], 1 }
 0x325   :  { %2340 = vsyncpa [#allocation8 + $0x1], 1 }
 0x326   :  { %2341 = vsyncpa [#allocation9], 1 }
 0x327   :  { %2343 = vsyncpa [#allocation9 + $0x1], 1 }

</bundles_post_ra>
